<compile_context>
chip_gen: v7x
topology: tpu7x:2x2x1
jax: 0.10.0
libtpu: 0.0.40
codegen_flags: <defaults>
</compile_context>

<pallas_src>
import numpy as np
import jax
import jax.numpy as jnp
from jax.experimental import pallas as pl
from jax.experimental.pallas import tpu as pltpu

# ---- mini-scale config (stand-ins for the real pSp sizes) ----
S        = 16   # encoder input resolution    (real: 256)
C_ENC    = 16   # encoder channels            (real: 64..512)
W_DIM    = 32   # latent / style width        (real: 512)
N_STYLES = 6    # = 2*log2(GEN_SIZE) - 2      (real: 18)
C_GEN    = 16   # generator channels          (real: 512)
GEN_SIZE = 16   # generator output resolution (real: 1024)
POOL     = 8    # face_pool target            (real: 1024)
C_IN_PAD = 16   # encoder conv1 input channels zero-padded 3 -> 16 (uniform 9*C width)

SQRT2 = 1.4142135623730951
BF16  = jnp.bfloat16
TAPS  = [(ky, kx) for ky in range(3) for kx in range(3)]

VMEM_SPEC = pl.BlockSpec(memory_space=pltpu.MemorySpace.VMEM)


# ========================= parameter packing (3 flat buffers, static layout) =========================
class _RowPack:
    """Packs many small 2-D params into one (rows, width) buffer; slot starts are tile-aligned."""

    def __init__(self, width, dtype, align=16):
        self.width, self.dtype, self.align = width, dtype, align
        self.slots, self.rows = {}, 0

    def add(self, name, nrows, ncols):
        assert ncols <= self.width, (name, ncols, self.width)
        self.slots[name] = (self.rows, nrows, ncols)
        self.rows += -(-nrows // self.align) * self.align

    def build(self, arrays):                          # host side, one-time
        buf = np.zeros((max(self.rows, self.align), self.width), np.float32)
        for name, (r0, nr, nc) in self.slots.items():
            a = np.asarray(arrays[name], np.float32)
            assert a.shape == (nr, nc), (name, a.shape, (nr, nc))
            buf[r0:r0 + nr, :nc] = a
        return jnp.asarray(buf).astype(self.dtype)

    def get(self, ref, name, rows=None):              # kernel side: static ref slice -> load
        r0, nr, nc = self.slots[name]
        if rows is None:
            return ref[r0:r0 + nr, 0:nc]
        a, b = rows
        return ref[r0 + a:r0 + b, 0:nc]


def _build_packs():
    pf = _RowPack(16, jnp.float32)          # biases / prelu slopes / wsq / const (f32 epilogues)
    pw = _RowPack(9 * C_ENC, BF16)          # all matmul weights (bf16 MXU operands)
    ps = _RowPack(S * S, jnp.float32)       # selection / mask constants (exact 0-1 / 0.25 values)

    pf.add('e_b1', C_ENC, 1); pf.add('e_a1', C_ENC, 1)
    for i in (2, 3, 4):
        pf.add('e_b%d' % i, C_ENC, 1); pf.add('e_a%d' % i, C_ENC, 1)
    pf.add('lat_b1', C_ENC, 1); pf.add('lat_b2', C_ENC, 1)
    pf.add('sty_b', N_STYLES * W_DIM, 1)
    pf.add('mod_b', 8 * C_GEN, 1)           # 5 styled convs + 3 to_rgb
    pf.add('act_b', 5 * C_GEN, 1)
    pf.add('wsq', 5 * C_GEN, C_GEN)
    pf.add('rgb_b', 9, 1)
    pf.add('const', C_GEN, 16)

    pw.add('e_w1', C_ENC, 9 * C_IN_PAD)
    for i in (2, 3, 4):
        pw.add('e_w%d' % i, C_ENC, 9 * C_ENC)
    pw.add('lat_w1', C_ENC, C_ENC); pw.add('lat_w2', C_ENC, C_ENC)
    pw.add('sty_w', N_STYLES * W_DIM, C_ENC)
    pw.add('mod_w', 8 * C_GEN, W_DIM)
    pw.add('g_wf', 5 * C_GEN, 9 * C_GEN)
    pw.add('r_wf', 9, C_GEN)

    ps.add('mask16', 9, 256); ps.add('mask8', 9, 64); ps.add('mask4', 9, 16)
    ps.add('dec16', 256, 64); ps.add('dec8', 64, 16); ps.add('dec4', 16, 4)
    ps.add('up2', 4, 16); ps.add('up4', 16, 64); ps.add('up8', 64, 256)
    ps.add('pool16', 256, 64)
    return pf, pw, ps


PF, PW, PS = _build_packs()


# ========================= host-side constant builders (exact, built once) =========================
def _np_mask9(H, W):
    M = np.zeros((9, H * W), np.float32)
    for t, (ky, kx) in enumerate(TAPS):
        dy, dx = ky - 1, kx - 1
        for y in range(H):
            for x in range(W):
                if 0 <= y + dy < H and 0 <= x + dx < W:
                    M[t, y * W + x] = 1.0
    return M


def _np_dec(H, W):
    Ho, Wo = H // 2, W // 2
    D = np.zeros((H * W, Ho * Wo), np.float32)
    for oy in range(Ho):
        for ox in range(Wo):
            D[(2 * oy) * W + 2 * ox, oy * Wo + ox] = 1.0
    return D


def _np_up2(H, W):
    U = np.zeros((H * W, 4 * H * W), np.float32)
    for qy in range(2 * H):
        for qx in range(2 * W):
            U[(qy // 2) * W + qx // 2, qy * (2 * W) + qx] = 1.0
    return U


def _np_pool(H, W, Ho, Wo):
    ry, rx = H // Ho, W // Wo
    P = np.zeros((H * W, Ho * Wo), np.float32)
    for y in range(H):
        for x in range(W):
            P[y * W + x, (y // ry) * Wo + x // rx] = 1.0 / (ry * rx)
    return P


# ========================= the fused pSp forward kernel =========================
def _psp_fused_kernel(x_ref, pf_ref, pw_ref, ps_ref, out_ref):
    f32 = jnp.float32

    def fget(name, rows=None): return PF.get(pf_ref, name, rows)
    def wget(name, rows=None): return PW.get(pw_ref, name, rows)
    def sget(name, rows=None): return PS.get(ps_ref, name, rows)

    def bdot(w_bf16, act_f32):             # weight matmul: bf16 operands, f32 accumulation
        return jnp.dot(w_bf16, act_f32.astype(BF16), preferred_element_type=f32)

    def sdot(act_f32, sel_f32):            # selection/pool matmuls stay f32 (exact copies)
        return jnp.dot(act_f32, sel_f32, preferred_element_type=f32)

    def prelu(v, a):
        return jnp.where(v >= 0.0, v, a * v)

    def flrelu(v):                          # FusedLeakyReLU (noise injection omitted)
        return jnp.where(v >= 0.0, v, 0.2 * v) * SQRT2

    def conv3x3(v, H, W, wf_bf16, bias=None):
        """3x3 / stride-1 / pad-1 conv: in-VMEM im2col (XLU roll + precomputed mask) + one MXU matmul."""
        HW = H * W
        mask9 = sget('mask%d' % H)                       # (9, HW) f32, built host-side
        slabs = []
        for t, (ky, kx) in enumerate(TAPS):
            dy, dx = ky - 1, kx - 1
            sft = dy * W + dx
            if sft == 0:
                slabs.append(v)
            else:
                slabs.append(pltpu.roll(v, (-sft) % HW, 1) * mask9[t:t + 1, :])
        col = jnp.concatenate(slabs, axis=0)             # (9*Cin, HW) f32, never touches HBM
        out = bdot(wf_bf16, col)
        if bias is not None:
            out = out + bias
        return out

    # ---- preprocessing fused into the kernel: (x/255).clip(0,1); (x-0.5)/0.5 ----
    x = x_ref[...]                                       # (C_IN_PAD, S*S) raw [0,255]
    x = (jnp.clip(x * (1.0 / 255.0), 0.0, 1.0) - 0.5) * 2.0

    # -------------------- GradualStyleEncoder (mini) --------------------
    h = prelu(conv3x3(x, S, S, wget('e_w1'), fget('e_b1')), fget('e_a1'))                 # 16x16
    # stride-2 conv == stride-1 conv + precomputed 0/1 decimation (prelu commutes)
    c1 = prelu(sdot(conv3x3(h,  16, 16, wget('e_w2'), fget('e_b2')), sget('dec16')), fget('e_a2'))  # 8x8
    c2 = prelu(sdot(conv3x3(c1,  8,  8, wget('e_w3'), fget('e_b3')), sget('dec8')),  fget('e_a3'))  # 4x4
    c3 = prelu(sdot(conv3x3(c2,  4,  4, wget('e_w4'), fget('e_b4')), sget('dec4')),  fget('e_a4'))  # 2x2

    # FPN-style lateral merges (1x1 convs are plain channel matmuls)
    # TODO(synk): real encoder uses F.interpolate(bilinear, align_corners=True); nearest here.
    p2 = sdot(c3, sget('up2')) + (bdot(wget('lat_w1'), c2) + fget('lat_b1'))              # 4x4
    p1 = sdot(p2, sget('up4')) + (bdot(wget('lat_w2'), c1) + fget('lat_b2'))              # 8x8

    # style heads: global average pool + EqualLinear, all 6 heads batched into ONE matmul
    # TODO(synk): real GradualStyleBlock uses a stack of stride-2 convs before the linear.
    pooled = jnp.concatenate([jnp.mean(c3, axis=1, keepdims=True),
                              jnp.mean(p2, axis=1, keepdims=True),
                              jnp.mean(p1, axis=1, keepdims=True)], axis=1)               # (C_ENC, 3)
    heads = bdot(wget('sty_w'), pooled) + fget('sty_b')                                   # (6*W_DIM, 3)
    feat_of = (0, 0, 1, 1, 2, 2)
    codes = [heads[i * W_DIM:(i + 1) * W_DIM, feat_of[i]:feat_of[i] + 1] for i in range(N_STYLES)]
    codes_mat = jnp.concatenate(codes, axis=1)                                            # (W_DIM, 6)

    # -------------------- StyleGAN2 generator (mini) --------------------
    # All 8 per-layer style modulations (5 styled convs + 3 to_rgb) batched into one matmul.
    mods = bdot(wget('mod_w'), codes_mat) + fget('mod_b')                                 # (8*C_GEN, 6)
    wsq_all  = fget('wsq')                                                                # (5*C_GEN, C_GEN)
    actb_all = fget('act_b')                                                              # (5*C_GEN, 1)
    rgbw_all = wget('r_wf')                                                               # (9, C_GEN) bf16
    rgbb_all = fget('rgb_b')                                                              # (9, 1)

    def styled_conv(v, H, W, i, ci, upsample):
        if upsample:
            # TODO(synk): real StyleGAN2 uses transposed conv + upfirdn2d blur.
            v = sdot(v, sget('up%d' % H))
            H, W = 2 * H, 2 * W
        s = mods[i * C_GEN:(i + 1) * C_GEN, ci:ci + 1]                                    # (Cin, 1) f32
        pre = conv3x3(v * s, H, W, wget('g_wf', rows=(i * C_GEN, (i + 1) * C_GEN)))
        demod = jax.lax.rsqrt(
            jnp.dot(wsq_all[i * C_GEN:(i + 1) * C_GEN, :], s * s,
                    preferred_element_type=f32) + 1e-8)                                   # f32 epilogue
        o = pre * demod + actb_all[i * C_GEN:(i + 1) * C_GEN, :]
        return flrelu(o), H, W

    def to_rgb(v, j, cj, skip=None, skip_up=None):
        s = mods[(5 + j) * C_GEN:(6 + j) * C_GEN, cj:cj + 1]
        o = bdot(rgbw_all[j * 3:(j + 1) * 3, :], v * s) + rgbb_all[j * 3:(j + 1) * 3, :]
        if skip is not None:
            # TODO(synk): real skip path uses a blurred upsample.
            o = o + sdot(skip, sget(skip_up))
        return o

    out = fget('const')                                                                   # (C_GEN, 16) = 4x4
    out, H, W = styled_conv(out, 4, 4, 0, 0, upsample=False)
    skip = to_rgb(out, 0, 1)
    out, H, W = styled_conv(out, H, W, 1, 1, upsample=True)                               # 4 -> 8
    out, H, W = styled_conv(out, H, W, 2, 2, upsample=False)
    skip = to_rgb(out, 1, 3, skip=skip, skip_up='up4')
    out, H, W = styled_conv(out, H, W, 3, 3, upsample=True)                               # 8 -> 16
    out, H, W = styled_conv(out, H, W, 4, 4, upsample=False)
    skip = to_rgb(out, 2, 5, skip=skip, skip_up='up8')

    # ---- face_pool: AdaptiveAvgPool2d(GEN_SIZE -> POOL), precomputed averaging matrix ----
    out_ref[...] = sdot(skip, sget('pool16'))                                             # (3, POOL*POOL)


# ========================= host-side glue =========================
def resize_and_pad(x, size):
    # nearest resize so the long side == size, then zero-pad bottom/right to (size, size)
    # TODO(synk): original resize_and_pad uses an antialiased/bilinear resize.
    C, H, W = x.shape
    scale = size / max(H, W)
    nh, nw = int(round(H * scale)), int(round(W * scale))
    hi = np.minimum((np.arange(nh) / scale).astype(np.int32), H - 1)
    wi = np.minimum((np.arange(nw) / scale).astype(np.int32), W - 1)
    r = x[:, hi][:, :, wi]
    return jnp.zeros((C, size, size), x.dtype).at[:, :nh, :nw].set(r)


def psp_forward(x, kparams):
    """x: raw CHW image in [0, 255]; kparams: (pf, pw, ps) packed buffers from prepare_params()."""
    x = resize_and_pad(x, S)                                             # (3, S, S)
    x = jnp.concatenate([x, jnp.zeros((C_IN_PAD - 3, S, S), x.dtype)], axis=0)
    x = x.reshape(C_IN_PAD, S * S)
    pf, pw, ps = kparams
    out = pl.pallas_call(
        _psp_fused_kernel,
        out_shape=jax.ShapeDtypeStruct((3, POOL * POOL), jnp.float32),
        in_specs=[VMEM_SPEC] * 4,
        out_specs=VMEM_SPEC,
    )(x, pf, pw, ps)
    return out.reshape(1, 3, POOL, POOL)                                 # batch dim == unsqueeze(0)


# ------------------------- deterministic parameter init (original layout) -------------------------
def _normal(k, shape, std=0.1):
    return (std * jax.random.normal(k, shape)).astype(jnp.float32)


def make_params(key):
    keys = jax.random.split(key, 64)
    it = iter(range(64))
    nk = lambda: keys[next(it)]

    def styled_conv_params(cin, cout, k):
        return {'mod_w': _normal(nk(), (W_DIM, cin)),
                'mod_b': jnp.ones((cin,), jnp.float32),
                'weight': _normal(nk(), (cout, cin, k, k), std=1.0),
                'act_b': jnp.zeros((cout,), jnp.float32)}

    def to_rgb_params(cin):
        return {'mod_w': _normal(nk(), (W_DIM, cin)),
                'mod_b': jnp.ones((cin,), jnp.float32),
                'weight': _normal(nk(), (3, cin, 1, 1), std=1.0),
                'bias': jnp.zeros((3,), jnp.float32)}

    enc = {
        'conv1_w': _normal(nk(), (C_ENC, 3, 3, 3)), 'conv1_b': jnp.zeros((C_ENC,), jnp.float32),
        'prelu1': jnp.full((C_ENC,), 0.25, jnp.float32),
        'conv2_w': _normal(nk(), (C_ENC, C_ENC, 3, 3)), 'conv2_b': jnp.zeros((C_ENC,), jnp.float32),
        'prelu2': jnp.full((C_ENC,), 0.25, jnp.float32),
        'conv3_w': _normal(nk(), (C_ENC, C_ENC, 3, 3)), 'conv3_b': jnp.zeros((C_ENC,), jnp.float32),
        'prelu3': jnp.full((C_ENC,), 0.25, jnp.float32),
        'conv4_w': _normal(nk(), (C_ENC, C_ENC, 3, 3)), 'conv4_b': jnp.zeros((C_ENC,), jnp.float32),
        'prelu4': jnp.full((C_ENC,), 0.25, jnp.float32),
        'lat1_w': _normal(nk(), (C_ENC, C_ENC, 1, 1)), 'lat1_b': jnp.zeros((C_ENC,), jnp.float32),
        'lat2_w': _normal(nk(), (C_ENC, C_ENC, 1, 1)), 'lat2_b': jnp.zeros((C_ENC,), jnp.float32),
    }
    for i in range(N_STYLES):
        enc[f'style_w_{i}'] = _normal(nk(), (C_ENC, W_DIM))
        enc[f'style_b_{i}'] = jnp.zeros((W_DIM,), jnp.float32)

    gen = {
        'const': _normal(nk(), (C_GEN, 4, 4), std=1.0),
        'conv1': styled_conv_params(C_GEN, C_GEN, 3),
        'to_rgb1': to_rgb_params(C_GEN),
        'layers': [{'convA': styled_conv_params(C_GEN, C_GEN, 3),
                    'convB': styled_conv_params(C_GEN, C_GEN, 3),
                    'to_rgb': to_rgb_params(C_GEN)} for _ in range(2)],
    }
    return {'enc': enc, 'gen': gen}


# ------------------------- one-time weight prep: pack into 3 flat buffers -------------------------
def _flat_w(w):
    # (Cout, Cin, kh, kw) -> (Cout, kh*kw*Cin), index order (ky, kx, cin) == in-kernel col order
    w = np.asarray(w, np.float32)
    Cout, Cin, kh, kw = w.shape
    return np.transpose(w, (0, 2, 3, 1)).reshape(Cout, kh * kw * Cin)


def prepare_params(p):
    enc, gen = p['enc'], p['gen']
    fa, wa, sa = {}, {}, {}

    w1 = np.zeros((C_ENC, C_IN_PAD, 3, 3), np.float32)
    w1[:, :3] = np.asarray(enc['conv1_w'])
    wa['e_w1'] = _flat_w(w1)
    fa['e_b1'] = np.asarray(enc['conv1_b']).reshape(C_ENC, 1)
    fa['e_a1'] = np.asarray(enc['prelu1']).reshape(C_ENC, 1)
    for i in (2, 3, 4):
        wa['e_w%d' % i] = _flat_w(enc[f'conv{i}_w'])
        fa['e_b%d' % i] = np.asarray(enc[f'conv{i}_b']).reshape(C_ENC, 1)
        fa['e_a%d' % i] = np.asarray(enc[f'prelu{i}']).reshape(C_ENC, 1)
    wa['lat_w1'] = np.asarray(enc['lat1_w']).reshape(C_ENC, C_ENC)
    wa['lat_w2'] = np.asarray(enc['lat2_w']).reshape(C_ENC, C_ENC)
    fa['lat_b1'] = np.asarray(enc['lat1_b']).reshape(C_ENC, 1)
    fa['lat_b2'] = np.asarray(enc['lat2_b']).reshape(C_ENC, 1)
    wa['sty_w'] = np.concatenate([np.asarray(enc[f'style_w_{i}']).T for i in range(N_STYLES)], axis=0)
    fa['sty_b'] = np.concatenate([np.asarray(enc[f'style_b_{i}']).reshape(W_DIM, 1)
                                  for i in range(N_STYLES)], axis=0)

    fa['const'] = np.asarray(gen['const']).reshape(C_GEN, 16)

    sconvs = [gen['conv1'],
              gen['layers'][0]['convA'], gen['layers'][0]['convB'],
              gen['layers'][1]['convA'], gen['layers'][1]['convB']]
    rgbs = [gen['to_rgb1'], gen['layers'][0]['to_rgb'], gen['layers'][1]['to_rgb']]

    mod_w, mod_b, g_wf, wsq, actb, r_wf, r_bias = [], [], [], [], [], [], []
    for c in sconvs:
        w = np.asarray(c['weight'])                                      # (Cout, Cin, 3, 3)
        Cout, Cin, kh, kw = w.shape
        scale = 1.0 / np.sqrt(Cin * kh * kw)
        g_wf.append(_flat_w(w) * scale)                                  # pre-scaled bf16 weight
        wsq.append(np.sum(w * w, axis=(2, 3)) * scale * scale)           # for in-kernel demod (f32)
        mod_w.append(np.asarray(c['mod_w']).T * (1.0 / np.sqrt(W_DIM)))  # (Cin, W_DIM) pre-scaled
        mod_b.append(np.asarray(c['mod_b']).reshape(Cin, 1))
        actb.append(np.asarray(c['act_b']).reshape(Cout, 1))
    for c in rgbs:
        w = np.asarray(c['weight'])                                      # (3, Cin, 1, 1)
        Cin = w.shape[1]
        r_wf.append(w.reshape(3, Cin) * (1.0 / np.sqrt(Cin)))
        mod_w.append(np.asarray(c['mod_w']).T * (1.0 / np.sqrt(W_DIM)))
        mod_b.append(np.asarray(c['mod_b']).reshape(Cin, 1))
        r_bias.append(np.asarray(c['bias']).reshape(3, 1))

    wa['mod_w'] = np.concatenate(mod_w, axis=0)                          # (8*C_GEN, W_DIM)
    fa['mod_b'] = np.concatenate(mod_b, axis=0)
    wa['g_wf'] = np.concatenate(g_wf, axis=0)                            # (5*C_GEN, 9*C_GEN)
    fa['wsq'] = np.concatenate(wsq, axis=0)
    fa['act_b'] = np.concatenate(actb, axis=0)
    wa['r_wf'] = np.concatenate(r_wf, axis=0)                            # (9, C_GEN)
    fa['rgb_b'] = np.concatenate(r_bias, axis=0)

    # selection / mask constants (exact values; built host-side once, never rebuilt in-kernel)
    sa['mask16'] = _np_mask9(16, 16); sa['mask8'] = _np_mask9(8, 8); sa['mask4'] = _np_mask9(4, 4)
    sa['dec16'] = _np_dec(16, 16); sa['dec8'] = _np_dec(8, 8); sa['dec4'] = _np_dec(4, 4)
    sa['up2'] = _np_up2(2, 2); sa['up4'] = _np_up2(4, 4); sa['up8'] = _np_up2(8, 8)
    sa['pool16'] = _np_pool(GEN_SIZE, GEN_SIZE, POOL, POOL)

    return PF.build(fa), PW.build(wa), PS.build(sa)


# ========================= pure-JAX reference (validation only, no Pallas) =========================
_HIGH = jax.lax.Precision.HIGHEST


def _ref_im2col(x, k, stride, pad):
    C, H, W = x.shape
    xp = jnp.pad(x, ((0, 0), (pad, pad), (pad, pad)))
    Ho = (H + 2 * pad - k) // stride + 1
    Wo = (W + 2 * pad - k) // stride + 1
    cols = []
    for ky in range(k):
        for kx in range(k):
            cols.append(xp[:, ky:ky + stride * Ho:stride, kx:kx + stride * Wo:stride])
    return jnp.stack(cols, axis=1).reshape(C * k * k, Ho * Wo), Ho, Wo


def _ref_conv2d(x, w, b=None, stride=1, pad=1):
    Cout, Cin, k, _ = w.shape
    col, Ho, Wo = _ref_im2col(x, k, stride, pad)
    out = jnp.dot(w.reshape(Cout, Cin * k * k), col, precision=_HIGH)
    if b is not None:
        out = out + b.reshape(Cout, 1)
    return out.reshape(Cout, Ho, Wo)


def _ref_prelu(x, a):
    return jnp.where(x >= 0.0, x, a.reshape(-1, 1, 1) * x)


def _ref_flrelu(x, b):
    x = x + b.reshape(-1, 1, 1)
    return jnp.where(x >= 0.0, x, 0.2 * x) * SQRT2


def _ref_up2(x):
    return jnp.repeat(jnp.repeat(x, 2, axis=1), 2, axis=2)


def _ref_adaptive_pool(x, Ho, Wo):
    C, H, W = x.shape
    return x.reshape(C, Ho, H // Ho, Wo, W // Wo).mean(axis=(2, 4))


def ref_encoder(x, p):
    h = _ref_prelu(_ref_conv2d(x, p['conv1_w'], p['conv1_b'], 1, 1), p['prelu1'])
    c1 = _ref_prelu(_ref_conv2d(h, p['conv2_w'], p['conv2_b'], 2, 1), p['prelu2'])
    c2 = _ref_prelu(_ref_conv2d(c1, p['conv3_w'], p['conv3_b'], 2, 1), p['prelu3'])
    c3 = _ref_prelu(_ref_conv2d(c2, p['conv4_w'], p['conv4_b'], 2, 1), p['prelu4'])
    p2 = _ref_up2(c3) + _ref_conv2d(c2, p['lat1_w'], p['lat1_b'], 1, 0)
    p1 = _ref_up2(p2) + _ref_conv2d(c1, p['lat2_w'], p['lat2_b'], 1, 0)
    feats = [c3, c3, p2, p2, p1, p1]
    codes = []
    for i, f in enumerate(feats):
        pooled = f.mean(axis=(1, 2)).reshape(1, C_ENC)
        codes.append(jnp.dot(pooled, p[f'style_w_{i}'], precision=_HIGH)
                     + p[f'style_b_{i}'].reshape(1, W_DIM))
    return jnp.concatenate(codes, axis=0)


def ref_modulated_conv(x, style, p, demodulate=True, upsample=False):
    Cout, Cin, k, _ = p['weight'].shape
    s = (jnp.dot(style.reshape(1, W_DIM) * (1.0 / np.sqrt(W_DIM)), p['mod_w'], precision=_HIGH)
         + p['mod_b'].reshape(1, Cin))
    scale = 1.0 / np.sqrt(Cin * k * k)
    w = p['weight'] * scale * s.reshape(1, Cin, 1, 1)
    if demodulate:
        demod = jax.lax.rsqrt(jnp.sum(w * w, axis=(1, 2, 3)) + 1e-8)
        w = w * demod.reshape(Cout, 1, 1, 1)
    if upsample:
        x = _ref_up2(x)
    return _ref_conv2d(x, w, None, 1, k // 2)


def ref_styled_conv(x, style, p, upsample=False):
    return _ref_flrelu(ref_modulated_conv(x, style, p, True, upsample), p['act_b'])


def ref_to_rgb(x, style, p, skip=None):
    out = ref_modulated_conv(x, style, p, False, False) + p['bias'].reshape(3, 1, 1)
    if skip is not None:
        out = out + _ref_up2(skip)
    return out


def ref_generator(codes, p):
    out = p['const']
    out = ref_styled_conv(out, codes[0], p['conv1'])
    skip = ref_to_rgb(out, codes[1], p['to_rgb1'])
    i = 1
    for layer in p['layers']:
        out = ref_styled_conv(out, codes[i], layer['convA'], upsample=True)
        out = ref_styled_conv(out, codes[i + 1], layer['convB'])
        skip = ref_to_rgb(out, codes[i + 2], layer['to_rgb'], skip=skip)
        i += 2
    return skip


def ref_forward(x, params):
    x = resize_and_pad(x, S)
    x = jnp.clip(x / 255.0, 0.0, 1.0)
    x = (x - 0.5) / 0.5
    codes = ref_encoder(x, params['enc'])
    img = ref_generator(codes, params['gen'])
    return _ref_adaptive_pool(img, POOL, POOL)[None]


# ========================= main =========================
if __name__ == "__main__":
    # raw image, CHW, values in [0, 255] (non-square to exercise resize_and_pad)
    x = jax.random.uniform(jax.random.PRNGKey(0), (3, 16, 12), jnp.float32, 0.0, 255.0)
    params = make_params(jax.random.PRNGKey(1))
    kparams = prepare_params(params)

    fwd = jax.jit(psp_forward)
    out = jax.block_until_ready(fwd(x, kparams))
    assert out.shape == (1, 3, POOL, POOL), out.shape
    assert bool(jnp.all(jnp.isfinite(out)))

    # validate the fused (bf16-MXU) kernel against a pure-f32 JAX reference of the same forward
    ref = jax.block_until_ready(jax.jit(ref_forward)(x, params))
    np.testing.assert_allclose(np.asarray(out), np.asarray(ref), rtol=6e-2, atol=6e-2)

    print("KERNEL_OK")
</pallas_src>

<mosaic_0001>
module attributes {stable_mosaic.version = 11 : i64} {
  func.func @_psp_fused_kernel(%arg0: memref<16x256xf32, #tpu.memory_space<vmem>>, %arg1: memref<672x16xf32, #tpu.memory_space<vmem>>, %arg2: memref<512x144xbf16, #tpu.memory_space<vmem>>, %arg3: memref<736x256xf32, #tpu.memory_space<vmem>>, %arg4: memref<3x64xf32, #tpu.memory_space<vmem>>) attributes {dimension_semantics = [], scalar_prefetch = 0 : i64, scratch_operands = 0 : i64, tpu.core_type = #tpu.core_type<tc>} {
    %c0 = arith.constant 0 : index
    %c0_0 = arith.constant 0 : index
    %0 = vector.load %arg0[%c0, %c0_0] : memref<16x256xf32, #tpu.memory_space<vmem>>, vector<16x256xf32>
    %cst = arith.constant 0.00392156886 : f32
    %1 = vector.broadcast %cst : f32 to vector<16x256xf32>
    %2 = arith.mulf %0, %1 : vector<16x256xf32>
    %cst_1 = arith.constant 0.000000e+00 : f32
    %cst_2 = arith.constant 1.000000e+00 : f32
    %3 = vector.broadcast %cst_1 : f32 to vector<16x256xf32>
    %4 = arith.maximumf %3, %2 : vector<16x256xf32>
    %5 = vector.broadcast %cst_2 : f32 to vector<16x256xf32>
    %6 = arith.minimumf %5, %4 : vector<16x256xf32>
    %cst_3 = arith.constant 5.000000e-01 : f32
    %7 = vector.broadcast %cst_3 : f32 to vector<16x256xf32>
    %8 = arith.subf %6, %7 : vector<16x256xf32>
    %cst_4 = arith.constant 2.000000e+00 : f32
    %9 = vector.broadcast %cst_4 : f32 to vector<16x256xf32>
    %10 = arith.mulf %8, %9 : vector<16x256xf32>
    %c0_5 = arith.constant 0 : index
    %c0_6 = arith.constant 0 : index
    %11 = vector.load %arg2[%c0_5, %c0_6] : memref<512x144xbf16, #tpu.memory_space<vmem>>, vector<16x144xbf16>
    %c0_7 = arith.constant 0 : index
    %c0_8 = arith.constant 0 : index
    %12 = vector.load %arg1[%c0_7, %c0_8] : memref<672x16xf32, #tpu.memory_space<vmem>>, vector<16x1xf32>
    %c0_9 = arith.constant 0 : index
    %c0_10 = arith.constant 0 : index
    %13 = vector.load %arg3[%c0_9, %c0_10] : memref<736x256xf32, #tpu.memory_space<vmem>>, vector<9x256xf32>
    %c17_i32 = arith.constant 17 : i32
    %14 = tpu.dynamic_rotate %10 by %c17_i32 dim 1 : vector<16x256xf32>, i32 -> vector<16x256xf32>
    %15 = vector.extract_strided_slice %13 {offsets = [0, 0], sizes = [1, 256], strides = [1, 1]} : vector<9x256xf32> to vector<1x256xf32>
    %16 = vector.broadcast %15 : vector<1x256xf32> to vector<16x256xf32>
    %17 = arith.mulf %14, %16 : vector<16x256xf32>
    %c16_i32 = arith.constant 16 : i32
    %18 = tpu.dynamic_rotate %10 by %c16_i32 dim 1 : vector<16x256xf32>, i32 -> vector<16x256xf32>
    %19 = vector.extract_strided_slice %13 {offsets = [1, 0], sizes = [1, 256], strides = [1, 1]} : vector<9x256xf32> to vector<1x256xf32>
    %20 = vector.broadcast %19 : vector<1x256xf32> to vector<16x256xf32>
    %21 = arith.mulf %18, %20 : vector<16x256xf32>
    %c15_i32 = arith.constant 15 : i32
    %22 = tpu.dynamic_rotate %10 by %c15_i32 dim 1 : vector<16x256xf32>, i32 -> vector<16x256xf32>
    %23 = vector.extract_strided_slice %13 {offsets = [2, 0], sizes = [1, 256], strides = [1, 1]} : vector<9x256xf32> to vector<1x256xf32>
    %24 = vector.broadcast %23 : vector<1x256xf32> to vector<16x256xf32>
    %25 = arith.mulf %22, %24 : vector<16x256xf32>
    %c1_i32 = arith.constant 1 : i32
    %26 = tpu.dynamic_rotate %10 by %c1_i32 dim 1 : vector<16x256xf32>, i32 -> vector<16x256xf32>
    %27 = vector.extract_strided_slice %13 {offsets = [3, 0], sizes = [1, 256], strides = [1, 1]} : vector<9x256xf32> to vector<1x256xf32>
    %28 = vector.broadcast %27 : vector<1x256xf32> to vector<16x256xf32>
    %29 = arith.mulf %26, %28 : vector<16x256xf32>
    %c255_i32 = arith.constant 255 : i32
    %30 = tpu.dynamic_rotate %10 by %c255_i32 dim 1 : vector<16x256xf32>, i32 -> vector<16x256xf32>
    %31 = vector.extract_strided_slice %13 {offsets = [5, 0], sizes = [1, 256], strides = [1, 1]} : vector<9x256xf32> to vector<1x256xf32>
    %32 = vector.broadcast %31 : vector<1x256xf32> to vector<16x256xf32>
    %33 = arith.mulf %30, %32 : vector<16x256xf32>
    %c241_i32 = arith.constant 241 : i32
    %34 = tpu.dynamic_rotate %10 by %c241_i32 dim 1 : vector<16x256xf32>, i32 -> vector<16x256xf32>
    %35 = vector.extract_strided_slice %13 {offsets = [6, 0], sizes = [1, 256], strides = [1, 1]} : vector<9x256xf32> to vector<1x256xf32>
    %36 = vector.broadcast %35 : vector<1x256xf32> to vector<16x256xf32>
    %37 = arith.mulf %34, %36 : vector<16x256xf32>
    %c240_i32 = arith.constant 240 : i32
    %38 = tpu.dynamic_rotate %10 by %c240_i32 dim 1 : vector<16x256xf32>, i32 -> vector<16x256xf32>
    %39 = vector.extract_strided_slice %13 {offsets = [7, 0], sizes = [1, 256], strides = [1, 1]} : vector<9x256xf32> to vector<1x256xf32>
    %40 = vector.broadcast %39 : vector<1x256xf32> to vector<16x256xf32>
    %41 = arith.mulf %38, %40 : vector<16x256xf32>
    %c239_i32 = arith.constant 239 : i32
    %42 = tpu.dynamic_rotate %10 by %c239_i32 dim 1 : vector<16x256xf32>, i32 -> vector<16x256xf32>
    %43 = vector.extract_strided_slice %13 {offsets = [8, 0], sizes = [1, 256], strides = [1, 1]} : vector<9x256xf32> to vector<1x256xf32>
    %44 = vector.broadcast %43 : vector<1x256xf32> to vector<16x256xf32>
    %45 = arith.mulf %42, %44 : vector<16x256xf32>
    %46 = tpu.concatenate %17, %21, %25, %29, %10, %33, %37, %41, %45 in 0 : vector<16x256xf32>, vector<16x256xf32>, vector<16x256xf32>, vector<16x256xf32>, vector<16x256xf32>, vector<16x256xf32>, vector<16x256xf32>, vector<16x256xf32>, vector<16x256xf32> -> vector<144x256xf32>
    %47 = arith.truncf %46 : vector<144x256xf32> to vector<144x256xbf16>
    %cst_11 = arith.constant dense<0.000000e+00> : vector<16x256xf32>
    %48 = tpu.matmul %11, %47, %cst_11 {dimension_numbers = #tpu.dot_dimension_numbers<[1], [0], [0], [1], [0, 0, 1, 1], [], []>} : vector<16x144xbf16>, vector<144x256xbf16>, vector<16x256xf32> -> vector<16x256xf32>
    %49 = vector.broadcast %12 : vector<16x1xf32> to vector<16x256xf32>
    %50 = arith.addf %48, %49 : vector<16x256xf32>
    %c16 = arith.constant 16 : index
    %c0_12 = arith.constant 0 : index
    %51 = vector.load %arg1[%c16, %c0_12] : memref<672x16xf32, #tpu.memory_space<vmem>>, vector<16x1xf32>
    %cst_13 = arith.constant 0.000000e+00 : f32
    %52 = vector.broadcast %cst_13 : f32 to vector<16x256xf32>
    %53 = arith.cmpf oge, %50, %52 : vector<16x256xf32>
    %54 = vector.broadcast %51 : vector<16x1xf32> to vector<16x256xf32>
    %55 = arith.mulf %54, %50 : vector<16x256xf32>
    %56 = arith.select %53, %50, %55 : vector<16x256xi1>, vector<16x256xf32>
    %c16_14 = arith.constant 16 : index
    %c0_15 = arith.constant 0 : index
    %57 = vector.load %arg2[%c16_14, %c0_15] : memref<512x144xbf16, #tpu.memory_space<vmem>>, vector<16x144xbf16>
    %c32 = arith.constant 32 : index
    %c0_16 = arith.constant 0 : index
    %58 = vector.load %arg1[%c32, %c0_16] : memref<672x16xf32, #tpu.memory_space<vmem>>, vector<16x1xf32>
    %c0_17 = arith.constant 0 : index
    %c0_18 = arith.constant 0 : index
    %59 = vector.load %arg3[%c0_17, %c0_18] : memref<736x256xf32, #tpu.memory_space<vmem>>, vector<9x256xf32>
    %c17_i32_19 = arith.constant 17 : i32
    %60 = tpu.dynamic_rotate %56 by %c17_i32_19 dim 1 : vector<16x256xf32>, i32 -> vector<16x256xf32>
    %61 = vector.extract_strided_slice %59 {offsets = [0, 0], sizes = [1, 256], strides = [1, 1]} : vector<9x256xf32> to vector<1x256xf32>
    %62 = vector.broadcast %61 : vector<1x256xf32> to vector<16x256xf32>
    %63 = arith.mulf %60, %62 : vector<16x256xf32>
    %c16_i32_20 = arith.constant 16 : i32
    %64 = tpu.dynamic_rotate %56 by %c16_i32_20 dim 1 : vector<16x256xf32>, i32 -> vector<16x256xf32>
    %65 = vector.extract_strided_slice %59 {offsets = [1, 0], sizes = [1, 256], strides = [1, 1]} : vector<9x256xf32> to vector<1x256xf32>
    %66 = vector.broadcast %65 : vector<1x256xf32> to vector<16x256xf32>
    %67 = arith.mulf %64, %66 : vector<16x256xf32>
    %c15_i32_21 = arith.constant 15 : i32
    %68 = tpu.dynamic_rotate %56 by %c15_i32_21 dim 1 : vector<16x256xf32>, i32 -> vector<16x256xf32>
    %69 = vector.extract_strided_slice %59 {offsets = [2, 0], sizes = [1, 256], strides = [1, 1]} : vector<9x256xf32> to vector<1x256xf32>
    %70 = vector.broadcast %69 : vector<1x256xf32> to vector<16x256xf32>
    %71 = arith.mulf %68, %70 : vector<16x256xf32>
    %c1_i32_22 = arith.constant 1 : i32
    %72 = tpu.dynamic_rotate %56 by %c1_i32_22 dim 1 : vector<16x256xf32>, i32 -> vector<16x256xf32>
    %73 = vector.extract_strided_slice %59 {offsets = [3, 0], sizes = [1, 256], strides = [1, 1]} : vector<9x256xf32> to vector<1x256xf32>
    %74 = vector.broadcast %73 : vector<1x256xf32> to vector<16x256xf32>
    %75 = arith.mulf %72, %74 : vector<16x256xf32>
    %c255_i32_23 = arith.constant 255 : i32
    %76 = tpu.dynamic_rotate %56 by %c255_i32_23 dim 1 : vector<16x256xf32>, i32 -> vector<16x256xf32>
    %77 = vector.extract_strided_slice %59 {offsets = [5, 0], sizes = [1, 256], strides = [1, 1]} : vector<9x256xf32> to vector<1x256xf32>
    %78 = vector.broadcast %77 : vector<1x256xf32> to vector<16x256xf32>
    %79 = arith.mulf %76, %78 : vector<16x256xf32>
    %c241_i32_24 = arith.constant 241 : i32
    %80 = tpu.dynamic_rotate %56 by %c241_i32_24 dim 1 : vector<16x256xf32>, i32 -> vector<16x256xf32>
    %81 = vector.extract_strided_slice %59 {offsets = [6, 0], sizes = [1, 256], strides = [1, 1]} : vector<9x256xf32> to vector<1x256xf32>
    %82 = vector.broadcast %81 : vector<1x256xf32> to vector<16x256xf32>
    %83 = arith.mulf %80, %82 : vector<16x256xf32>
    %c240_i32_25 = arith.constant 240 : i32
    %84 = tpu.dynamic_rotate %56 by %c240_i32_25 dim 1 : vector<16x256xf32>, i32 -> vector<16x256xf32>
    %85 = vector.extract_strided_slice %59 {offsets = [7, 0], sizes = [1, 256], strides = [1, 1]} : vector<9x256xf32> to vector<1x256xf32>
    %86 = vector.broadcast %85 : vector<1x256xf32> to vector<16x256xf32>
    %87 = arith.mulf %84, %86 : vector<16x256xf32>
    %c239_i32_26 = arith.constant 239 : i32
    %88 = tpu.dynamic_rotate %56 by %c239_i32_26 dim 1 : vector<16x256xf32>, i32 -> vector<16x256xf32>
    %89 = vector.extract_strided_slice %59 {offsets = [8, 0], sizes = [1, 256], strides = [1, 1]} : vector<9x256xf32> to vector<1x256xf32>
    %90 = vector.broadcast %89 : vector<1x256xf32> to vector<16x256xf32>
    %91 = arith.mulf %88, %90 : vector<16x256xf32>
    %92 = tpu.concatenate %63, %67, %71, %75, %56, %79, %83, %87, %91 in 0 : vector<16x256xf32>, vector<16x256xf32>, vector<16x256xf32>, vector<16x256xf32>, vector<16x256xf32>, vector<16x256xf32>, vector<16x256xf32>, vector<16x256xf32>, vector<16x256xf32> -> vector<144x256xf32>
    %93 = arith.truncf %92 : vector<144x256xf32> to vector<144x256xbf16>
    %cst_27 = arith.constant dense<0.000000e+00> : vector<16x256xf32>
    %94 = tpu.matmul %57, %93, %cst_27 {dimension_numbers = #tpu.dot_dimension_numbers<[1], [0], [0], [1], [0, 0, 1, 1], [], []>} : vector<16x144xbf16>, vector<144x256xbf16>, vector<16x256xf32> -> vector<16x256xf32>
    %95 = vector.broadcast %58 : vector<16x1xf32> to vector<16x256xf32>
    %96 = arith.addf %94, %95 : vector<16x256xf32>
    %c48 = arith.constant 48 : index
    %c0_28 = arith.constant 0 : index
    %97 = vector.load %arg3[%c48, %c0_28] : memref<736x256xf32, #tpu.memory_space<vmem>>, vector<256x64xf32>
    %cst_29 = arith.constant dense<0.000000e+00> : vector<16x64xf32>
    %98 = tpu.matmul %96, %97, %cst_29 {dimension_numbers = #tpu.dot_dimension_numbers<[1], [0], [0], [1], [0, 0, 1, 1], [], []>} : vector<16x256xf32>, vector<256x64xf32>, vector<16x64xf32> -> vector<16x64xf32>
    %c48_30 = arith.constant 48 : index
    %c0_31 = arith.constant 0 : index
    %99 = vector.load %arg1[%c48_30, %c0_31] : memref<672x16xf32, #tpu.memory_space<vmem>>, vector<16x1xf32>
    %cst_32 = arith.constant 0.000000e+00 : f32
    %100 = vector.broadcast %cst_32 : f32 to vector<16x64xf32>
    %101 = arith.cmpf oge, %98, %100 : vector<16x64xf32>
    %102 = vector.broadcast %99 : vector<16x1xf32> to vector<16x64xf32>
    %103 = arith.mulf %102, %98 : vector<16x64xf32>
    %104 = arith.select %101, %98, %103 : vector<16x64xi1>, vector<16x64xf32>
    %c32_33 = arith.constant 32 : index
    %c0_34 = arith.constant 0 : index
    %105 = vector.load %arg2[%c32_33, %c0_34] : memref<512x144xbf16, #tpu.memory_space<vmem>>, vector<16x144xbf16>
    %c64 = arith.constant 64 : index
    %c0_35 = arith.constant 0 : index
    %106 = vector.load %arg1[%c64, %c0_35] : memref<672x16xf32, #tpu.memory_space<vmem>>, vector<16x1xf32>
    %c16_36 = arith.constant 16 : index
    %c0_37 = arith.constant 0 : index
    %107 = vector.load %arg3[%c16_36, %c0_37] : memref<736x256xf32, #tpu.memory_space<vmem>>, vector<9x64xf32>
    %c9_i32 = arith.constant 9 : i32
    %108 = tpu.dynamic_rotate %104 by %c9_i32 dim 1 : vector<16x64xf32>, i32 -> vector<16x64xf32>
    %109 = vector.extract_strided_slice %107 {offsets = [0, 0], sizes = [1, 64], strides = [1, 1]} : vector<9x64xf32> to vector<1x64xf32>
    %110 = vector.broadcast %109 : vector<1x64xf32> to vector<16x64xf32>
    %111 = arith.mulf %108, %110 : vector<16x64xf32>
    %c8_i32 = arith.constant 8 : i32
    %112 = tpu.dynamic_rotate %104 by %c8_i32 dim 1 : vector<16x64xf32>, i32 -> vector<16x64xf32>
    %113 = vector.extract_strided_slice %107 {offsets = [1, 0], sizes = [1, 64], strides = [1, 1]} : vector<9x64xf32> to vector<1x64xf32>
    %114 = vector.broadcast %113 : vector<1x64xf32> to vector<16x64xf32>
    %115 = arith.mulf %112, %114 : vector<16x64xf32>
    %c7_i32 = arith.constant 7 : i32
    %116 = tpu.dynamic_rotate %104 by %c7_i32 dim 1 : vector<16x64xf32>, i32 -> vector<16x64xf32>
    %117 = vector.extract_strided_slice %107 {offsets = [2, 0], sizes = [1, 64], strides = [1, 1]} : vector<9x64xf32> to vector<1x64xf32>
    %118 = vector.broadcast %117 : vector<1x64xf32> to vector<16x64xf32>
    %119 = arith.mulf %116, %118 : vector<16x64xf32>
    %c1_i32_38 = arith.constant 1 : i32
    %120 = tpu.dynamic_rotate %104 by %c1_i32_38 dim 1 : vector<16x64xf32>, i32 -> vector<16x64xf32>
    %121 = vector.extract_strided_slice %107 {offsets = [3, 0], sizes = [1, 64], strides = [1, 1]} : vector<9x64xf32> to vector<1x64xf32>
    %122 = vector.broadcast %121 : vector<1x64xf32> to vector<16x64xf32>
    %123 = arith.mulf %120, %122 : vector<16x64xf32>
    %c63_i32 = arith.constant 63 : i32
    %124 = tpu.dynamic_rotate %104 by %c63_i32 dim 1 : vector<16x64xf32>, i32 -> vector<16x64xf32>
    %125 = vector.extract_strided_slice %107 {offsets = [5, 0], sizes = [1, 64], strides = [1, 1]} : vector<9x64xf32> to vector<1x64xf32>
    %126 = vector.broadcast %125 : vector<1x64xf32> to vector<16x64xf32>
    %127 = arith.mulf %124, %126 : vector<16x64xf32>
    %c57_i32 = arith.constant 57 : i32
    %128 = tpu.dynamic_rotate %104 by %c57_i32 dim 1 : vector<16x64xf32>, i32 -> vector<16x64xf32>
    %129 = vector.extract_strided_slice %107 {offsets = [6, 0], sizes = [1, 64], strides = [1, 1]} : vector<9x64xf32> to vector<1x64xf32>
    %130 = vector.broadcast %129 : vector<1x64xf32> to vector<16x64xf32>
    %131 = arith.mulf %128, %130 : vector<16x64xf32>
    %c56_i32 = arith.constant 56 : i32
    %132 = tpu.dynamic_rotate %104 by %c56_i32 dim 1 : vector<16x64xf32>, i32 -> vector<16x64xf32>
    %133 = vector.extract_strided_slice %107 {offsets = [7, 0], sizes = [1, 64], strides = [1, 1]} : vector<9x64xf32> to vector<1x64xf32>
    %134 = vector.broadcast %133 : vector<1x64xf32> to vector<16x64xf32>
    %135 = arith.mulf %132, %134 : vector<16x64xf32>
    %c55_i32 = arith.constant 55 : i32
    %136 = tpu.dynamic_rotate %104 by %c55_i32 dim 1 : vector<16x64xf32>, i32 -> vector<16x64xf32>
    %137 = vector.extract_strided_slice %107 {offsets = [8, 0], sizes = [1, 64], strides = [1, 1]} : vector<9x64xf32> to vector<1x64xf32>
    %138 = vector.broadcast %137 : vector<1x64xf32> to vector<16x64xf32>
    %139 = arith.mulf %136, %138 : vector<16x64xf32>
    %140 = tpu.concatenate %111, %115, %119, %123, %104, %127, %131, %135, %139 in 0 : vector<16x64xf32>, vector<16x64xf32>, vector<16x64xf32>, vector<16x64xf32>, vector<16x64xf32>, vector<16x64xf32>, vector<16x64xf32>, vector<16x64xf32>, vector<16x64xf32> -> vector<144x64xf32>
    %141 = arith.truncf %140 : vector<144x64xf32> to vector<144x64xbf16>
    %cst_39 = arith.constant dense<0.000000e+00> : vector<16x64xf32>
    %142 = tpu.matmul %105, %141, %cst_39 {dimension_numbers = #tpu.dot_dimension_numbers<[1], [0], [0], [1], [0, 0, 1, 1], [], []>} : vector<16x144xbf16>, vector<144x64xbf16>, vector<16x64xf32> -> vector<16x64xf32>
    %143 = vector.broadcast %106 : vector<16x1xf32> to vector<16x64xf32>
    %144 = arith.addf %142, %143 : vector<16x64xf32>
    %c304 = arith.constant 304 : index
    %c0_40 = arith.constant 0 : index
    %145 = vector.load %arg3[%c304, %c0_40] : memref<736x256xf32, #tpu.memory_space<vmem>>, vector<64x16xf32>
    %cst_41 = arith.constant dense<0.000000e+00> : vector<16x16xf32>
    %146 = tpu.matmul %144, %145, %cst_41 {dimension_numbers = #tpu.dot_dimension_numbers<[1], [0], [0], [1], [0, 0, 1, 1], [], []>} : vector<16x64xf32>, vector<64x16xf32>, vector<16x16xf32> -> vector<16x16xf32>
    %c80 = arith.constant 80 : index
    %c0_42 = arith.constant 0 : index
    %147 = vector.load %arg1[%c80, %c0_42] : memref<672x16xf32, #tpu.memory_space<vmem>>, vector<16x1xf32>
    %cst_43 = arith.constant 0.000000e+00 : f32
    %148 = vector.broadcast %cst_43 : f32 to vector<16x16xf32>
    %149 = arith.cmpf oge, %146, %148 : vector<16x16xf32>
    %150 = vector.broadcast %147 : vector<16x1xf32> to vector<16x16xf32>
    %151 = arith.mulf %150, %146 : vector<16x16xf32>
    %152 = arith.select %149, %146, %151 : vector<16x16xi1>, vector<16x16xf32>
    %c48_44 = arith.constant 48 : index
    %c0_45 = arith.constant 0 : index
    %153 = vector.load %arg2[%c48_44, %c0_45] : memref<512x144xbf16, #tpu.memory_space<vmem>>, vector<16x144xbf16>
    %c96 = arith.constant 96 : index
    %c0_46 = arith.constant 0 : index
    %154 = vector.load %arg1[%c96, %c0_46] : memref<672x16xf32, #tpu.memory_space<vmem>>, vector<16x1xf32>
    %c32_47 = arith.constant 32 : index
    %c0_48 = arith.constant 0 : index
    %155 = vector.load %arg3[%c32_47, %c0_48] : memref<736x256xf32, #tpu.memory_space<vmem>>, vector<9x16xf32>
    %c5_i32 = arith.constant 5 : i32
    %156 = tpu.dynamic_rotate %152 by %c5_i32 dim 1 : vector<16x16xf32>, i32 -> vector<16x16xf32>
    %157 = vector.extract_strided_slice %155 {offsets = [0, 0], sizes = [1, 16], strides = [1, 1]} : vector<9x16xf32> to vector<1x16xf32>
    %158 = vector.broadcast %157 : vector<1x16xf32> to vector<16x16xf32>
    %159 = arith.mulf %156, %158 : vector<16x16xf32>
    %c4_i32 = arith.constant 4 : i32
    %160 = tpu.dynamic_rotate %152 by %c4_i32 dim 1 : vector<16x16xf32>, i32 -> vector<16x16xf32>
    %161 = vector.extract_strided_slice %155 {offsets = [1, 0], sizes = [1, 16], strides = [1, 1]} : vector<9x16xf32> to vector<1x16xf32>
    %162 = vector.broadcast %161 : vector<1x16xf32> to vector<16x16xf32>
    %163 = arith.mulf %160, %162 : vector<16x16xf32>
    %c3_i32 = arith.constant 3 : i32
    %164 = tpu.dynamic_rotate %152 by %c3_i32 dim 1 : vector<16x16xf32>, i32 -> vector<16x16xf32>
    %165 = vector.extract_strided_slice %155 {offsets = [2, 0], sizes = [1, 16], strides = [1, 1]} : vector<9x16xf32> to vector<1x16xf32>
    %166 = vector.broadcast %165 : vector<1x16xf32> to vector<16x16xf32>
    %167 = arith.mulf %164, %166 : vector<16x16xf32>
    %c1_i32_49 = arith.constant 1 : i32
    %168 = tpu.dynamic_rotate %152 by %c1_i32_49 dim 1 : vector<16x16xf32>, i32 -> vector<16x16xf32>
    %169 = vector.extract_strided_slice %155 {offsets = [3, 0], sizes = [1, 16], strides = [1, 1]} : vector<9x16xf32> to vector<1x16xf32>
    %170 = vector.broadcast %169 : vector<1x16xf32> to vector<16x16xf32>
    %171 = arith.mulf %168, %170 : vector<16x16xf32>
    %c15_i32_50 = arith.constant 15 : i32
    %172 = tpu.dynamic_rotate %152 by %c15_i32_50 dim 1 : vector<16x16xf32>, i32 -> vector<16x16xf32>
    %173 = vector.extract_strided_slice %155 {offsets = [5, 0], sizes = [1, 16], strides = [1, 1]} : vector<9x16xf32> to vector<1x16xf32>
    %174 = vector.broadcast %173 : vector<1x16xf32> to vector<16x16xf32>
    %175 = arith.mulf %172, %174 : vector<16x16xf32>
    %c13_i32 = arith.constant 13 : i32
    %176 = tpu.dynamic_rotate %152 by %c13_i32 dim 1 : vector<16x16xf32>, i32 -> vector<16x16xf32>
    %177 = vector.extract_strided_slice %155 {offsets = [6, 0], sizes = [1, 16], strides = [1, 1]} : vector<9x16xf32> to vector<1x16xf32>
    %178 = vector.broadcast %177 : vector<1x16xf32> to vector<16x16xf32>
    %179 = arith.mulf %176, %178 : vector<16x16xf32>
    %c12_i32 = arith.constant 12 : i32
    %180 = tpu.dynamic_rotate %152 by %c12_i32 dim 1 : vector<16x16xf32>, i32 -> vector<16x16xf32>
    %181 = vector.extract_strided_slice %155 {offsets = [7, 0], sizes = [1, 16], strides = [1, 1]} : vector<9x16xf32> to vector<1x16xf32>
    %182 = vector.broadcast %181 : vector<1x16xf32> to vector<16x16xf32>
    %183 = arith.mulf %180, %182 : vector<16x16xf32>
    %c11_i32 = arith.constant 11 : i32
    %184 = tpu.dynamic_rotate %152 by %c11_i32 dim 1 : vector<16x16xf32>, i32 -> vector<16x16xf32>
    %185 = vector.extract_strided_slice %155 {offsets = [8, 0], sizes = [1, 16], strides = [1, 1]} : vector<9x16xf32> to vector<1x16xf32>
    %186 = vector.broadcast %185 : vector<1x16xf32> to vector<16x16xf32>
    %187 = arith.mulf %184, %186 : vector<16x16xf32>
    %188 = tpu.concatenate %159, %163, %167, %171, %152, %175, %179, %183, %187 in 0 : vector<16x16xf32>, vector<16x16xf32>, vector<16x16xf32>, vector<16x16xf32>, vector<16x16xf32>, vector<16x16xf32>, vector<16x16xf32>, vector<16x16xf32>, vector<16x16xf32> -> vector<144x16xf32>
    %189 = arith.truncf %188 : vector<144x16xf32> to vector<144x16xbf16>
    %cst_51 = arith.constant dense<0.000000e+00> : vector<16x16xf32>
    %190 = tpu.matmul %153, %189, %cst_51 {dimension_numbers = #tpu.dot_dimension_numbers<[1], [0], [0], [1], [0, 0, 1, 1], [], []>} : vector<16x144xbf16>, vector<144x16xbf16>, vector<16x16xf32> -> vector<16x16xf32>
    %191 = vector.broadcast %154 : vector<16x1xf32> to vector<16x16xf32>
    %192 = arith.addf %190, %191 : vector<16x16xf32>
    %c368 = arith.constant 368 : index
    %c0_52 = arith.constant 0 : index
    %193 = vector.load %arg3[%c368, %c0_52] : memref<736x256xf32, #tpu.memory_space<vmem>>, vector<16x4xf32>
    %cst_53 = arith.constant dense<0.000000e+00> : vector<16x4xf32>
    %194 = tpu.matmul %192, %193, %cst_53 {dimension_numbers = #tpu.dot_dimension_numbers<[1], [0], [0], [1], [0, 0, 1, 1], [], []>} : vector<16x16xf32>, vector<16x4xf32>, vector<16x4xf32> -> vector<16x4xf32>
    %c112 = arith.constant 112 : index
    %c0_54 = arith.constant 0 : index
    %195 = vector.load %arg1[%c112, %c0_54] : memref<672x16xf32, #tpu.memory_space<vmem>>, vector<16x1xf32>
    %cst_55 = arith.constant 0.000000e+00 : f32
    %196 = vector.broadcast %cst_55 : f32 to vector<16x4xf32>
    %197 = arith.cmpf oge, %194, %196 : vector<16x4xf32>
    %198 = vector.broadcast %195 : vector<16x1xf32> to vector<16x4xf32>
    %199 = arith.mulf %198, %194 : vector<16x4xf32>
    %200 = arith.select %197, %194, %199 : vector<16x4xi1>, vector<16x4xf32>
    %c384 = arith.constant 384 : index
    %c0_56 = arith.constant 0 : index
    %201 = vector.load %arg3[%c384, %c0_56] : memref<736x256xf32, #tpu.memory_space<vmem>>, vector<4x16xf32>
    %cst_57 = arith.constant dense<0.000000e+00> : vector<16x16xf32>
    %202 = tpu.matmul %200, %201, %cst_57 {dimension_numbers = #tpu.dot_dimension_numbers<[1], [0], [0], [1], [0, 0, 1, 1], [], []>} : vector<16x4xf32>, vector<4x16xf32>, vector<16x16xf32> -> vector<16x16xf32>
    %c64_58 = arith.constant 64 : index
    %c0_59 = arith.constant 0 : index
    %203 = vector.load %arg2[%c64_58, %c0_59] : memref<512x144xbf16, #tpu.memory_space<vmem>>, vector<16x16xbf16>
    %204 = arith.truncf %152 : vector<16x16xf32> to vector<16x16xbf16>
    %cst_60 = arith.constant dense<0.000000e+00> : vector<16x16xf32>
    %205 = tpu.matmul %203, %204, %cst_60 {dimension_numbers = #tpu.dot_dimension_numbers<[1], [0], [0], [1], [0, 0, 1, 1], [], []>} : vector<16x16xbf16>, vector<16x16xbf16>, vector<16x16xf32> -> vector<16x16xf32>
    %c128 = arith.constant 128 : index
    %c0_61 = arith.constant 0 : index
    %206 = vector.load %arg1[%c128, %c0_61] : memref<672x16xf32, #tpu.memory_space<vmem>>, vector<16x1xf32>
    %207 = vector.broadcast %206 : vector<16x1xf32> to vector<16x16xf32>
    %208 = arith.addf %205, %207 : vector<16x16xf32>
    %209 = arith.addf %202, %208 : vector<16x16xf32>
    %c400 = arith.constant 400 : index
    %c0_62 = arith.constant 0 : index
    %210 = vector.load %arg3[%c400, %c0_62] : memref<736x256xf32, #tpu.memory_space<vmem>>, vector<16x64xf32>
    %cst_63 = arith.constant dense<0.000000e+00> : vector<16x64xf32>
    %211 = tpu.matmul %209, %210, %cst_63 {dimension_numbers = #tpu.dot_dimension_numbers<[1], [0], [0], [1], [0, 0, 1, 1], [], []>} : vector<16x16xf32>, vector<16x64xf32>, vector<16x64xf32> -> vector<16x64xf32>
    %c80_64 = arith.constant 80 : index
    %c0_65 = arith.constant 0 : index
    %212 = vector.load %arg2[%c80_64, %c0_65] : memref<512x144xbf16, #tpu.memory_space<vmem>>, vector<16x16xbf16>
    %213 = arith.truncf %104 : vector<16x64xf32> to vector<16x64xbf16>
    %cst_66 = arith.constant dense<0.000000e+00> : vector<16x64xf32>
    %214 = tpu.matmul %212, %213, %cst_66 {dimension_numbers = #tpu.dot_dimension_numbers<[1], [0], [0], [1], [0, 0, 1, 1], [], []>} : vector<16x16xbf16>, vector<16x64xbf16>, vector<16x64xf32> -> vector<16x64xf32>
    %c144 = arith.constant 144 : index
    %c0_67 = arith.constant 0 : index
    %215 = vector.load %arg1[%c144, %c0_67] : memref<672x16xf32, #tpu.memory_space<vmem>>, vector<16x1xf32>
    %216 = vector.broadcast %215 : vector<16x1xf32> to vector<16x64xf32>
    %217 = arith.addf %214, %216 : vector<16x64xf32>
    %218 = arith.addf %211, %217 : vector<16x64xf32>
    %cst_68 = arith.constant dense<0.000000e+00> : vector<16xf32>
    %219 = vector.multi_reduction <add>, %200, %cst_68 [1] : vector<16x4xf32> to vector<16xf32>
    %220 = vector.shape_cast %219 : vector<16xf32> to vector<16x1xf32>
    %cst_69 = arith.constant 4.000000e+00 : f32
    %221 = vector.broadcast %cst_69 : f32 to vector<16x1xf32>
    %222 = arith.divf %220, %221 : vector<16x1xf32>
    %cst_70 = arith.constant dense<0.000000e+00> : vector<16xf32>
    %223 = vector.multi_reduction <add>, %209, %cst_70 [1] : vector<16x16xf32> to vector<16xf32>
    %224 = vector.shape_cast %223 : vector<16xf32> to vector<16x1xf32>
    %cst_71 = arith.constant 1.600000e+01 : f32
    %225 = vector.broadcast %cst_71 : f32 to vector<16x1xf32>
    %226 = arith.divf %224, %225 : vector<16x1xf32>
    %cst_72 = arith.constant dense<0.000000e+00> : vector<16xf32>
    %227 = vector.multi_reduction <add>, %218, %cst_72 [1] : vector<16x64xf32> to vector<16xf32>
    %228 = vector.shape_cast %227 : vector<16xf32> to vector<16x1xf32>
    %cst_73 = arith.constant 6.400000e+01 : f32
    %229 = vector.broadcast %cst_73 : f32 to vector<16x1xf32>
    %230 = arith.divf %228, %229 : vector<16x1xf32>
    %231 = tpu.concatenate %222, %226, %230 in 1 : vector<16x1xf32>, vector<16x1xf32>, vector<16x1xf32> -> vector<16x3xf32>
    %c96_74 = arith.constant 96 : index
    %c0_75 = arith.constant 0 : index
    %232 = vector.load %arg2[%c96_74, %c0_75] : memref<512x144xbf16, #tpu.memory_space<vmem>>, vector<192x16xbf16>
    %233 = arith.truncf %231 : vector<16x3xf32> to vector<16x3xbf16>
    %cst_76 = arith.constant dense<0.000000e+00> : vector<192x3xf32>
    %234 = tpu.matmul %232, %233, %cst_76 {dimension_numbers = #tpu.dot_dimension_numbers<[1], [0], [0], [1], [0, 0, 1, 1], [], []>} : vector<192x16xbf16>, vector<16x3xbf16>, vector<192x3xf32> -> vector<192x3xf32>
    %c160 = arith.constant 160 : index
    %c0_77 = arith.constant 0 : index
    %235 = vector.load %arg1[%c160, %c0_77] : memref<672x16xf32, #tpu.memory_space<vmem>>, vector<192x1xf32>
    %236 = vector.broadcast %235 : vector<192x1xf32> to vector<192x3xf32>
    %237 = arith.addf %234, %236 : vector<192x3xf32>
    %238 = vector.extract_strided_slice %237 {offsets = [0, 0], sizes = [32, 1], strides = [1, 1]} : vector<192x3xf32> to vector<32x1xf32>
    %239 = vector.extract_strided_slice %237 {offsets = [32, 0], sizes = [32, 1], strides = [1, 1]} : vector<192x3xf32> to vector<32x1xf32>
    %240 = vector.extract_strided_slice %237 {offsets = [64, 1], sizes = [32, 1], strides = [1, 1]} : vector<192x3xf32> to vector<32x1xf32>
    %241 = vector.extract_strided_slice %237 {offsets = [96, 1], sizes = [32, 1], strides = [1, 1]} : vector<192x3xf32> to vector<32x1xf32>
    %242 = vector.extract_strided_slice %237 {offsets = [128, 2], sizes = [32, 1], strides = [1, 1]} : vector<192x3xf32> to vector<32x1xf32>
    %243 = vector.extract_strided_slice %237 {offsets = [160, 2], sizes = [32, 1], strides = [1, 1]} : vector<192x3xf32> to vector<32x1xf32>
    %244 = tpu.concatenate %238, %239, %240, %241, %242, %243 in 1 : vector<32x1xf32>, vector<32x1xf32>, vector<32x1xf32>, vector<32x1xf32>, vector<32x1xf32>, vector<32x1xf32> -> vector<32x6xf32>
    %c288 = arith.constant 288 : index
    %c0_78 = arith.constant 0 : index
    %245 = vector.load %arg2[%c288, %c0_78] : memref<512x144xbf16, #tpu.memory_space<vmem>>, vector<128x32xbf16>
    %246 = arith.truncf %244 : vector<32x6xf32> to vector<32x6xbf16>
    %cst_79 = arith.constant dense<0.000000e+00> : vector<128x6xf32>
    %247 = tpu.matmul %245, %246, %cst_79 {dimension_numbers = #tpu.dot_dimension_numbers<[1], [0], [0], [1], [0, 0, 1, 1], [], []>} : vector<128x32xbf16>, vector<32x6xbf16>, vector<128x6xf32> -> vector<128x6xf32>
    %c352 = arith.constant 352 : index
    %c0_80 = arith.constant 0 : index
    %248 = vector.load %arg1[%c352, %c0_80] : memref<672x16xf32, #tpu.memory_space<vmem>>, vector<128x1xf32>
    %249 = vector.broadcast %248 : vector<128x1xf32> to vector<128x6xf32>
    %250 = arith.addf %247, %249 : vector<128x6xf32>
    %c560 = arith.constant 560 : index
    %c0_81 = arith.constant 0 : index
    %251 = vector.load %arg1[%c560, %c0_81] : memref<672x16xf32, #tpu.memory_space<vmem>>, vector<80x16xf32>
    %c480 = arith.constant 480 : index
    %c0_82 = arith.constant 0 : index
    %252 = vector.load %arg1[%c480, %c0_82] : memref<672x16xf32, #tpu.memory_space<vmem>>, vector<80x1xf32>
    %c496 = arith.constant 496 : index
    %c0_83 = arith.constant 0 : index
    %253 = vector.load %arg2[%c496, %c0_83] : memref<512x144xbf16, #tpu.memory_space<vmem>>, vector<9x16xbf16>
    %c640 = arith.constant 640 : index
    %c0_84 = arith.constant 0 : index
    %254 = vector.load %arg1[%c640, %c0_84] : memref<672x16xf32, #tpu.memory_space<vmem>>, vector<9x1xf32>
    %c656 = arith.constant 656 : index
    %c0_85 = arith.constant 0 : index
    %255 = vector.load %arg1[%c656, %c0_85] : memref<672x16xf32, #tpu.memory_space<vmem>>, vector<16x16xf32>
    %256 = vector.extract_strided_slice %250 {offsets = [0, 0], sizes = [16, 1], strides = [1, 1]} : vector<128x6xf32> to vector<16x1xf32>
    %257 = vector.broadcast %256 : vector<16x1xf32> to vector<16x16xf32>
    %258 = arith.mulf %255, %257 : vector<16x16xf32>
    %c416 = arith.constant 416 : index
    %c0_86 = arith.constant 0 : index
    %259 = vector.load %arg2[%c416, %c0_86] : memref<512x144xbf16, #tpu.memory_space<vmem>>, vector<16x144xbf16>
    %c32_87 = arith.constant 32 : index
    %c0_88 = arith.constant 0 : index
    %260 = vector.load %arg3[%c32_87, %c0_88] : memref<736x256xf32, #tpu.memory_space<vmem>>, vector<9x16xf32>
    %c5_i32_89 = arith.constant 5 : i32
    %261 = tpu.dynamic_rotate %258 by %c5_i32_89 dim 1 : vector<16x16xf32>, i32 -> vector<16x16xf32>
    %262 = vector.extract_strided_slice %260 {offsets = [0, 0], sizes = [1, 16], strides = [1, 1]} : vector<9x16xf32> to vector<1x16xf32>
    %263 = vector.broadcast %262 : vector<1x16xf32> to vector<16x16xf32>
    %264 = arith.mulf %261, %263 : vector<16x16xf32>
    %c4_i32_90 = arith.constant 4 : i32
    %265 = tpu.dynamic_rotate %258 by %c4_i32_90 dim 1 : vector<16x16xf32>, i32 -> vector<16x16xf32>
    %266 = vector.extract_strided_slice %260 {offsets = [1, 0], sizes = [1, 16], strides = [1, 1]} : vector<9x16xf32> to vector<1x16xf32>
    %267 = vector.broadcast %266 : vector<1x16xf32> to vector<16x16xf32>
    %268 = arith.mulf %265, %267 : vector<16x16xf32>
    %c3_i32_91 = arith.constant 3 : i32
    %269 = tpu.dynamic_rotate %258 by %c3_i32_91 dim 1 : vector<16x16xf32>, i32 -> vector<16x16xf32>
    %270 = vector.extract_strided_slice %260 {offsets = [2, 0], sizes = [1, 16], strides = [1, 1]} : vector<9x16xf32> to vector<1x16xf32>
    %271 = vector.broadcast %270 : vector<1x16xf32> to vector<16x16xf32>
    %272 = arith.mulf %269, %271 : vector<16x16xf32>
    %c1_i32_92 = arith.constant 1 : i32
    %273 = tpu.dynamic_rotate %258 by %c1_i32_92 dim 1 : vector<16x16xf32>, i32 -> vector<16x16xf32>
    %274 = vector.extract_strided_slice %260 {offsets = [3, 0], sizes = [1, 16], strides = [1, 1]} : vector<9x16xf32> to vector<1x16xf32>
    %275 = vector.broadcast %274 : vector<1x16xf32> to vector<16x16xf32>
    %276 = arith.mulf %273, %275 : vector<16x16xf32>
    %c15_i32_93 = arith.constant 15 : i32
    %277 = tpu.dynamic_rotate %258 by %c15_i32_93 dim 1 : vector<16x16xf32>, i32 -> vector<16x16xf32>
    %278 = vector.extract_strided_slice %260 {offsets = [5, 0], sizes = [1, 16], strides = [1, 1]} : vector<9x16xf32> to vector<1x16xf32>
    %279 = vector.broadcast %278 : vector<1x16xf32> to vector<16x16xf32>
    %280 = arith.mulf %277, %279 : vector<16x16xf32>
    %c13_i32_94 = arith.constant 13 : i32
    %281 = tpu.dynamic_rotate %258 by %c13_i32_94 dim 1 : vector<16x16xf32>, i32 -> vector<16x16xf32>
    %282 = vector.extract_strided_slice %260 {offsets = [6, 0], sizes = [1, 16], strides = [1, 1]} : vector<9x16xf32> to vector<1x16xf32>
    %283 = vector.broadcast %282 : vector<1x16xf32> to vector<16x16xf32>
    %284 = arith.mulf %281, %283 : vector<16x16xf32>
    %c12_i32_95 = arith.constant 12 : i32
    %285 = tpu.dynamic_rotate %258 by %c12_i32_95 dim 1 : vector<16x16xf32>, i32 -> vector<16x16xf32>
    %286 = vector.extract_strided_slice %260 {offsets = [7, 0], sizes = [1, 16], strides = [1, 1]} : vector<9x16xf32> to vector<1x16xf32>
    %287 = vector.broadcast %286 : vector<1x16xf32> to vector<16x16xf32>
    %288 = arith.mulf %285, %287 : vector<16x16xf32>
    %c11_i32_96 = arith.constant 11 : i32
    %289 = tpu.dynamic_rotate %258 by %c11_i32_96 dim 1 : vector<16x16xf32>, i32 -> vector<16x16xf32>
    %290 = vector.extract_strided_slice %260 {offsets = [8, 0], sizes = [1, 16], strides = [1, 1]} : vector<9x16xf32> to vector<1x16xf32>
    %291 = vector.broadcast %290 : vector<1x16xf32> to vector<16x16xf32>
    %292 = arith.mulf %289, %291 : vector<16x16xf32>
    %293 = tpu.concatenate %264, %268, %272, %276, %258, %280, %284, %288, %292 in 0 : vector<16x16xf32>, vector<16x16xf32>, vector<16x16xf32>, vector<16x16xf32>, vector<16x16xf32>, vector<16x16xf32>, vector<16x16xf32>, vector<16x16xf32>, vector<16x16xf32> -> vector<144x16xf32>
    %294 = arith.truncf %293 : vector<144x16xf32> to vector<144x16xbf16>
    %cst_97 = arith.constant dense<0.000000e+00> : vector<16x16xf32>
    %295 = tpu.matmul %259, %294, %cst_97 {dimension_numbers = #tpu.dot_dimension_numbers<[1], [0], [0], [1], [0, 0, 1, 1], [], []>} : vector<16x144xbf16>, vector<144x16xbf16>, vector<16x16xf32> -> vector<16x16xf32>
    %296 = vector.extract_strided_slice %251 {offsets = [0, 0], sizes = [16, 16], strides = [1, 1]} : vector<80x16xf32> to vector<16x16xf32>
    %297 = arith.mulf %256, %256 : vector<16x1xf32>
    %cst_98 = arith.constant dense<0.000000e+00> : vector<16x1xf32>
    %298 = tpu.matmul %296, %297, %cst_98 {dimension_numbers = #tpu.dot_dimension_numbers<[1], [0], [0], [1], [0, 0, 1, 1], [], []>} : vector<16x16xf32>, vector<16x1xf32>, vector<16x1xf32> -> vector<16x1xf32>
    %cst_99 = arith.constant 9.99999993E-9 : f32
    %299 = vector.broadcast %cst_99 : f32 to vector<16x1xf32>
    %300 = arith.addf %298, %299 : vector<16x1xf32>
    %301 = math.rsqrt %300 : vector<16x1xf32>
    %302 = vector.broadcast %301 : vector<16x1xf32> to vector<16x16xf32>
    %303 = arith.mulf %295, %302 : vector<16x16xf32>
    %304 = vector.extract_strided_slice %252 {offsets = [0, 0], sizes = [16, 1], strides = [1, 1]} : vector<80x1xf32> to vector<16x1xf32>
    %305 = vector.broadcast %304 : vector<16x1xf32> to vector<16x16xf32>
    %306 = arith.addf %303, %305 : vector<16x16xf32>
    %cst_100 = arith.constant 0.000000e+00 : f32
    %307 = vector.broadcast %cst_100 : f32 to vector<16x16xf32>
    %308 = arith.cmpf oge, %306, %307 : vector<16x16xf32>
    %cst_101 = arith.constant 2.000000e-01 : f32
    %309 = vector.broadcast %cst_101 : f32 to vector<16x16xf32>
    %310 = arith.mulf %309, %306 : vector<16x16xf32>
    %311 = arith.select %308, %306, %310 : vector<16x16xi1>, vector<16x16xf32>
    %cst_102 = arith.constant 1.41421354 : f32
    %312 = vector.broadcast %cst_102 : f32 to vector<16x16xf32>
    %313 = arith.mulf %311, %312 : vector<16x16xf32>
    %314 = vector.extract_strided_slice %250 {offsets = [80, 1], sizes = [16, 1], strides = [1, 1]} : vector<128x6xf32> to vector<16x1xf32>
    %315 = vector.extract_strided_slice %253 {offsets = [0, 0], sizes = [3, 16], strides = [1, 1]} : vector<9x16xbf16> to vector<3x16xbf16>
    %316 = vector.broadcast %314 : vector<16x1xf32> to vector<16x16xf32>
    %317 = arith.mulf %313, %316 : vector<16x16xf32>
    %318 = arith.truncf %317 : vector<16x16xf32> to vector<16x16xbf16>
    %cst_103 = arith.constant dense<0.000000e+00> : vector<3x16xf32>
    %319 = tpu.matmul %315, %318, %cst_103 {dimension_numbers = #tpu.dot_dimension_numbers<[1], [0], [0], [1], [0, 0, 1, 1], [], []>} : vector<3x16xbf16>, vector<16x16xbf16>, vector<3x16xf32> -> vector<3x16xf32>
    %320 = vector.extract_strided_slice %254 {offsets = [0, 0], sizes = [3, 1], strides = [1, 1]} : vector<9x1xf32> to vector<3x1xf32>
    %321 = vector.broadcast %320 : vector<3x1xf32> to vector<3x16xf32>
    %322 = arith.addf %319, %321 : vector<3x16xf32>
    %c400_104 = arith.constant 400 : index
    %c0_105 = arith.constant 0 : index
    %323 = vector.load %arg3[%c400_104, %c0_105] : memref<736x256xf32, #tpu.memory_space<vmem>>, vector<16x64xf32>
    %cst_106 = arith.constant dense<0.000000e+00> : vector<16x64xf32>
    %324 = tpu.matmul %313, %323, %cst_106 {dimension_numbers = #tpu.dot_dimension_numbers<[1], [0], [0], [1], [0, 0, 1, 1], [], []>} : vector<16x16xf32>, vector<16x64xf32>, vector<16x64xf32> -> vector<16x64xf32>
    %325 = vector.extract_strided_slice %250 {offsets = [16, 1], sizes = [16, 1], strides = [1, 1]} : vector<128x6xf32> to vector<16x1xf32>
    %326 = vector.broadcast %325 : vector<16x1xf32> to vector<16x64xf32>
    %327 = arith.mulf %324, %326 : vector<16x64xf32>
    %c432 = arith.constant 432 : index
    %c0_107 = arith.constant 0 : index
    %328 = vector.load %arg2[%c432, %c0_107] : memref<512x144xbf16, #tpu.memory_space<vmem>>, vector<16x144xbf16>
    %c16_108 = arith.constant 16 : index
    %c0_109 = arith.constant 0 : index
    %329 = vector.load %arg3[%c16_108, %c0_109] : memref<736x256xf32, #tpu.memory_space<vmem>>, vector<9x64xf32>
    %c9_i32_110 = arith.constant 9 : i32
    %330 = tpu.dynamic_rotate %327 by %c9_i32_110 dim 1 : vector<16x64xf32>, i32 -> vector<16x64xf32>
    %331 = vector.extract_strided_slice %329 {offsets = [0, 0], sizes = [1, 64], strides = [1, 1]} : vector<9x64xf32> to vector<1x64xf32>
    %332 = vector.broadcast %331 : vector<1x64xf32> to vector<16x64xf32>
    %333 = arith.mulf %330, %332 : vector<16x64xf32>
    %c8_i32_111 = arith.constant 8 : i32
    %334 = tpu.dynamic_rotate %327 by %c8_i32_111 dim 1 : vector<16x64xf32>, i32 -> vector<16x64xf32>
    %335 = vector.extract_strided_slice %329 {offsets = [1, 0], sizes = [1, 64], strides = [1, 1]} : vector<9x64xf32> to vector<1x64xf32>
    %336 = vector.broadcast %335 : vector<1x64xf32> to vector<16x64xf32>
    %337 = arith.mulf %334, %336 : vector<16x64xf32>
    %c7_i32_112 = arith.constant 7 : i32
    %338 = tpu.dynamic_rotate %327 by %c7_i32_112 dim 1 : vector<16x64xf32>, i32 -> vector<16x64xf32>
    %339 = vector.extract_strided_slice %329 {offsets = [2, 0], sizes = [1, 64], strides = [1, 1]} : vector<9x64xf32> to vector<1x64xf32>
    %340 = vector.broadcast %339 : vector<1x64xf32> to vector<16x64xf32>
    %341 = arith.mulf %338, %340 : vector<16x64xf32>
    %c1_i32_113 = arith.constant 1 : i32
    %342 = tpu.dynamic_rotate %327 by %c1_i32_113 dim 1 : vector<16x64xf32>, i32 -> vector<16x64xf32>
    %343 = vector.extract_strided_slice %329 {offsets = [3, 0], sizes = [1, 64], strides = [1, 1]} : vector<9x64xf32> to vector<1x64xf32>
    %344 = vector.broadcast %343 : vector<1x64xf32> to vector<16x64xf32>
    %345 = arith.mulf %342, %344 : vector<16x64xf32>
    %c63_i32_114 = arith.constant 63 : i32
    %346 = tpu.dynamic_rotate %327 by %c63_i32_114 dim 1 : vector<16x64xf32>, i32 -> vector<16x64xf32>
    %347 = vector.extract_strided_slice %329 {offsets = [5, 0], sizes = [1, 64], strides = [1, 1]} : vector<9x64xf32> to vector<1x64xf32>
    %348 = vector.broadcast %347 : vector<1x64xf32> to vector<16x64xf32>
    %349 = arith.mulf %346, %348 : vector<16x64xf32>
    %c57_i32_115 = arith.constant 57 : i32
    %350 = tpu.dynamic_rotate %327 by %c57_i32_115 dim 1 : vector<16x64xf32>, i32 -> vector<16x64xf32>
    %351 = vector.extract_strided_slice %329 {offsets = [6, 0], sizes = [1, 64], strides = [1, 1]} : vector<9x64xf32> to vector<1x64xf32>
    %352 = vector.broadcast %351 : vector<1x64xf32> to vector<16x64xf32>
    %353 = arith.mulf %350, %352 : vector<16x64xf32>
    %c56_i32_116 = arith.constant 56 : i32
    %354 = tpu.dynamic_rotate %327 by %c56_i32_116 dim 1 : vector<16x64xf32>, i32 -> vector<16x64xf32>
    %355 = vector.extract_strided_slice %329 {offsets = [7, 0], sizes = [1, 64], strides = [1, 1]} : vector<9x64xf32> to vector<1x64xf32>
    %356 = vector.broadcast %355 : vector<1x64xf32> to vector<16x64xf32>
    %357 = arith.mulf %354, %356 : vector<16x64xf32>
    %c55_i32_117 = arith.constant 55 : i32
    %358 = tpu.dynamic_rotate %327 by %c55_i32_117 dim 1 : vector<16x64xf32>, i32 -> vector<16x64xf32>
    %359 = vector.extract_strided_slice %329 {offsets = [8, 0], sizes = [1, 64], strides = [1, 1]} : vector<9x64xf32> to vector<1x64xf32>
    %360 = vector.broadcast %359 : vector<1x64xf32> to vector<16x64xf32>
    %361 = arith.mulf %358, %360 : vector<16x64xf32>
    %362 = tpu.concatenate %333, %337, %341, %345, %327, %349, %353, %357, %361 in 0 : vector<16x64xf32>, vector<16x64xf32>, vector<16x64xf32>, vector<16x64xf32>, vector<16x64xf32>, vector<16x64xf32>, vector<16x64xf32>, vector<16x64xf32>, vector<16x64xf32> -> vector<144x64xf32>
    %363 = arith.truncf %362 : vector<144x64xf32> to vector<144x64xbf16>
    %cst_118 = arith.constant dense<0.000000e+00> : vector<16x64xf32>
    %364 = tpu.matmul %328, %363, %cst_118 {dimension_numbers = #tpu.dot_dimension_numbers<[1], [0], [0], [1], [0, 0, 1, 1], [], []>} : vector<16x144xbf16>, vector<144x64xbf16>, vector<16x64xf32> -> vector<16x64xf32>
    %365 = vector.extract_strided_slice %251 {offsets = [16, 0], sizes = [16, 16], strides = [1, 1]} : vector<80x16xf32> to vector<16x16xf32>
    %366 = arith.mulf %325, %325 : vector<16x1xf32>
    %cst_119 = arith.constant dense<0.000000e+00> : vector<16x1xf32>
    %367 = tpu.matmul %365, %366, %cst_119 {dimension_numbers = #tpu.dot_dimension_numbers<[1], [0], [0], [1], [0, 0, 1, 1], [], []>} : vector<16x16xf32>, vector<16x1xf32>, vector<16x1xf32> -> vector<16x1xf32>
    %cst_120 = arith.constant 9.99999993E-9 : f32
    %368 = vector.broadcast %cst_120 : f32 to vector<16x1xf32>
    %369 = arith.addf %367, %368 : vector<16x1xf32>
    %370 = math.rsqrt %369 : vector<16x1xf32>
    %371 = vector.broadcast %370 : vector<16x1xf32> to vector<16x64xf32>
    %372 = arith.mulf %364, %371 : vector<16x64xf32>
    %373 = vector.extract_strided_slice %252 {offsets = [16, 0], sizes = [16, 1], strides = [1, 1]} : vector<80x1xf32> to vector<16x1xf32>
    %374 = vector.broadcast %373 : vector<16x1xf32> to vector<16x64xf32>
    %375 = arith.addf %372, %374 : vector<16x64xf32>
    %cst_121 = arith.constant 0.000000e+00 : f32
    %376 = vector.broadcast %cst_121 : f32 to vector<16x64xf32>
    %377 = arith.cmpf oge, %375, %376 : vector<16x64xf32>
    %cst_122 = arith.constant 2.000000e-01 : f32
    %378 = vector.broadcast %cst_122 : f32 to vector<16x64xf32>
    %379 = arith.mulf %378, %375 : vector<16x64xf32>
    %380 = arith.select %377, %375, %379 : vector<16x64xi1>, vector<16x64xf32>
    %cst_123 = arith.constant 1.41421354 : f32
    %381 = vector.broadcast %cst_123 : f32 to vector<16x64xf32>
    %382 = arith.mulf %380, %381 : vector<16x64xf32>
    %383 = vector.extract_strided_slice %250 {offsets = [32, 2], sizes = [16, 1], strides = [1, 1]} : vector<128x6xf32> to vector<16x1xf32>
    %384 = vector.broadcast %383 : vector<16x1xf32> to vector<16x64xf32>
    %385 = arith.mulf %382, %384 : vector<16x64xf32>
    %c448 = arith.constant 448 : index
    %c0_124 = arith.constant 0 : index
    %386 = vector.load %arg2[%c448, %c0_124] : memref<512x144xbf16, #tpu.memory_space<vmem>>, vector<16x144xbf16>
    %c16_125 = arith.constant 16 : index
    %c0_126 = arith.constant 0 : index
    %387 = vector.load %arg3[%c16_125, %c0_126] : memref<736x256xf32, #tpu.memory_space<vmem>>, vector<9x64xf32>
    %c9_i32_127 = arith.constant 9 : i32
    %388 = tpu.dynamic_rotate %385 by %c9_i32_127 dim 1 : vector<16x64xf32>, i32 -> vector<16x64xf32>
    %389 = vector.extract_strided_slice %387 {offsets = [0, 0], sizes = [1, 64], strides = [1, 1]} : vector<9x64xf32> to vector<1x64xf32>
    %390 = vector.broadcast %389 : vector<1x64xf32> to vector<16x64xf32>
    %391 = arith.mulf %388, %390 : vector<16x64xf32>
    %c8_i32_128 = arith.constant 8 : i32
    %392 = tpu.dynamic_rotate %385 by %c8_i32_128 dim 1 : vector<16x64xf32>, i32 -> vector<16x64xf32>
    %393 = vector.extract_strided_slice %387 {offsets = [1, 0], sizes = [1, 64], strides = [1, 1]} : vector<9x64xf32> to vector<1x64xf32>
    %394 = vector.broadcast %393 : vector<1x64xf32> to vector<16x64xf32>
    %395 = arith.mulf %392, %394 : vector<16x64xf32>
    %c7_i32_129 = arith.constant 7 : i32
    %396 = tpu.dynamic_rotate %385 by %c7_i32_129 dim 1 : vector<16x64xf32>, i32 -> vector<16x64xf32>
    %397 = vector.extract_strided_slice %387 {offsets = [2, 0], sizes = [1, 64], strides = [1, 1]} : vector<9x64xf32> to vector<1x64xf32>
    %398 = vector.broadcast %397 : vector<1x64xf32> to vector<16x64xf32>
    %399 = arith.mulf %396, %398 : vector<16x64xf32>
    %c1_i32_130 = arith.constant 1 : i32
    %400 = tpu.dynamic_rotate %385 by %c1_i32_130 dim 1 : vector<16x64xf32>, i32 -> vector<16x64xf32>
    %401 = vector.extract_strided_slice %387 {offsets = [3, 0], sizes = [1, 64], strides = [1, 1]} : vector<9x64xf32> to vector<1x64xf32>
    %402 = vector.broadcast %401 : vector<1x64xf32> to vector<16x64xf32>
    %403 = arith.mulf %400, %402 : vector<16x64xf32>
    %c63_i32_131 = arith.constant 63 : i32
    %404 = tpu.dynamic_rotate %385 by %c63_i32_131 dim 1 : vector<16x64xf32>, i32 -> vector<16x64xf32>
    %405 = vector.extract_strided_slice %387 {offsets = [5, 0], sizes = [1, 64], strides = [1, 1]} : vector<9x64xf32> to vector<1x64xf32>
    %406 = vector.broadcast %405 : vector<1x64xf32> to vector<16x64xf32>
    %407 = arith.mulf %404, %406 : vector<16x64xf32>
    %c57_i32_132 = arith.constant 57 : i32
    %408 = tpu.dynamic_rotate %385 by %c57_i32_132 dim 1 : vector<16x64xf32>, i32 -> vector<16x64xf32>
    %409 = vector.extract_strided_slice %387 {offsets = [6, 0], sizes = [1, 64], strides = [1, 1]} : vector<9x64xf32> to vector<1x64xf32>
    %410 = vector.broadcast %409 : vector<1x64xf32> to vector<16x64xf32>
    %411 = arith.mulf %408, %410 : vector<16x64xf32>
    %c56_i32_133 = arith.constant 56 : i32
    %412 = tpu.dynamic_rotate %385 by %c56_i32_133 dim 1 : vector<16x64xf32>, i32 -> vector<16x64xf32>
    %413 = vector.extract_strided_slice %387 {offsets = [7, 0], sizes = [1, 64], strides = [1, 1]} : vector<9x64xf32> to vector<1x64xf32>
    %414 = vector.broadcast %413 : vector<1x64xf32> to vector<16x64xf32>
    %415 = arith.mulf %412, %414 : vector<16x64xf32>
    %c55_i32_134 = arith.constant 55 : i32
    %416 = tpu.dynamic_rotate %385 by %c55_i32_134 dim 1 : vector<16x64xf32>, i32 -> vector<16x64xf32>
    %417 = vector.extract_strided_slice %387 {offsets = [8, 0], sizes = [1, 64], strides = [1, 1]} : vector<9x64xf32> to vector<1x64xf32>
    %418 = vector.broadcast %417 : vector<1x64xf32> to vector<16x64xf32>
    %419 = arith.mulf %416, %418 : vector<16x64xf32>
    %420 = tpu.concatenate %391, %395, %399, %403, %385, %407, %411, %415, %419 in 0 : vector<16x64xf32>, vector<16x64xf32>, vector<16x64xf32>, vector<16x64xf32>, vector<16x64xf32>, vector<16x64xf32>, vector<16x64xf32>, vector<16x64xf32>, vector<16x64xf32> -> vector<144x64xf32>
    %421 = arith.truncf %420 : vector<144x64xf32> to vector<144x64xbf16>
    %cst_135 = arith.constant dense<0.000000e+00> : vector<16x64xf32>
    %422 = tpu.matmul %386, %421, %cst_135 {dimension_numbers = #tpu.dot_dimension_numbers<[1], [0], [0], [1], [0, 0, 1, 1], [], []>} : vector<16x144xbf16>, vector<144x64xbf16>, vector<16x64xf32> -> vector<16x64xf32>
    %423 = vector.extract_strided_slice %251 {offsets = [32, 0], sizes = [16, 16], strides = [1, 1]} : vector<80x16xf32> to vector<16x16xf32>
    %424 = arith.mulf %383, %383 : vector<16x1xf32>
    %cst_136 = arith.constant dense<0.000000e+00> : vector<16x1xf32>
    %425 = tpu.matmul %423, %424, %cst_136 {dimension_numbers = #tpu.dot_dimension_numbers<[1], [0], [0], [1], [0, 0, 1, 1], [], []>} : vector<16x16xf32>, vector<16x1xf32>, vector<16x1xf32> -> vector<16x1xf32>
    %cst_137 = arith.constant 9.99999993E-9 : f32
    %426 = vector.broadcast %cst_137 : f32 to vector<16x1xf32>
    %427 = arith.addf %425, %426 : vector<16x1xf32>
    %428 = math.rsqrt %427 : vector<16x1xf32>
    %429 = vector.broadcast %428 : vector<16x1xf32> to vector<16x64xf32>
    %430 = arith.mulf %422, %429 : vector<16x64xf32>
    %431 = vector.extract_strided_slice %252 {offsets = [32, 0], sizes = [16, 1], strides = [1, 1]} : vector<80x1xf32> to vector<16x1xf32>
    %432 = vector.broadcast %431 : vector<16x1xf32> to vector<16x64xf32>
    %433 = arith.addf %430, %432 : vector<16x64xf32>
    %cst_138 = arith.constant 0.000000e+00 : f32
    %434 = vector.broadcast %cst_138 : f32 to vector<16x64xf32>
    %435 = arith.cmpf oge, %433, %434 : vector<16x64xf32>
    %cst_139 = arith.constant 2.000000e-01 : f32
    %436 = vector.broadcast %cst_139 : f32 to vector<16x64xf32>
    %437 = arith.mulf %436, %433 : vector<16x64xf32>
    %438 = arith.select %435, %433, %437 : vector<16x64xi1>, vector<16x64xf32>
    %cst_140 = arith.constant 1.41421354 : f32
    %439 = vector.broadcast %cst_140 : f32 to vector<16x64xf32>
    %440 = arith.mulf %438, %439 : vector<16x64xf32>
    %441 = vector.extract_strided_slice %250 {offsets = [96, 3], sizes = [16, 1], strides = [1, 1]} : vector<128x6xf32> to vector<16x1xf32>
    %442 = vector.extract_strided_slice %253 {offsets = [3, 0], sizes = [3, 16], strides = [1, 1]} : vector<9x16xbf16> to vector<3x16xbf16>
    %443 = vector.broadcast %441 : vector<16x1xf32> to vector<16x64xf32>
    %444 = arith.mulf %440, %443 : vector<16x64xf32>
    %445 = arith.truncf %444 : vector<16x64xf32> to vector<16x64xbf16>
    %cst_141 = arith.constant dense<0.000000e+00> : vector<3x64xf32>
    %446 = tpu.matmul %442, %445, %cst_141 {dimension_numbers = #tpu.dot_dimension_numbers<[1], [0], [0], [1], [0, 0, 1, 1], [], []>} : vector<3x16xbf16>, vector<16x64xbf16>, vector<3x64xf32> -> vector<3x64xf32>
    %447 = vector.extract_strided_slice %254 {offsets = [3, 0], sizes = [3, 1], strides = [1, 1]} : vector<9x1xf32> to vector<3x1xf32>
    %448 = vector.broadcast %447 : vector<3x1xf32> to vector<3x64xf32>
    %449 = arith.addf %446, %448 : vector<3x64xf32>
    %c400_142 = arith.constant 400 : index
    %c0_143 = arith.constant 0 : index
    %450 = vector.load %arg3[%c400_142, %c0_143] : memref<736x256xf32, #tpu.memory_space<vmem>>, vector<16x64xf32>
    %cst_144 = arith.constant dense<0.000000e+00> : vector<3x64xf32>
    %451 = tpu.matmul %322, %450, %cst_144 {dimension_numbers = #tpu.dot_dimension_numbers<[1], [0], [0], [1], [0, 0, 1, 1], [], []>} : vector<3x16xf32>, vector<16x64xf32>, vector<3x64xf32> -> vector<3x64xf32>
    %452 = arith.addf %449, %451 : vector<3x64xf32>
    %c416_145 = arith.constant 416 : index
    %c0_146 = arith.constant 0 : index
    %453 = vector.load %arg3[%c416_145, %c0_146] : memref<736x256xf32, #tpu.memory_space<vmem>>, vector<64x256xf32>
    %cst_147 = arith.constant dense<0.000000e+00> : vector<16x256xf32>
    %454 = tpu.matmul %440, %453, %cst_147 {dimension_numbers = #tpu.dot_dimension_numbers<[1], [0], [0], [1], [0, 0, 1, 1], [], []>} : vector<16x64xf32>, vector<64x256xf32>, vector<16x256xf32> -> vector<16x256xf32>
    %455 = vector.extract_strided_slice %250 {offsets = [48, 3], sizes = [16, 1], strides = [1, 1]} : vector<128x6xf32> to vector<16x1xf32>
    %456 = vector.broadcast %455 : vector<16x1xf32> to vector<16x256xf32>
    %457 = arith.mulf %454, %456 : vector<16x256xf32>
    %c464 = arith.constant 464 : index
    %c0_148 = arith.constant 0 : index
    %458 = vector.load %arg2[%c464, %c0_148] : memref<512x144xbf16, #tpu.memory_space<vmem>>, vector<16x144xbf16>
    %c0_149 = arith.constant 0 : index
    %c0_150 = arith.constant 0 : index
    %459 = vector.load %arg3[%c0_149, %c0_150] : memref<736x256xf32, #tpu.memory_space<vmem>>, vector<9x256xf32>
    %c17_i32_151 = arith.constant 17 : i32
    %460 = tpu.dynamic_rotate %457 by %c17_i32_151 dim 1 : vector<16x256xf32>, i32 -> vector<16x256xf32>
    %461 = vector.extract_strided_slice %459 {offsets = [0, 0], sizes = [1, 256], strides = [1, 1]} : vector<9x256xf32> to vector<1x256xf32>
    %462 = vector.broadcast %461 : vector<1x256xf32> to vector<16x256xf32>
    %463 = arith.mulf %460, %462 : vector<16x256xf32>
    %c16_i32_152 = arith.constant 16 : i32
    %464 = tpu.dynamic_rotate %457 by %c16_i32_152 dim 1 : vector<16x256xf32>, i32 -> vector<16x256xf32>
    %465 = vector.extract_strided_slice %459 {offsets = [1, 0], sizes = [1, 256], strides = [1, 1]} : vector<9x256xf32> to vector<1x256xf32>
    %466 = vector.broadcast %465 : vector<1x256xf32> to vector<16x256xf32>
    %467 = arith.mulf %464, %466 : vector<16x256xf32>
    %c15_i32_153 = arith.constant 15 : i32
    %468 = tpu.dynamic_rotate %457 by %c15_i32_153 dim 1 : vector<16x256xf32>, i32 -> vector<16x256xf32>
    %469 = vector.extract_strided_slice %459 {offsets = [2, 0], sizes = [1, 256], strides = [1, 1]} : vector<9x256xf32> to vector<1x256xf32>
    %470 = vector.broadcast %469 : vector<1x256xf32> to vector<16x256xf32>
    %471 = arith.mulf %468, %470 : vector<16x256xf32>
    %c1_i32_154 = arith.constant 1 : i32
    %472 = tpu.dynamic_rotate %457 by %c1_i32_154 dim 1 : vector<16x256xf32>, i32 -> vector<16x256xf32>
    %473 = vector.extract_strided_slice %459 {offsets = [3, 0], sizes = [1, 256], strides = [1, 1]} : vector<9x256xf32> to vector<1x256xf32>
    %474 = vector.broadcast %473 : vector<1x256xf32> to vector<16x256xf32>
    %475 = arith.mulf %472, %474 : vector<16x256xf32>
    %c255_i32_155 = arith.constant 255 : i32
    %476 = tpu.dynamic_rotate %457 by %c255_i32_155 dim 1 : vector<16x256xf32>, i32 -> vector<16x256xf32>
    %477 = vector.extract_strided_slice %459 {offsets = [5, 0], sizes = [1, 256], strides = [1, 1]} : vector<9x256xf32> to vector<1x256xf32>
    %478 = vector.broadcast %477 : vector<1x256xf32> to vector<16x256xf32>
    %479 = arith.mulf %476, %478 : vector<16x256xf32>
    %c241_i32_156 = arith.constant 241 : i32
    %480 = tpu.dynamic_rotate %457 by %c241_i32_156 dim 1 : vector<16x256xf32>, i32 -> vector<16x256xf32>
    %481 = vector.extract_strided_slice %459 {offsets = [6, 0], sizes = [1, 256], strides = [1, 1]} : vector<9x256xf32> to vector<1x256xf32>
    %482 = vector.broadcast %481 : vector<1x256xf32> to vector<16x256xf32>
    %483 = arith.mulf %480, %482 : vector<16x256xf32>
    %c240_i32_157 = arith.constant 240 : i32
    %484 = tpu.dynamic_rotate %457 by %c240_i32_157 dim 1 : vector<16x256xf32>, i32 -> vector<16x256xf32>
    %485 = vector.extract_strided_slice %459 {offsets = [7, 0], sizes = [1, 256], strides = [1, 1]} : vector<9x256xf32> to vector<1x256xf32>
    %486 = vector.broadcast %485 : vector<1x256xf32> to vector<16x256xf32>
    %487 = arith.mulf %484, %486 : vector<16x256xf32>
    %c239_i32_158 = arith.constant 239 : i32
    %488 = tpu.dynamic_rotate %457 by %c239_i32_158 dim 1 : vector<16x256xf32>, i32 -> vector<16x256xf32>
    %489 = vector.extract_strided_slice %459 {offsets = [8, 0], sizes = [1, 256], strides = [1, 1]} : vector<9x256xf32> to vector<1x256xf32>
    %490 = vector.broadcast %489 : vector<1x256xf32> to vector<16x256xf32>
    %491 = arith.mulf %488, %490 : vector<16x256xf32>
    %492 = tpu.concatenate %463, %467, %471, %475, %457, %479, %483, %487, %491 in 0 : vector<16x256xf32>, vector<16x256xf32>, vector<16x256xf32>, vector<16x256xf32>, vector<16x256xf32>, vector<16x256xf32>, vector<16x256xf32>, vector<16x256xf32>, vector<16x256xf32> -> vector<144x256xf32>
    %493 = arith.truncf %492 : vector<144x256xf32> to vector<144x256xbf16>
    %cst_159 = arith.constant dense<0.000000e+00> : vector<16x256xf32>
    %494 = tpu.matmul %458, %493, %cst_159 {dimension_numbers = #tpu.dot_dimension_numbers<[1], [0], [0], [1], [0, 0, 1, 1], [], []>} : vector<16x144xbf16>, vector<144x256xbf16>, vector<16x256xf32> -> vector<16x256xf32>
    %495 = vector.extract_strided_slice %251 {offsets = [48, 0], sizes = [16, 16], strides = [1, 1]} : vector<80x16xf32> to vector<16x16xf32>
    %496 = arith.mulf %455, %455 : vector<16x1xf32>
    %cst_160 = arith.constant dense<0.000000e+00> : vector<16x1xf32>
    %497 = tpu.matmul %495, %496, %cst_160 {dimension_numbers = #tpu.dot_dimension_numbers<[1], [0], [0], [1], [0, 0, 1, 1], [], []>} : vector<16x16xf32>, vector<16x1xf32>, vector<16x1xf32> -> vector<16x1xf32>
    %cst_161 = arith.constant 9.99999993E-9 : f32
    %498 = vector.broadcast %cst_161 : f32 to vector<16x1xf32>
    %499 = arith.addf %497, %498 : vector<16x1xf32>
    %500 = math.rsqrt %499 : vector<16x1xf32>
    %501 = vector.broadcast %500 : vector<16x1xf32> to vector<16x256xf32>
    %502 = arith.mulf %494, %501 : vector<16x256xf32>
    %503 = vector.extract_strided_slice %252 {offsets = [48, 0], sizes = [16, 1], strides = [1, 1]} : vector<80x1xf32> to vector<16x1xf32>
    %504 = vector.broadcast %503 : vector<16x1xf32> to vector<16x256xf32>
    %505 = arith.addf %502, %504 : vector<16x256xf32>
    %cst_162 = arith.constant 0.000000e+00 : f32
    %506 = vector.broadcast %cst_162 : f32 to vector<16x256xf32>
    %507 = arith.cmpf oge, %505, %506 : vector<16x256xf32>
    %cst_163 = arith.constant 2.000000e-01 : f32
    %508 = vector.broadcast %cst_163 : f32 to vector<16x256xf32>
    %509 = arith.mulf %508, %505 : vector<16x256xf32>
    %510 = arith.select %507, %505, %509 : vector<16x256xi1>, vector<16x256xf32>
    %cst_164 = arith.constant 1.41421354 : f32
    %511 = vector.broadcast %cst_164 : f32 to vector<16x256xf32>
    %512 = arith.mulf %510, %511 : vector<16x256xf32>
    %513 = vector.extract_strided_slice %250 {offsets = [64, 4], sizes = [16, 1], strides = [1, 1]} : vector<128x6xf32> to vector<16x1xf32>
    %514 = vector.broadcast %513 : vector<16x1xf32> to vector<16x256xf32>
    %515 = arith.mulf %512, %514 : vector<16x256xf32>
    %c480_165 = arith.constant 480 : index
    %c0_166 = arith.constant 0 : index
    %516 = vector.load %arg2[%c480_165, %c0_166] : memref<512x144xbf16, #tpu.memory_space<vmem>>, vector<16x144xbf16>
    %c0_167 = arith.constant 0 : index
    %c0_168 = arith.constant 0 : index
    %517 = vector.load %arg3[%c0_167, %c0_168] : memref<736x256xf32, #tpu.memory_space<vmem>>, vector<9x256xf32>
    %c17_i32_169 = arith.constant 17 : i32
    %518 = tpu.dynamic_rotate %515 by %c17_i32_169 dim 1 : vector<16x256xf32>, i32 -> vector<16x256xf32>
    %519 = vector.extract_strided_slice %517 {offsets = [0, 0], sizes = [1, 256], strides = [1, 1]} : vector<9x256xf32> to vector<1x256xf32>
    %520 = vector.broadcast %519 : vector<1x256xf32> to vector<16x256xf32>
    %521 = arith.mulf %518, %520 : vector<16x256xf32>
    %c16_i32_170 = arith.constant 16 : i32
    %522 = tpu.dynamic_rotate %515 by %c16_i32_170 dim 1 : vector<16x256xf32>, i32 -> vector<16x256xf32>
    %523 = vector.extract_strided_slice %517 {offsets = [1, 0], sizes = [1, 256], strides = [1, 1]} : vector<9x256xf32> to vector<1x256xf32>
    %524 = vector.broadcast %523 : vector<1x256xf32> to vector<16x256xf32>
    %525 = arith.mulf %522, %524 : vector<16x256xf32>
    %c15_i32_171 = arith.constant 15 : i32
    %526 = tpu.dynamic_rotate %515 by %c15_i32_171 dim 1 : vector<16x256xf32>, i32 -> vector<16x256xf32>
    %527 = vector.extract_strided_slice %517 {offsets = [2, 0], sizes = [1, 256], strides = [1, 1]} : vector<9x256xf32> to vector<1x256xf32>
    %528 = vector.broadcast %527 : vector<1x256xf32> to vector<16x256xf32>
    %529 = arith.mulf %526, %528 : vector<16x256xf32>
    %c1_i32_172 = arith.constant 1 : i32
    %530 = tpu.dynamic_rotate %515 by %c1_i32_172 dim 1 : vector<16x256xf32>, i32 -> vector<16x256xf32>
    %531 = vector.extract_strided_slice %517 {offsets = [3, 0], sizes = [1, 256], strides = [1, 1]} : vector<9x256xf32> to vector<1x256xf32>
    %532 = vector.broadcast %531 : vector<1x256xf32> to vector<16x256xf32>
    %533 = arith.mulf %530, %532 : vector<16x256xf32>
    %c255_i32_173 = arith.constant 255 : i32
    %534 = tpu.dynamic_rotate %515 by %c255_i32_173 dim 1 : vector<16x256xf32>, i32 -> vector<16x256xf32>
    %535 = vector.extract_strided_slice %517 {offsets = [5, 0], sizes = [1, 256], strides = [1, 1]} : vector<9x256xf32> to vector<1x256xf32>
    %536 = vector.broadcast %535 : vector<1x256xf32> to vector<16x256xf32>
    %537 = arith.mulf %534, %536 : vector<16x256xf32>
    %c241_i32_174 = arith.constant 241 : i32
    %538 = tpu.dynamic_rotate %515 by %c241_i32_174 dim 1 : vector<16x256xf32>, i32 -> vector<16x256xf32>
    %539 = vector.extract_strided_slice %517 {offsets = [6, 0], sizes = [1, 256], strides = [1, 1]} : vector<9x256xf32> to vector<1x256xf32>
    %540 = vector.broadcast %539 : vector<1x256xf32> to vector<16x256xf32>
    %541 = arith.mulf %538, %540 : vector<16x256xf32>
    %c240_i32_175 = arith.constant 240 : i32
    %542 = tpu.dynamic_rotate %515 by %c240_i32_175 dim 1 : vector<16x256xf32>, i32 -> vector<16x256xf32>
    %543 = vector.extract_strided_slice %517 {offsets = [7, 0], sizes = [1, 256], strides = [1, 1]} : vector<9x256xf32> to vector<1x256xf32>
    %544 = vector.broadcast %543 : vector<1x256xf32> to vector<16x256xf32>
    %545 = arith.mulf %542, %544 : vector<16x256xf32>
    %c239_i32_176 = arith.constant 239 : i32
    %546 = tpu.dynamic_rotate %515 by %c239_i32_176 dim 1 : vector<16x256xf32>, i32 -> vector<16x256xf32>
    %547 = vector.extract_strided_slice %517 {offsets = [8, 0], sizes = [1, 256], strides = [1, 1]} : vector<9x256xf32> to vector<1x256xf32>
    %548 = vector.broadcast %547 : vector<1x256xf32> to vector<16x256xf32>
    %549 = arith.mulf %546, %548 : vector<16x256xf32>
    %550 = tpu.concatenate %521, %525, %529, %533, %515, %537, %541, %545, %549 in 0 : vector<16x256xf32>, vector<16x256xf32>, vector<16x256xf32>, vector<16x256xf32>, vector<16x256xf32>, vector<16x256xf32>, vector<16x256xf32>, vector<16x256xf32>, vector<16x256xf32> -> vector<144x256xf32>
    %551 = arith.truncf %550 : vector<144x256xf32> to vector<144x256xbf16>
    %cst_177 = arith.constant dense<0.000000e+00> : vector<16x256xf32>
    %552 = tpu.matmul %516, %551, %cst_177 {dimension_numbers = #tpu.dot_dimension_numbers<[1], [0], [0], [1], [0, 0, 1, 1], [], []>} : vector<16x144xbf16>, vector<144x256xbf16>, vector<16x256xf32> -> vector<16x256xf32>
    %553 = vector.extract_strided_slice %251 {offsets = [64, 0], sizes = [16, 16], strides = [1, 1]} : vector<80x16xf32> to vector<16x16xf32>
    %554 = arith.mulf %513, %513 : vector<16x1xf32>
    %cst_178 = arith.constant dense<0.000000e+00> : vector<16x1xf32>
    %555 = tpu.matmul %553, %554, %cst_178 {dimension_numbers = #tpu.dot_dimension_numbers<[1], [0], [0], [1], [0, 0, 1, 1], [], []>} : vector<16x16xf32>, vector<16x1xf32>, vector<16x1xf32> -> vector<16x1xf32>
    %cst_179 = arith.constant 9.99999993E-9 : f32
    %556 = vector.broadcast %cst_179 : f32 to vector<16x1xf32>
    %557 = arith.addf %555, %556 : vector<16x1xf32>
    %558 = math.rsqrt %557 : vector<16x1xf32>
    %559 = vector.broadcast %558 : vector<16x1xf32> to vector<16x256xf32>
    %560 = arith.mulf %552, %559 : vector<16x256xf32>
    %561 = vector.extract_strided_slice %252 {offsets = [64, 0], sizes = [16, 1], strides = [1, 1]} : vector<80x1xf32> to vector<16x1xf32>
    %562 = vector.broadcast %561 : vector<16x1xf32> to vector<16x256xf32>
    %563 = arith.addf %560, %562 : vector<16x256xf32>
    %cst_180 = arith.constant 0.000000e+00 : f32
    %564 = vector.broadcast %cst_180 : f32 to vector<16x256xf32>
    %565 = arith.cmpf oge, %563, %564 : vector<16x256xf32>
    %cst_181 = arith.constant 2.000000e-01 : f32
    %566 = vector.broadcast %cst_181 : f32 to vector<16x256xf32>
    %567 = arith.mulf %566, %563 : vector<16x256xf32>
    %568 = arith.select %565, %563, %567 : vector<16x256xi1>, vector<16x256xf32>
    %cst_182 = arith.constant 1.41421354 : f32
    %569 = vector.broadcast %cst_182 : f32 to vector<16x256xf32>
    %570 = arith.mulf %568, %569 : vector<16x256xf32>
    %571 = vector.extract_strided_slice %250 {offsets = [112, 5], sizes = [16, 1], strides = [1, 1]} : vector<128x6xf32> to vector<16x1xf32>
    %572 = vector.extract_strided_slice %253 {offsets = [6, 0], sizes = [3, 16], strides = [1, 1]} : vector<9x16xbf16> to vector<3x16xbf16>
    %573 = vector.broadcast %571 : vector<16x1xf32> to vector<16x256xf32>
    %574 = arith.mulf %570, %573 : vector<16x256xf32>
    %575 = arith.truncf %574 : vector<16x256xf32> to vector<16x256xbf16>
    %cst_183 = arith.constant dense<0.000000e+00> : vector<3x256xf32>
    %576 = tpu.matmul %572, %575, %cst_183 {dimension_numbers = #tpu.dot_dimension_numbers<[1], [0], [0], [1], [0, 0, 1, 1], [], []>} : vector<3x16xbf16>, vector<16x256xbf16>, vector<3x256xf32> -> vector<3x256xf32>
    %577 = vector.extract_strided_slice %254 {offsets = [6, 0], sizes = [3, 1], strides = [1, 1]} : vector<9x1xf32> to vector<3x1xf32>
    %578 = vector.broadcast %577 : vector<3x1xf32> to vector<3x256xf32>
    %579 = arith.addf %576, %578 : vector<3x256xf32>
    %c416_184 = arith.constant 416 : index
    %c0_185 = arith.constant 0 : index
    %580 = vector.load %arg3[%c416_184, %c0_185] : memref<736x256xf32, #tpu.memory_space<vmem>>, vector<64x256xf32>
    %cst_186 = arith.constant dense<0.000000e+00> : vector<3x256xf32>
    %581 = tpu.matmul %452, %580, %cst_186 {dimension_numbers = #tpu.dot_dimension_numbers<[1], [0], [0], [1], [0, 0, 1, 1], [], []>} : vector<3x64xf32>, vector<64x256xf32>, vector<3x256xf32> -> vector<3x256xf32>
    %582 = arith.addf %579, %581 : vector<3x256xf32>
    %c480_187 = arith.constant 480 : index
    %c0_188 = arith.constant 0 : index
    %583 = vector.load %arg3[%c480_187, %c0_188] : memref<736x256xf32, #tpu.memory_space<vmem>>, vector<256x64xf32>
    %cst_189 = arith.constant dense<0.000000e+00> : vector<3x64xf32>
    %584 = tpu.matmul %582, %583, %cst_189 {dimension_numbers = #tpu.dot_dimension_numbers<[1], [0], [0], [1], [0, 0, 1, 1], [], []>} : vector<3x256xf32>, vector<256x64xf32>, vector<3x64xf32> -> vector<3x64xf32>
    %c0_190 = arith.constant 0 : index
    %c0_191 = arith.constant 0 : index
    %585 = vector.load %arg4[%c0_190, %c0_191] : memref<3x64xf32, #tpu.memory_space<vmem>>, vector<3x64xf32>
    tpu.vector_store %arg4[%c0_190, %c0_191], %584 {strides = array<i32>} : memref<3x64xf32, #tpu.memory_space<vmem>>, vector<3x64xf32>,
    return
  }
}

</mosaic_0001>

<bundles_post_ra>
// kernel: psp_forward.1
= control target key start
LH: loop header
LB: loop body
LE: loop exit
PB: predicated region body
PF: predicated region fallthrough
CT: control target
= control target key end

     0   :  { %s8143_s23 = smov 17   ;;  %s8141_s24 = smov 15   ;;  %vm289_vm0 = vcmask 130048   ;;  %v8154_v27 = vmov 0   ;;  %v58_v32 = vlaneseq  ;;  %vm706_vm15 = vcmask 1048064   ;;  %s8130_s0 = inlined_call_operand.vmem [shape: f32[16,256], index: 0, kind: input, shape index: {}]   ;;  %s8131_s2 = inlined_call_operand.vmem [shape: bf16[512,144], index: 2, kind: input, shape index: {}]   ;;  %s8132_s1 = inlined_call_operand.vmem [shape: f32[672,16], index: 1, kind: input, shape index: {}]   ;;  %s8133_s3 = inlined_call_operand.vmem [shape: f32[736,256], index: 3, kind: input, shape index: {}]   ;;  %s8134_s4 = inlined_call_operand.vmem [shape: f32[3,64], index: 4, kind: output, shape index: {}]  }
   0x1   :  { %v19_v0 = vld [vmem:[%s8130_s0 + $0x8] sm:$0xff]  ;;  %v18_v1 = vld [vmem:[%s8130_s0] sm:$0xff]  ;;  %v21_v2 = vld [vmem:[%s8130_s0 + $0x18] sm:$0xff]  ;;  %s5892_s25 = smov 1   ;;  %s5893_s26 = smov 127   ;;  %5518 = vset.pattern.permute.xlu1 %v8154_v27  ;;  %5517 = vset.pattern.permute.xlu0 %v8154_v27 }
   0x2   :  { %v23_v3 = vmul.f32 0.003921569, %v19_v0  ;;  %v22_v4 = vmul.f32 0.003921569, %v18_v1  ;;  %v25_v5 = vmul.f32 0.003921569, %v21_v2 }
   0x3   :  { %v20_v6 = vld [vmem:[%s8130_s0 + $0x10] sm:$0xff]  ;;  %s5890_s0 = smov 16   ;;  %s8139_s27 = smov 113   ;;  %v5817_v26 = vld [vmem:[%s8131_s2 + $0x4] ss:$8 sps:$4 sm:$0xff]   ;;  %v337_v31 = vld [vmem:[%s8132_s1 + $0x18] sm:$0xff] }
   0x4   :  { %v27_v7 = vmax.f32 %v23_v3, 0.0  ;;  %v26_v8 = vmax.f32 %v22_v4, 0.0  ;;  %v29_v9 = vmax.f32 %v25_v5, 0.0  ;;  %v24_v10 = vmul.f32 0.003921569, %v20_v6  ;;  %s8137_s28 = smov 112   ;;  %4916 = vmatprep.mubr.msk.bf16.mxu0 %vm289_vm0, %v5817_v26 }
   0x5   :  { %s8135_s5 = smov 111   ;;  %v45_v28 = vld [vmem:[%s8132_s1 + $0x8] sm:$0xff]  ;;  %v44_v29 = vld [vmem:[%s8132_s1] sm:$0xff]  ;;  %v336_v30 = vld [vmem:[%s8132_s1 + $0x10] sm:$0xff]  ;;  %v6064_v33 = vshrl.u32 %v58_v32, 7  ;;  %v6066_v34 = vand.u32 127, %v58_v32 }
   0x6   :  { %v31_v11 = vmin.f32 %v27_v7, 1.0  ;;  %v30_v12 = vmin.f32 %v26_v8, 1.0  ;;  %v33_v13 = vmin.f32 %v29_v9, 1.0  ;;  %v28_v14 = vmax.f32 %v24_v10, 0.0  ;;  %v6074_v36 = vld [vmem:[%s8133_s3 + $0x8] sm:$0xff]  ;;  %v6079_v37 = vld [vmem:[%s8133_s3] sm:$0xff] }
   0x7   :  { %v6069_v35 = vsub.s32 0, %v6064_v33  ;;  %vm60_vm1 = vcmp.lt.s32.totalorder %v6066_v34, 17  ;;  %v6099_v48 = vsub.s32 1, %v6064_v33  ;;  %vm85_vm2 = vcmp.lt.s32.totalorder %v6066_v34, 16  ;;  %s5898_s30 = smov 64   ;;  %s5899_s8 = smov 56  }
   0x8   :  { %v4909_v15 = vadd.f32 -0.5, %v31_v11  ;;  %v4908_v16 = vadd.f32 -0.5, %v30_v12  ;;  %v4911_v17 = vadd.f32 -0.5, %v33_v13  ;;  %v32_v18 = vmin.f32 %v28_v14, 1.0  ;;  %s5900_s9 = smov 57   ;;  %s5901_s10 = smov 63  }
   0x9   :  { %v6084_v40 = vrot.slane %v6074_v36, %v6069_v35  ;;  %v6088_v41 = vrot.slane %v6079_v37, %v6069_v35  ;;  %v6108_v57 = vrot.slane %v6079_v37, %v6099_v48  ;;  %v6112_v58 = vrot.slane %v6074_v36, %v6099_v48  ;;  %s5902_s11 = smov 7   ;;  %s5903_s14 = smov 8  }
   0xa   :  { %v5970_v19 = vmul.f32 2.0, %v4909_v15  ;;  %v5972_v20 = vmul.f32 2.0, %v4908_v16  ;;  %v4910_v21 = vadd.f32 -0.5, %v32_v18  ;;  %v5978_v22 = vmul.f32 2.0, %v4911_v17  ;;  %s5904_s15 = smov 9   ;;  %s5905_s16 = smov 55  }
   0xb   :  { %v6115_v61 = vsub.s32 2, %v6064_v33  ;;  %vm110_vm3 = vcmp.lt.s32.totalorder %v6066_v34, 15  ;;  %v6139_v14 = vsub.s32 3, %v6064_v33  ;;  %vm135_vm4 = vcmp.lt.s32.totalorder %v6066_v34, 1  ;;  %s5906_s17 = smov 126   ;;  %s5907_s18 = smov 120  }
   0xc   :  { %54 = vrot.lane.b32.xlu1 %v5970_v19, %s8143_s23  ;;  %50 = vrot.lane.b32.xlu0 %v5972_v20, %s8143_s23  ;;  %v5980_v23 = vmul.f32 2.0, %v4910_v21  ;;  %v261_v24 = vpack.c.bf16 %v5978_v22, %v5970_v19  ;;  %vm160_vm5 = vcmp.lt.s32.totalorder %v6066_v34, 127  ;;  %vm8161_vm6 = vcmp.lt.s32.totalorder %v6066_v34, 113  ;;  %s5908_s19 = smov 54   ;;  %s8149_s20 = smov 48  }
   0xd   :  { %v6132_v10 = vrot.slane %v6079_v37, %v6115_v61  ;;  %v6136_v11 = vrot.slane %v6074_v36, %v6115_v61  ;;  %vm8160_vm7 = vcmp.lt.s32.totalorder %v6066_v34, 112  ;;  %vm8151_vm8 = vcmp.lt.s32.totalorder %v6066_v34, 111  ;;  %s5910_s21 = smov 47   ;;  %s8147_s22 = smov 46  }
   0xe   :  { %v260_v25 = vpack.c.bf16 %v5980_v23, %v5972_v20  ;;  %s8145_s29 = smov 73   ;;  %s5917_s13 = smov 11  }
   0xf   :  { %s5919_s6 = smov 124   ;;  %s5920_s7 = smov 10  }
  0x10   :  { %56 = vrot.lane.b32.xlu1 %v5978_v22, %s8143_s23  ;;  %52 = vrot.lane.b32.xlu0 %v5980_v23, %s8143_s23  ;;  %s8168_s12 = smov 73  }
  0x14   :  { %79 = vrot.lane.b32.xlu1 %v5980_v23, %s5890_s0  ;;  %77 = vrot.lane.b32.xlu0 %v5972_v20, %s5890_s0 }
  0x18   :  { %83 = vrot.lane.b32.xlu1 %v5978_v22, %s5890_s0  ;;  %81 = vrot.lane.b32.xlu0 %v5970_v19, %s5890_s0 }
  0x1c   :  { %104 = vrot.lane.b32.xlu1 %v5980_v23, %s8141_s24  ;;  %102 = vrot.lane.b32.xlu0 %v5972_v20, %s8141_s24 }
  0x20   :  { %108 = vrot.lane.b32.xlu1 %v5978_v22, %s8141_s24  ;;  %106 = vrot.lane.b32.xlu0 %v5970_v19, %s8141_s24 }
  0x24   :  { %129 = vrot.lane.b32.xlu1 %v5980_v23, %s5892_s25  ;;  %127 = vrot.lane.b32.xlu0 %v5972_v20, %s5892_s25 }
  0x28   :  { %133 = vrot.lane.b32.xlu1 %v5978_v22, %s5892_s25  ;;  %131 = vrot.lane.b32.xlu0 %v5970_v19, %s5892_s25 }
  0x2c   :  { %154 = vrot.lane.b32.xlu1 %v5980_v23, %s5893_s26  ;;  %152 = vrot.lane.b32.xlu0 %v5972_v20, %s5893_s26 }
  0x30   :  { %158 = vrot.lane.b32.xlu1 %v5978_v22, %s5893_s26  ;;  %156 = vrot.lane.b32.xlu0 %v5970_v19, %s5893_s26 }
  0x34   :  { %179 = vrot.lane.b32.xlu1 %v5980_v23, %s8139_s27  ;;  %177 = vrot.lane.b32.xlu0 %v5972_v20, %s8139_s27 }
  0x38   :  { %183 = vrot.lane.b32.xlu1 %v5978_v22, %s8139_s27  ;;  %181 = vrot.lane.b32.xlu0 %v5970_v19, %s8139_s27 }
  0x3c   :  { %204 = vrot.lane.b32.xlu1 %v5980_v23, %s8137_s28  ;;  %202 = vrot.lane.b32.xlu0 %v5972_v20, %s8137_s28 }
  0x40   :  { %208 = vrot.lane.b32.xlu1 %v5978_v22, %s8137_s28  ;;  %206 = vrot.lane.b32.xlu0 %v5970_v19, %s8137_s28 }
  0x44   :  { %229 = vrot.lane.b32.xlu1 %v5980_v23, %s8135_s5  ;;  %227 = vrot.lane.b32.xlu0 %v5972_v20, %s8135_s5  ;;  %v6217_v20 = vsub.s32 7, %v6064_v33 }
  0x48   :  { %233 = vrot.lane.b32.xlu1 %v5978_v22, %s8135_s5  ;;  %231 = vrot.lane.b32.xlu0 %v5970_v19, %s8135_s5 }
  0x4c   :  { %277 = vperm.xlu1 %5518, %v45_v28   ;;  %272 = vperm.xlu0 %5517, %v44_v29  }
  0x50   :  { %344 = vperm.xlu1 %5518, %v336_v30   ;;  %349 = vperm.xlu0 %5517, %v337_v31  }
  0x7e   :  { %v55_v38 = vpop.permute.xlu1 %54  ;;  %v51_v39 = vpop.permute.xlu0 %50 }
  0x7f   :  { %v63_v42 = vsel %vm60_vm1, %v55_v38, %v51_v39  ;;  %v61_v43 = vsel %vm60_vm1, %v51_v39, %v55_v38  ;;  %v6156_v39 = vrot.slane %v6079_v37, %v6139_v14 }
  0x80   :  { %v74_v49 = vmul.f32 %v6084_v40, %v61_v43  ;;  %v73_v51 = vmul.f32 %v6088_v41, %v63_v42  ;;  %v6160_v42 = vrot.slane %v6074_v36, %v6139_v14 }
  0x82   :  { %v57_v44 = vpop.permute.xlu1 %56  ;;  %v53_v45 = vpop.permute.xlu0 %52 }
  0x83   :  { %v64_v46 = vsel %vm60_vm1, %v57_v44, %v53_v45  ;;  %v62_v47 = vsel %vm60_vm1, %v53_v45, %v57_v44  ;;  %v6163_v45 = vsub.s32 5, %v6064_v33 }
  0x84   :  { %v76_v50 = vmul.f32 %v6084_v40, %v62_v47  ;;  %v75_v52 = vmul.f32 %v6088_v41, %v64_v46 }
  0x86   :  { %v80_v53 = vpop.permute.xlu1 %79  ;;  %v78_v54 = vpop.permute.xlu0 %77  ;;  %v253_v55 = vpack.c.bf16 %v76_v50, %v74_v49  ;;  %v252_v56 = vpack.c.bf16 %v75_v52, %v73_v51 }
  0x88   :  { %293 = vmatprep.subr.bf16.mxu0 %v253_v55 }
  0x89   :  { %294 = vmatpush1.bf16.msra.mxu0 %v252_v56 }
  0x8a   :  { %v84_v59 = vpop.permute.xlu1 %83  ;;  %v82_v60 = vpop.permute.xlu0 %81 }
  0x8b   :  { %v87_v62 = vsel %vm85_vm2, %v80_v53, %v84_v59  ;;  %v89_v63 = vsel %vm85_vm2, %v84_v59, %v80_v53  ;;  %v86_v0 = vsel %vm85_vm2, %v78_v54, %v82_v60  ;;  %v88_v1 = vsel %vm85_vm2, %v82_v60, %v78_v54 }
  0x8c   :  { %v100_v2 = vmul.f32 %v6108_v57, %v89_v63  ;;  %v101_v3 = vmul.f32 %v6112_v58, %v87_v62  ;;  %v98_v4 = vmul.f32 %v6108_v57, %v88_v1  ;;  %v99_v5 = vmul.f32 %v6112_v58, %v86_v0 }
  0x8d   :  { %v6180_v62 = vrot.slane %v6079_v37, %v6163_v45  ;;  %v6184_v63 = vrot.slane %v6074_v36, %v6163_v45 }
  0x8e   :  { %v105_v6 = vpop.permute.xlu1 %104  ;;  %v103_v7 = vpop.permute.xlu0 %102  ;;  %v255_v8 = vpack.c.bf16 %v101_v3, %v99_v5  ;;  %v254_v9 = vpack.c.bf16 %v100_v2, %v98_v4  ;;  %v6190_v2 = vsub.s32 6, %v6064_v33 }
  0x90   :  { %295 = vmatprep.subr.bf16.mxu0 %v255_v8 }
  0x91   :  { %296 = vmatpush1.bf16.msra.mxu0 %v254_v9 }
  0x92   :  { %v109_v12 = vpop.permute.xlu1 %108  ;;  %v107_v13 = vpop.permute.xlu0 %106 }
  0x93   :  { %v112_v15 = vsel %vm110_vm3, %v105_v6, %v109_v12  ;;  %v114_v16 = vsel %vm110_vm3, %v109_v12, %v105_v6  ;;  %v111_v17 = vsel %vm110_vm3, %v103_v7, %v107_v13  ;;  %v113_v18 = vsel %vm110_vm3, %v107_v13, %v103_v7 }
  0x94   :  { %v125_v21 = vmul.f32 %v6132_v10, %v114_v16  ;;  %v126_v26 = vmul.f32 %v6136_v11, %v112_v15  ;;  %v123_v28 = vmul.f32 %v6132_v10, %v113_v18  ;;  %v124_v29 = vmul.f32 %v6136_v11, %v111_v17 }
  0x95   :  { %v6210_v15 = vrot.slane %v6079_v37, %v6190_v2  ;;  %v6214_v16 = vrot.slane %v6074_v36, %v6190_v2 }
  0x96   :  { %v130_v30 = vpop.permute.xlu1 %129  ;;  %v128_v31 = vpop.permute.xlu0 %127  ;;  %v257_v32 = vpack.c.bf16 %v126_v26, %v124_v29  ;;  %v256_v38 = vpack.c.bf16 %v125_v21, %v123_v28 }
  0x98   :  { %297 = vmatprep.subr.bf16.mxu0 %v257_v32 }
  0x99   :  { %298 = vmatpush1.bf16.msra.mxu0 %v256_v38 }
  0x9a   :  { %v134_v43 = vpop.permute.xlu1 %133  ;;  %v132_v44 = vpop.permute.xlu0 %131 }
  0x9b   :  { %v137_v46 = vsel %vm135_vm4, %v130_v30, %v134_v43  ;;  %v139_v47 = vsel %vm135_vm4, %v134_v43, %v130_v30  ;;  %v136_v49 = vsel %vm135_vm4, %v128_v31, %v132_v44  ;;  %v138_v50 = vsel %vm135_vm4, %v132_v44, %v128_v31 }
  0x9c   :  { %v150_v51 = vmul.f32 %v6156_v39, %v139_v47  ;;  %v151_v52 = vmul.f32 %v6160_v42, %v137_v46  ;;  %v148_v53 = vmul.f32 %v6156_v39, %v138_v50  ;;  %v149_v54 = vmul.f32 %v6160_v42, %v136_v49 }
  0x9d   :  { %v6234_v44 = vrot.slane %v6079_v37, %v6217_v20  ;;  %v6238_v46 = vrot.slane %v6074_v36, %v6217_v20 }
  0x9e   :  { %v155_v55 = vpop.permute.xlu1 %154  ;;  %v153_v56 = vpop.permute.xlu0 %152  ;;  %v259_v59 = vpack.c.bf16 %v151_v52, %v149_v54  ;;  %v258_v60 = vpack.c.bf16 %v150_v51, %v148_v53 }
  0x9f   :  { %8162 = vst [vmem:[#allocation2_spill] sm:$0xff] %v6234_v44  ;;  %8163 = vst [vmem:[#allocation3_spill] sm:$0xff] %v6238_v46 }
  0xa0   :  { %299 = vmatprep.subr.bf16.mxu0 %v259_v59 }
  0xa1   :  { %300 = vmatpush1.bf16.msra.mxu0 %v258_v60 }
  0xa2   :  { %v159_v0 = vpop.permute.xlu1 %158  ;;  %v157_v1 = vpop.permute.xlu0 %156  ;;  %301 = vmatprep.subr.bf16.mxu0 %v261_v24 }
  0xa3   :  { %v162_v3 = vsel %vm160_vm5, %v155_v55, %v159_v0  ;;  %v164_v4 = vsel %vm160_vm5, %v159_v0, %v155_v55  ;;  %v161_v5 = vsel %vm160_vm5, %v153_v56, %v157_v1  ;;  %v163_v6 = vsel %vm160_vm5, %v157_v1, %v153_v56  ;;  %v6256_v1 = vld [vmem:[%s8133_s3 + $0x10] ss:$0 sm:$0xff] }
  0xa4   :  { %v175_v7 = vmul.f32 %v6180_v62, %v162_v3  ;;  %v176_v19 = vmul.f32 %v6184_v63, %v164_v4  ;;  %v173_v22 = vmul.f32 %v6180_v62, %v161_v5  ;;  %v174_v24 = vmul.f32 %v6184_v63, %v163_v6  ;;  %v6261_v3 = vld [vmem:[%s8133_s3 + $0x18] ss:$0 sm:$0xff] }
  0xa5   :  { %302 = vmatpush1.bf16.msra.mxu0 %v260_v25 }
  0xa6   :  { %v180_v8 = vpop.permute.xlu1 %179  ;;  %v178_v9 = vpop.permute.xlu0 %177  ;;  %v263_v12 = vpack.c.bf16 %v176_v19, %v174_v24  ;;  %v262_v13 = vpack.c.bf16 %v175_v7, %v173_v22 }
  0xa8   :  { %303 = vmatprep.subr.bf16.mxu0 %v263_v12 }
  0xa9   :  { %304 = vmatpush1.bf16.msra.mxu0 %v262_v13 }
  0xaa   :  { %v184_v17 = vpop.permute.xlu1 %183  ;;  %v182_v18 = vpop.permute.xlu0 %181 }
  0xab   :  { %v187_v23 = vsel %vm8161_vm6, %v180_v8, %v184_v17  ;;  %v189_v25 = vsel %vm8161_vm6, %v184_v17, %v180_v8  ;;  %v186_v21 = vsel %vm8161_vm6, %v178_v9, %v182_v18  ;;  %v188_v26 = vsel %vm8161_vm6, %v182_v18, %v178_v9  ;;  %v5815_v18 = vld [vmem:[%s8131_s2] ss:$8 sps:$4 sm:$0xff]  }
  0xac   :  { %v200_v28 = vmul.f32 %v6210_v15, %v187_v23  ;;  %v201_v29 = vmul.f32 %v6214_v16, %v189_v25  ;;  %v198_v30 = vmul.f32 %v6210_v15, %v186_v21  ;;  %v199_v33 = vmul.f32 %v6214_v16, %v188_v26 }
  0xae   :  { %v205_v31 = vpop.permute.xlu1 %204  ;;  %v203_v32 = vpop.permute.xlu0 %202  ;;  %v265_v38 = vpack.c.bf16 %v201_v29, %v199_v33  ;;  %v264_v43 = vpack.c.bf16 %v200_v28, %v198_v30 }
  0xb0   :  { %305 = vmatprep.subr.bf16.mxu0 %v265_v38 }
  0xb1   :  { %306 = vmatpush1.bf16.msra.mxu0 %v264_v43 }
  0xb2   :  { %v209_v47 = vpop.permute.xlu1 %208  ;;  %v207_v49 = vpop.permute.xlu0 %206 }
  0xb3   :  { %v212_v50 = vsel %vm8160_vm7, %v205_v31, %v209_v47  ;;  %v214_v51 = vsel %vm8160_vm7, %v209_v47, %v205_v31  ;;  %v211_v52 = vsel %vm8160_vm7, %v203_v32, %v207_v49  ;;  %v213_v37 = vsel %vm8160_vm7, %v207_v49, %v203_v32 }
  0xb4   :  { %v225_v53 = vmul.f32 %v6234_v44, %v212_v50  ;;  %v226_v36 = vmul.f32 %v6238_v46, %v214_v51  ;;  %v223_v54 = vmul.f32 %v6234_v44, %v211_v52  ;;  %v224_v55 = vmul.f32 %v6238_v46, %v213_v37 }
  0xb6   :  { %v230_v56 = vpop.permute.xlu1 %229  ;;  %v228_v59 = vpop.permute.xlu0 %227  ;;  %v267_v60 = vpack.c.bf16 %v226_v36, %v224_v55  ;;  %v266_v0 = vpack.c.bf16 %v225_v53, %v223_v54 }
  0xb8   :  { %307 = vmatprep.subr.bf16.mxu0 %v267_v60  ;;  %v363_v60 = vld [vmem:[%s8132_s1 + $0x28] sm:$0xff] }
  0xb9   :  { %308 = vmatpush1.bf16.msra.mxu0 %v266_v0  ;;  %v682_v0 = vld [vmem:[%s8132_s1 + $0x30] sm:$0xff] }
  0xba   :  { %v234_v4 = vpop.permute.xlu1 %233  ;;  %v232_v5 = vpop.permute.xlu0 %231 }
  0xbb   :  { %v237_v6 = vsel %vm8151_vm8, %v230_v56, %v234_v4  ;;  %v239_v7 = vsel %vm8151_vm8, %v234_v4, %v230_v56  ;;  %v236_v19 = vsel %vm8151_vm8, %v228_v59, %v232_v5  ;;  %v238_v22 = vsel %vm8151_vm8, %v232_v5, %v228_v59  ;;  %v5820_v56 = vld [vmem:[%s8131_s2 + $0x14] ss:$8 sps:$4 sm:$0xff]   ;;  %v362_v59 = vld [vmem:[%s8132_s1 + $0x20] sm:$0xff] }
  0xbc   :  { %v250_v24 = vmul.f32 %v6256_v1, %v237_v6  ;;  %v251_v8 = vmul.f32 %v6261_v3, %v239_v7  ;;  %v248_v9 = vmul.f32 %v6256_v1, %v236_v19  ;;  %v249_v12 = vmul.f32 %v6261_v3, %v238_v22  ;;  %4919 = vmatprep.mubr.msk.bf16.mxu1 %vm289_vm0, %v5820_v56  ;;  %v683_v4 = vld [vmem:[%s8132_s1 + $0x38] sm:$0xff]  ;;  %v591_v5 = vld [vmem:[%s8133_s3 + $0x160] sm:$0xff]  ;;  %v592_v6 = vld [vmem:[%s8133_s3 + $0x170] sm:$0xff] }
  0xbd   :  { %v575_v7 = vld [vmem:[%s8133_s3 + $0x60] sm:$0xff]  ;;  %v5326_v19 = vpack.c.bf16 %v592_v6, %v591_v5  ;;  %v576_v22 = vld [vmem:[%s8133_s3 + $0x70] sm:$0xff] }
  0xbe   :  { %v269_v13 = vpack.c.bf16 %v251_v8, %v249_v12  ;;  %v268_v17 = vpack.c.bf16 %v250_v24, %v248_v9  ;;  %v593_v24 = vld [vmem:[%s8133_s3 + $0x180] sm:$0xff]  ;;  %v594_v8 = vld [vmem:[%s8133_s3 + $0x190] sm:$0xff]  ;;  %v5328_v9 = vpack.c.bf16 %v576_v22, %v575_v7 }
  0xbf   :  { %v5330_v12 = vpack.c.bf16 %v594_v8, %v593_v24  ;;  %v584_v56 = vld [vmem:[%s8133_s3 + $0xf0] sm:$0xff]  ;;  %v585_v5 = vld [vmem:[%s8133_s3 + $0x100] sm:$0xff] }
  0xc0   :  { %309 = vmatprep.subr.bf16.mxu0 %v269_v13  ;;  %v577_v13 = vld [vmem:[%s8133_s3 + $0x80] sm:$0xff]  ;;  %v586_v6 = vld [vmem:[%s8133_s3 + $0x110] sm:$0xff] }
  0xc1   :  { %310 = vmatpush1.bf16.msra.mxu0 %v268_v17  ;;  %v578_v17 = vld [vmem:[%s8133_s3 + $0x90] sm:$0xff]  ;;  %v603_v7 = vld [vmem:[%s8133_s3 + $0x220] sm:$0xff]  ;;  %v5348_v22 = vpack.c.bf16 %v586_v6, %v585_v5 }
  0xc2   :  { %5327 = vmatprep.subr.bf16.mxu0 %v5326_v19  ;;  %v604_v19 = vld [vmem:[%s8133_s3 + $0x230] sm:$0xff]  ;;  %v587_v8 = vld [vmem:[%s8133_s3 + $0x120] sm:$0xff] }
  0xc3   :  { %v5350_v24 = vpack.c.bf16 %v604_v19, %v603_v7 }
  0xc4   :  { %326 = vmatmul.mubr.bf16.vlgmr.msra.gmra.mrb[0].mxu0 %v5815_v18  ;;  %v595_v18 = vld [vmem:[%s8133_s3 + $0x1a0] sm:$0xff] }
  0xc5   :  { %5329 = vmatpush3.bf16.msra.mxu0 %v5328_v9  ;;  %v588_v9 = vld [vmem:[%s8133_s3 + $0x130] sm:$0xff] }
  0xc6   :  { %5331 = vmatprep.subr.bf16.mxu0 %v5330_v12  ;;  %v5352_v12 = vpack.c.bf16 %v588_v9, %v587_v8 }
  0xcb   :  { %v278_v23 = vpop.permute.xlu1 %277  ;;  %v273_v25 = vpop.permute.xlu0 %272 }
  0xcf   :  { %v345_v29 = vpop.permute.xlu1 %344  ;;  %v350_v43 = vpop.permute.xlu0 %349 }
 0x197   :  { %v327_v21 = vpop.f32.mrb[0].mxu0 }
 0x198   :  { %v328_v26 = vadd.f32 %v327_v21, %v273_v25  ;;  %v329_v28 = vpop.f32.mrb[1].mxu0 }
 0x199   :  { %v330_v30 = vadd.f32 %v329_v28, %v273_v25  ;;  %v331_v33 = vpop.f32.mrb[2].mxu0  ;;  %v5332_v25 = vpack.c.bf16 %v578_v17, %v577_v13  ;;  %v580_v28 = vld [vmem:[%s8133_s3 + $0xb0] sm:$0xff] }
 0x19a   :  { %vm338_vm9 = vcmp.ge.f32.partialorder %v328_v26, 0.0  ;;  %v352_v31 = vmul.f32 %v345_v29, %v328_v26  ;;  %v332_v32 = vadd.f32 %v331_v33, %v278_v23  ;;  %v333_v38 = vpop.f32.mrb[3].mxu0 }
 0x19b   :  { %v353_v47 = vmul.f32 %v345_v29, %v330_v30  ;;  %v334_v49 = vadd.f32 %v333_v38, %v278_v23  ;;  %vm339_vm10 = vcmp.ge.f32.partialorder %v330_v30, 0.0  ;;  %v596_v23 = vld [vmem:[%s8133_s3 + $0x1b0] sm:$0xff]  ;;  %v597_v29 = vld [vmem:[%s8133_s3 + $0x1c0] sm:$0xff]  ;;  %5333 = vmatpush3.bf16.msra.mxu0 %v5332_v25 }
 0x19c   :  { %v6278_v50 = vsel %vm338_vm9, %v328_v26, %v352_v31  ;;  %vm340_vm11 = vcmp.ge.f32.partialorder %v332_v32, 0.0  ;;  %v354_v51 = vmul.f32 %v350_v43, %v332_v32  ;;  %v5334_v21 = vpack.c.bf16 %v596_v23, %v595_v18  ;;  %v579_v26 = vld [vmem:[%s8133_s3 + $0xa0] sm:$0xff]  ;;  %v582_v38 = vld [vmem:[%s8133_s3 + $0xd0] sm:$0xff] }
 0x19d   :  { %vm341_vm12 = vcmp.ge.f32.partialorder %v334_v49, 0.0  ;;  %v355_v52 = vmul.f32 %v350_v43, %v334_v49  ;;  %364 = vrot.lane.b32.xlu1 %v6278_v50, %s8143_s23  ;;  %v6284_v53 = vsel %vm339_vm10, %v330_v30, %v353_v47  ;;  %v598_v30 = vld [vmem:[%s8133_s3 + $0x1d0] sm:$0xff]  ;;  %v5336_v33 = vpack.c.bf16 %v580_v28, %v579_v26  ;;  %v599_v43 = vld [vmem:[%s8133_s3 + $0x1e0] sm:$0xff] }
 0x19e   :  { %v6282_v37 = vsel %vm340_vm11, %v332_v32, %v354_v51  ;;  %5335 = vmatprep.subr.bf16.mxu0 %v5334_v21  ;;  %v5338_v31 = vpack.c.bf16 %v598_v30, %v597_v29  ;;  %v581_v32 = vld [vmem:[%s8133_s3 + $0xc0] sm:$0xff]  ;;  %v600_v47 = vld [vmem:[%s8133_s3 + $0x1f0] sm:$0xff]  ;;  %vm979_vm9 = vcmask 523264  }
 0x19f   :  { %v6286_v36 = vsel %vm341_vm12, %v334_v49, %v355_v52  ;;  %366 = vrot.lane.b32.xlu0 %v6282_v37, %s8143_s23  ;;  %v500_v54 = vpack.c.bf16 %v6282_v37, %v6278_v50  ;;  %5337 = vmatpush3.bf16.msra.mxu0 %v5336_v33  ;;  %v5340_v49 = vpack.c.bf16 %v582_v38, %v581_v32  ;;  %v583_v52 = vld [vmem:[%s8133_s3 + $0xe0] sm:$0xff]  ;;  %vm1085_vm12 = vcmask 1047680  }
 0x1a0   :  { %v501_v55 = vpack.c.bf16 %v6286_v36, %v6284_v53  ;;  %5339 = vmatprep.subr.bf16.mxu0 %v5338_v31  ;;  %v5342_v51 = vpack.c.bf16 %v600_v47, %v599_v43 }
 0x1a1   :  { %380 = vrot.lane.b32.xlu1 %v6278_v50, %s5890_s0 }
 0x1a3   :  { %382 = vrot.lane.b32.xlu0 %v6282_v37, %s5890_s0  ;;  %5341 = vmatpush3.bf16.msra.mxu0 %v5340_v49 }
 0x1a4   :  { %5343 = vmatprep.subr.bf16.mxu0 %v5342_v51 }
 0x1a5   :  { %396 = vrot.lane.b32.xlu1 %v6278_v50, %s8141_s24 }
 0x1a7   :  { %398 = vrot.lane.b32.xlu0 %v6282_v37, %s8141_s24 }
 0x1a9   :  { %412 = vrot.lane.b32.xlu1 %v6278_v50, %s5892_s25 }
 0x1ab   :  { %414 = vrot.lane.b32.xlu0 %v6282_v37, %s5892_s25 }
 0x1ad   :  { %428 = vrot.lane.b32.xlu1 %v6278_v50, %s5893_s26 }
 0x1af   :  { %430 = vrot.lane.b32.xlu0 %v6282_v37, %s5893_s26 }
 0x1b1   :  { %444 = vrot.lane.b32.xlu1 %v6278_v50, %s8139_s27 }
 0x1b3   :  { %446 = vrot.lane.b32.xlu0 %v6282_v37, %s8139_s27 }
 0x1b5   :  { %460 = vrot.lane.b32.xlu1 %v6278_v50, %s8137_s28 }
 0x1b7   :  { %462 = vrot.lane.b32.xlu0 %v6282_v37, %s8137_s28 }
 0x1b9   :  { %368 = vrot.lane.b32.xlu1 %v6284_v53, %s8143_s23 }
 0x1bb   :  { %370 = vrot.lane.b32.xlu0 %v6286_v36, %s8143_s23 }
 0x1bd   :  { %384 = vrot.lane.b32.xlu1 %v6284_v53, %s5890_s0 }
 0x1bf   :  { %386 = vrot.lane.b32.xlu0 %v6286_v36, %s5890_s0 }
 0x1c1   :  { %400 = vrot.lane.b32.xlu1 %v6284_v53, %s8141_s24 }
 0x1c3   :  { %402 = vrot.lane.b32.xlu0 %v6286_v36, %s8141_s24 }
 0x1c5   :  { %416 = vrot.lane.b32.xlu1 %v6284_v53, %s5892_s25 }
 0x1c7   :  { %418 = vrot.lane.b32.xlu0 %v6286_v36, %s5892_s25 }
 0x1c9   :  { %476 = vrot.lane.b32.xlu1 %v6278_v50, %s8135_s5 }
 0x1cb   :  { %478 = vrot.lane.b32.xlu0 %v6282_v37, %s8135_s5 }
 0x1cd   :  { %432 = vrot.lane.b32.xlu1 %v6284_v53, %s5893_s26 }
 0x1cf   :  { %434 = vrot.lane.b32.xlu0 %v6286_v36, %s5893_s26 }
 0x1d1   :  { %448 = vrot.lane.b32.xlu1 %v6284_v53, %s8139_s27 }
 0x1d3   :  { %450 = vrot.lane.b32.xlu0 %v6286_v36, %s8139_s27  ;;  %s8173_s27 = smov 111  }
 0x1d5   :  { %464 = vrot.lane.b32.xlu1 %v6284_v53, %s8137_s28 }
 0x1d7   :  { %466 = vrot.lane.b32.xlu0 %v6286_v36, %s8137_s28  ;;  %s5915_s28 = smov 4  }
 0x1d9   :  { %480 = vrot.lane.b32.xlu1 %v6284_v53, %s8135_s5 }
 0x1db   :  { %482 = vrot.lane.b32.xlu0 %v6286_v36, %s8135_s5  ;;  %s5913_s5 = smov 13  }
 0x1dd   :  { %512 = vperm.xlu1 %5518, %v362_v59   ;;  %v601_v59 = vld [vmem:[%s8133_s3 + $0x200] sm:$0xff] }
 0x1df   :  { %517 = vperm.xlu0 %5517, %v363_v60   ;;  %v602_v60 = vld [vmem:[%s8133_s3 + $0x210] sm:$0xff] }
 0x1e1   :  { %688 = vperm.xlu1 %5518, %v682_v0   ;;  %v5344_v0 = vpack.c.bf16 %v584_v56, %v583_v52 }
 0x1e3   :  { %693 = vperm.xlu0 %5517, %v683_v4   ;;  %v5346_v4 = vpack.c.bf16 %v602_v60, %v601_v59  ;;  %5345 = vmatpush3.bf16.msra.mxu0 %v5344_v0 }
 0x1e5   :  { %5347 = vmatprep.subr.bf16.mxu0 %v5346_v4 }
 0x1e7   :  { %5349 = vmatpush3.bf16.msra.mxu0 %v5348_v22 }
 0x1e8   :  { %5351 = vmatprep.subr.bf16.mxu0 %v5350_v24 }
 0x1eb   :  { %5353 = vmatpush3.bf16.msra.mxu0 %v5352_v12 }
 0x20f   :  { %v365_v13 = vpop.permute.xlu1 %364 }
 0x211   :  { %v367_v17 = vpop.permute.xlu0 %366 }
 0x213   :  { %v381_v18 = vpop.permute.xlu1 %380 }
 0x215   :  { %v383_v23 = vpop.permute.xlu0 %382 }
 0x217   :  { %v397_v25 = vpop.permute.xlu1 %396 }
 0x219   :  { %v399_v21 = vpop.permute.xlu0 %398 }
 0x21b   :  { %v413_v26 = vpop.permute.xlu1 %412 }
 0x21d   :  { %v415_v28 = vpop.permute.xlu0 %414 }
 0x21f   :  { %v6454_v29 = vpop.permute.xlu1 %428 }
 0x221   :  { %v6456_v30 = vpop.permute.xlu0 %430 }
 0x223   :  { %v6458_v33 = vpop.permute.xlu1 %444 }
 0x225   :  { %v6460_v31 = vpop.permute.xlu0 %446 }
 0x227   :  { %v6462_v32 = vpop.permute.xlu1 %460 }
 0x229   :  { %v6464_v38 = vpop.permute.xlu0 %462 }
 0x22b   :  { %v369_v43 = vpop.permute.xlu1 %368 }
 0x22c   :  { %v374_v47 = vsel %vm60_vm1, %v369_v43, %v365_v13  ;;  %v372_v49 = vsel %vm60_vm1, %v365_v13, %v369_v43 }
 0x22d   :  { %v371_v51 = vpop.permute.xlu0 %370  ;;  %v377_v60 = vmul.f32 %v372_v49, %v6084_v40  ;;  %v376_v4 = vmul.f32 %v374_v47, %v6088_v41 }
 0x22e   :  { %v375_v52 = vsel %vm60_vm1, %v371_v51, %v367_v17  ;;  %v373_v56 = vsel %vm60_vm1, %v367_v17, %v371_v51 }
 0x22f   :  { %v385_v59 = vpop.permute.xlu1 %384  ;;  %v379_v0 = vmul.f32 %v373_v56, %v6084_v40  ;;  %v378_v5 = vmul.f32 %v375_v52, %v6088_v41 }
 0x230   :  { %v388_v6 = vsel %vm85_vm2, %v381_v18, %v385_v59  ;;  %v390_v7 = vsel %vm85_vm2, %v385_v59, %v381_v18 }
 0x231   :  { %v387_v19 = vpop.permute.xlu0 %386  ;;  %v493_v22 = vpack.c.bf16 %v379_v0, %v377_v60  ;;  %v492_v24 = vpack.c.bf16 %v378_v5, %v376_v4  ;;  %v392_v12 = vmul.f32 %v390_v7, %v6108_v57  ;;  %v393_v13 = vmul.f32 %v388_v6, %v6112_v58 }
 0x232   :  { %v389_v8 = vsel %vm85_vm2, %v383_v23, %v387_v19  ;;  %v391_v9 = vsel %vm85_vm2, %v387_v19, %v383_v23 }
 0x233   :  { %v394_v17 = vmul.f32 %v391_v9, %v6108_v57  ;;  %v395_v43 = vmul.f32 %v389_v8, %v6112_v58  ;;  %532 = vmatprep.subr.bf16.mxu1 %v493_v22  ;;  %v401_v47 = vpop.permute.xlu1 %400 }
 0x234   :  { %v404_v18 = vsel %vm110_vm3, %v397_v25, %v401_v47  ;;  %v406_v49 = vsel %vm110_vm3, %v401_v47, %v397_v25  ;;  %533 = vmatpush1.bf16.msra.mxu1 %v492_v24 }
 0x235   :  { %v403_v51 = vpop.permute.xlu0 %402  ;;  %v495_v52 = vpack.c.bf16 %v395_v43, %v393_v13  ;;  %v494_v23 = vpack.c.bf16 %v394_v17, %v392_v12  ;;  %v408_v60 = vmul.f32 %v406_v49, %v6132_v10  ;;  %v409_v0 = vmul.f32 %v404_v18, %v6136_v11 }
 0x236   :  { %v405_v56 = vsel %vm110_vm3, %v399_v21, %v403_v51  ;;  %v407_v59 = vsel %vm110_vm3, %v403_v51, %v399_v21 }
 0x237   :  { %v410_v4 = vmul.f32 %v407_v59, %v6132_v10  ;;  %v411_v5 = vmul.f32 %v405_v56, %v6136_v11  ;;  %534 = vmatprep.subr.bf16.mxu1 %v495_v52  ;;  %v417_v25 = vpop.permute.xlu1 %416 }
 0x238   :  { %v420_v6 = vsel %vm135_vm4, %v413_v26, %v417_v25  ;;  %v422_v7 = vsel %vm135_vm4, %v417_v25, %v413_v26  ;;  %535 = vmatpush1.bf16.msra.mxu1 %v494_v23 }
 0x239   :  { %v419_v19 = vpop.permute.xlu0 %418  ;;  %v497_v22 = vpack.c.bf16 %v411_v5, %v409_v0  ;;  %v496_v21 = vpack.c.bf16 %v410_v4, %v408_v60  ;;  %v424_v9 = vmul.f32 %v422_v7, %v6156_v39  ;;  %v425_v12 = vmul.f32 %v420_v6, %v6160_v42 }
 0x23a   :  { %v421_v24 = vsel %vm135_vm4, %v415_v28, %v419_v19  ;;  %v423_v8 = vsel %vm135_vm4, %v419_v19, %v415_v28 }
 0x23b   :  { %v426_v13 = vmul.f32 %v423_v8, %v6156_v39  ;;  %v427_v17 = vmul.f32 %v421_v24, %v6160_v42  ;;  %536 = vmatprep.subr.bf16.mxu1 %v497_v22  ;;  %v477_v26 = vpop.permute.xlu1 %476 }
 0x23c   :  { %537 = vmatpush1.bf16.msra.mxu1 %v496_v21 }
 0x23d   :  { %v479_v43 = vpop.permute.xlu0 %478  ;;  %v499_v47 = vpack.c.bf16 %v427_v17, %v425_v12  ;;  %v498_v18 = vpack.c.bf16 %v426_v13, %v424_v9 }
 0x23f   :  { %538 = vmatprep.subr.bf16.mxu1 %v499_v47  ;;  %v433_v49 = vpop.permute.xlu1 %432 }
 0x240   :  { %v436_v28 = vsel %vm160_vm5, %v6454_v29, %v433_v49  ;;  %v438_v51 = vsel %vm160_vm5, %v433_v49, %v6454_v29  ;;  %539 = vmatpush1.bf16.msra.mxu1 %v498_v18 }
 0x241   :  { %v435_v52 = vpop.permute.xlu0 %434  ;;  %540 = vmatprep.subr.bf16.mxu1 %v501_v55  ;;  %v440_v59 = vmul.f32 %v436_v28, %v6180_v62  ;;  %v441_v60 = vmul.f32 %v438_v51, %v6184_v63 }
 0x242   :  { %v437_v23 = vsel %vm160_vm5, %v6456_v30, %v435_v52  ;;  %v439_v56 = vsel %vm160_vm5, %v435_v52, %v6456_v30 }
 0x243   :  { %v442_v29 = vmul.f32 %v437_v23, %v6180_v62  ;;  %v443_v0 = vmul.f32 %v439_v56, %v6184_v63  ;;  %v449_v4 = vpop.permute.xlu1 %448 }
 0x244   :  { %v452_v53 = vsel %vm8161_vm6, %v6458_v33, %v449_v4  ;;  %v454_v36 = vsel %vm8161_vm6, %v449_v4, %v6458_v33  ;;  %541 = vmatpush1.bf16.msra.mxu1 %v500_v54  ;;  %v5818_v4 = vld [vmem:[%s8131_s2 + $0x10] ss:$8 sps:$4 sm:$0xff]  }
 0x245   :  { %v451_v55 = vpop.permute.xlu0 %450  ;;  %v503_v30 = vpack.c.bf16 %v443_v0, %v441_v60  ;;  %v502_v5 = vpack.c.bf16 %v442_v29, %v440_v59  ;;  %v456_v7 = vmul.f32 %v452_v53, %v6210_v15  ;;  %v457_v19 = vmul.f32 %v454_v36, %v6214_v16  ;;  %v589_v53 = vld [vmem:[%s8133_s3 + $0x140] sm:$0xff]  ;;  %v590_v36 = vld [vmem:[%s8133_s3 + $0x150] sm:$0xff] }
 0x246   :  { %v453_v25 = vsel %vm8161_vm6, %v6460_v31, %v451_v55  ;;  %v455_v6 = vsel %vm8161_vm6, %v451_v55, %v6460_v31  ;;  %v5356_v55 = vpack.c.bf16 %v590_v36, %v589_v53  ;;  %vm2273_vm6 = vcmask 39936  }
 0x247   :  { %v458_v33 = vmul.f32 %v453_v25, %v6210_v15  ;;  %v459_v50 = vmul.f32 %v455_v6, %v6214_v16  ;;  %v465_v37 = vpop.permute.xlu1 %464  ;;  %542 = vmatprep.subr.bf16.mxu1 %v503_v30 }
 0x248   :  { %v468_v54 = vsel %vm8160_vm7, %v6462_v32, %v465_v37  ;;  %v470_v22 = vsel %vm8160_vm7, %v465_v37, %v6462_v32  ;;  %543 = vmatpush1.bf16.msra.mxu1 %v502_v5 }
 0x249   :  { %v467_v31 = vpop.permute.xlu0 %466  ;;  %v505_v21 = vpack.c.bf16 %v459_v50, %v457_v19  ;;  %v504_v24 = vpack.c.bf16 %v458_v33, %v456_v7  ;;  %v472_v12 = vmul.f32 %v468_v54, %v6234_v44  ;;  %v473_v13 = vmul.f32 %v470_v22, %v6238_v46 }
 0x24a   :  { %v469_v8 = vsel %vm8160_vm7, %v6464_v38, %v467_v31  ;;  %v471_v9 = vsel %vm8160_vm7, %v467_v31, %v6464_v38  ;;  %vm2264_vm7 = vcmask 23552  }
 0x24b   :  { %v474_v17 = vmul.f32 %v469_v8, %v6234_v44  ;;  %v475_v32 = vmul.f32 %v471_v9, %v6238_v46  ;;  %v481_v47 = vpop.permute.xlu1 %480  ;;  %544 = vmatprep.subr.bf16.mxu1 %v505_v21 }
 0x24c   :  { %v484_v18 = vsel %vm8151_vm8, %v477_v26, %v481_v47  ;;  %v486_v49 = vsel %vm8151_vm8, %v481_v47, %v477_v26  ;;  %545 = vmatpush1.bf16.msra.mxu1 %v504_v24 }
 0x24d   :  { %v483_v28 = vpop.permute.xlu0 %482  ;;  %v507_v51 = vpack.c.bf16 %v475_v32, %v473_v13  ;;  %v506_v38 = vpack.c.bf16 %v474_v17, %v472_v12  ;;  %v488_v56 = vmul.f32 %v6256_v1, %v484_v18  ;;  %v489_v59 = vmul.f32 %v6261_v3, %v486_v49  ;;  %v704_v49 = vld [vmem:[%s8133_s3 + $0x20] sm:$0xff] }
 0x24e   :  { %v485_v52 = vsel %vm8151_vm8, %v479_v43, %v483_v28  ;;  %v487_v23 = vsel %vm8151_vm8, %v483_v28, %v479_v43  ;;  %v605_v43 = vld [vmem:[%s8133_s3 + $0x240] sm:$0xff] }
 0x24f   :  { %v490_v60 = vmul.f32 %v6256_v1, %v485_v52  ;;  %v491_v29 = vmul.f32 %v6261_v3, %v487_v23  ;;  %546 = vmatprep.subr.bf16.mxu1 %v507_v51  ;;  %v606_v1 = vld [vmem:[%s8133_s3 + $0x250] sm:$0xff] }
 0x250   :  { %547 = vmatpush1.bf16.msra.mxu1 %v506_v38  ;;  %v5354_v3 = vpack.c.bf16 %v606_v1, %v605_v43  ;;  %v732_v38 = vrot.slane %v704_v49, %v6099_v48 }
 0x251   :  { %v509_v26 = vpack.c.bf16 %v491_v29, %v489_v59  ;;  %v508_v0 = vpack.c.bf16 %v490_v60, %v488_v56  ;;  %v742_v56 = vrot.slane %v704_v49, %v6115_v61  ;;  %v752_v59 = vrot.slane %v704_v49, %v6139_v14 }
 0x252   :  { %5355 = vmatprep.subr.bf16.mxu0 %v5354_v3  ;;  %v762_v60 = vrot.slane %v704_v49, %v6163_v45  ;;  %v772_v29 = vrot.slane %v704_v49, %v6190_v2 }
 0x253   :  { %548 = vmatprep.subr.bf16.mxu1 %v509_v26  ;;  %5357 = vmatpush3.bf16.msra.mxu0 %v5356_v55  ;;  %v782_v26 = vrot.slane %v704_v49, %v6217_v20 }
 0x254   :  { %549 = vmatpush1.bf16.msra.mxu1 %v508_v0  ;;  %v4920_v0 = vld [vmem:[%s8133_s3 + $0x30] ss:$0 sm:$0xff] }
 0x255   :  { %930 = vmatprep.subr.bf16.mxu1 %v8154_v27 }
 0x257   :  { %565 = vmatmul.mubr.bf16.vlgmr.msra.gmra.mrb[0].mxu1 %v5818_v4  ;;  %v722_v4 = vrot.slane %v704_v49, %v6069_v35 }
 0x25c   :  { %v513_v5 = vpop.permute.xlu1 %512 }
 0x25e   :  { %v518_v19 = vpop.permute.xlu0 %517 }
 0x260   :  { %v689_v24 = vpop.permute.xlu1 %688 }
 0x262   :  { %v694_v32 = vpop.permute.xlu0 %693 }
 0x32a   :  { %v566_v30 = vpop.f32.mrb[0].mxu1 }
 0x32b   :  { %v568_v25 = vpop.f32.mrb[1].mxu1  ;;  %v567_v33 = vadd.f32 %v566_v30, %v513_v5 }
 0x32c   :  { %v569_v6 = vadd.f32 %v568_v25, %v513_v5  ;;  %v570_v7 = vpop.f32.mrb[2].mxu1 }
 0x32d   :  { %v572_v50 = vpop.f32.mrb[3].mxu1  ;;  %v571_v54 = vadd.f32 %v570_v7, %v518_v19 }
 0x32e   :  { %v573_v37 = vadd.f32 %v572_v50, %v518_v19  ;;  %671 = vmatprep.mubr.f32.mxu0 %v569_v6 }
 0x32f   :  { %672 = vmatmul.mubr.f32.vlgmr.msra.gmra.mrb[4].mxu0 %v567_v33 }
 0x330   :  { %676 = vmatprep.mubr.f32.mxu0 %v573_v37 }
 0x333   :  { %677 = vmatmul.mubr.f32.gmra.mrb[6].mxu0 %v571_v54 }
 0x402   :  { %v5049_v22 = vpop.f32.mrb[4].mxu0 }
 0x403   :  { %v5050_v31 = vpop.f32.mrb[5].mxu0 }
 0x404   :  { %v5051_v21 = vadd.f32 %v5050_v31, %v5049_v22 }
 0x406   :  { %vm684_vm13 = vcmp.ge.f32.partialorder %v5051_v21, 0.0  ;;  %v696_v8 = vmul.f32 %v5051_v21, %v689_v24  ;;  %v5052_v9 = vpop.f32.mrb[6].mxu0 }
 0x407   :  { %v5053_v12 = vpop.f32.mrb[7].mxu0 }
 0x408   :  { %v6596_v13 = vsel %vm684_vm13, %v5051_v21, %v696_v8  ;;  %v5054_v17 = vadd.f32 %v5053_v12, %v5052_v9  ;;  %vm5924_vm13 = vmmov 0  }
 0x409   :  { %707 = vrot.lane.b32.xlu1 %v6596_v13, %s5898_s30 }
 0x40a   :  { %vm685_vm14 = vcmp.ge.f32.partialorder %v5054_v17, 0.0  ;;  %v697_v47 = vmul.f32 %v5054_v17, %v694_v32 }
 0x40c   :  { %v6600_v18 = vsel %vm685_vm14, %v5054_v17, %v697_v47  ;;  %vm1523_vm14 = vcmask 1043456  }
 0x40d   :  { %710 = vrot.lane.b32.xlu0 %v6600_v18, %s5898_s30  ;;  %v5534_v8 = vpack.i.bf16 %v6600_v18, %v6596_v13 }
 0x47b   :  { %v708_v28 = vpop.permute.xlu1 %707 }
 0x47c   :  { %v709_v51 = vsel %vm706_vm15, %v708_v28, %v6596_v13 }
 0x47d   :  { %713 = vrot.lane.b32.xlu1 %v709_v51, %s5898_s30 }
 0x47f   :  { %v711_v52 = vpop.permute.xlu0 %710 }
 0x480   :  { %v712_v23 = vsel %vm706_vm15, %v711_v52, %v6600_v18 }
 0x481   :  { %715 = vrot.lane.b32.xlu0 %v712_v23, %s5898_s30  ;;  %734 = vrot.lane.b32.xlu1 %v732_v38, %s5899_s8  ;;  %s5914_s8 = smov 12  }
 0x485   :  { %744 = vrot.lane.b32.xlu0 %v742_v56, %s5900_s9  ;;  %754 = vrot.lane.b32.xlu1 %v752_v59, %s5901_s10  ;;  %s5916_s9 = smov 3   ;;  %s8167_s10 = smov 46  }
 0x489   :  { %764 = vrot.lane.b32.xlu0 %v762_v60, %s5892_s25  ;;  %774 = vrot.lane.b32.xlu1 %v772_v29, %s5902_s11 }
 0x48d   :  { %784 = vrot.lane.b32.xlu0 %v782_v26, %s5903_s14  ;;  %794 = vrot.lane.b32.xlu1 %v4920_v0, %s5904_s15  ;;  %s5918_s15 = smov 5  }
 0x491   :  { %724 = vrot.lane.b32.xlu0 %v722_v4, %s5905_s16 }
 0x4ef   :  { %v714_v43 = vpop.permute.xlu1 %713 }
 0x4f0   :  { %v717_v1 = vsel %vm706_vm15, %v714_v43, %v6596_v13 }
 0x4f3   :  { %v716_v3 = vpop.permute.xlu0 %715  ;;  %v6629_v53 = vpop.permute.xlu1 %734 }
 0x4f4   :  { %v718_v36 = vsel %vm706_vm15, %v716_v3, %v6600_v18  ;;  %v737_v55 = vmul.f32 %v6629_v53, %v717_v1 }
 0x4f5   :  { %v738_v30 = vmul.f32 %v6629_v53, %v718_v36 }
 0x4f7   :  { %v6635_v5 = vpop.permute.xlu0 %744  ;;  %v6637_v25 = vpop.permute.xlu1 %754  ;;  %v5519_v6 = vpack.i.bf16 %v738_v30, %v737_v55 }
 0x4f8   :  { %v747_v7 = vmul.f32 %v6635_v5, %v717_v1  ;;  %v748_v19 = vmul.f32 %v6635_v5, %v718_v36  ;;  %v757_v33 = vmul.f32 %v6637_v25, %v717_v1  ;;  %v758_v50 = vmul.f32 %v6637_v25, %v718_v36 }
 0x4f9   :  { %5520 = vrot.lane.b32.xlu1 %v5519_v6, %s5893_s26 }
 0x4fa   :  { %v5524_v37 = vpack.i.bf16 %v748_v19, %v747_v7  ;;  %v5529_v54 = vpack.i.bf16 %v758_v50, %v757_v33 }
 0x4fb   :  { %v6644_v22 = vpop.permute.xlu0 %764  ;;  %v6646_v31 = vpop.permute.xlu1 %774 }
 0x4fc   :  { %5525 = vrot.lane.b32.xlu0 %v5524_v37, %s5906_s17  ;;  %v767_v21 = vmul.f32 %v6644_v22, %v717_v1  ;;  %v768_v24 = vmul.f32 %v6644_v22, %v718_v36  ;;  %v777_v12 = vmul.f32 %v6646_v31, %v717_v1  ;;  %v778_v17 = vmul.f32 %v6646_v31, %v718_v36 }
 0x4fd   :  { %5530 = vrot.lane.b32.xlu1 %v5529_v54, %s5907_s18 }
 0x4fe   :  { %v5539_v9 = vpack.i.bf16 %v768_v24, %v767_v21  ;;  %v5544_v51 = vpack.i.bf16 %v778_v17, %v777_v12 }
 0x4ff   :  { %v6656_v32 = vpop.permute.xlu0 %784  ;;  %v6658_v47 = vpop.permute.xlu1 %794 }
 0x500   :  { %5535 = vrot.lane.b32.xlu0 %v5534_v8, %s5905_s16  ;;  %v787_v49 = vmul.f32 %v6656_v32, %v717_v1  ;;  %v788_v28 = vmul.f32 %v6656_v32, %v718_v36  ;;  %v797_v52 = vmul.f32 %v6658_v47, %v717_v1  ;;  %v798_v23 = vmul.f32 %v6658_v47, %v718_v36 }
 0x501   :  { %5540 = vrot.lane.b32.xlu1 %v5539_v9, %s5908_s19 }
 0x502   :  { %v5549_v38 = vpack.i.bf16 %v788_v28, %v787_v49  ;;  %v5554_v29 = vpack.i.bf16 %v798_v23, %v797_v52 }
 0x503   :  { %v6666_v56 = vpop.permute.xlu0 %724 }
 0x504   :  { %5545 = vrot.lane.b32.xlu0 %v5544_v51, %s8149_s20  ;;  %v727_v59 = vmul.f32 %v6666_v56, %v717_v1  ;;  %v728_v60 = vmul.f32 %v6666_v56, %v718_v36  ;;  %s5925_s20 = smov 2  }
 0x505   :  { %5550 = vrot.lane.b32.xlu1 %v5549_v38, %s5910_s21 }
 0x506   :  { %v863_v26 = vpack.c.bf16 %v728_v60, %v727_v59 }
 0x508   :  { %5555 = vrot.lane.b32.xlu0 %v5554_v29, %s8147_s22 }
 0x509   :  { %900 = vrot.lane.b32.xlu1 %v863_v26, %s8145_s29 }
 0x56b   :  { %v5521_v0 = vpop.permute.xlu1 %5520 }
 0x56c   :  { %v5523_v4 = vunpack.i.h.bf16 %v5521_v0  ;;  %v5522_v43 = vunpack.i.l.bf16 %v5521_v0 }
 0x56e   :  { %v5526_v3 = vpop.permute.xlu0 %5525  ;;  %v864_v55 = vpack.c.bf16 %v5523_v4, %v5522_v43  ;;  %v702_v43 = vld [vmem:[%s8132_s1 + $0x40] sm:$0xff] }
 0x56f   :  { %v5528_v30 = vunpack.i.h.bf16 %v5526_v3  ;;  %v5527_v1 = vunpack.i.l.bf16 %v5526_v3  ;;  %v5531_v6 = vpop.permute.xlu1 %5530  ;;  %v5821_v3 = vld [vmem:[%s8131_s2 + $0x24] ss:$8 sps:$4 sm:$0xff]  }
 0x570   :  { %v5533_v36 = vunpack.i.h.bf16 %v5531_v6  ;;  %v5532_v7 = vunpack.i.l.bf16 %v5531_v6  ;;  %902 = vrot.lane.b32.xlu0 %v864_v55, %s8145_s29  ;;  %v703_v55 = vld [vmem:[%s8132_s1 + $0x48] sm:$0xff]  ;;  %4923 = vmatprep.mubr.msk.bf16.mxu1 %vm289_vm0, %v5821_v3  ;;  %v971_v6 = vld [vmem:[%s8133_s3 + $0x260] sm:$0xff] }
 0x571   :  { %v865_v19 = vpack.c.bf16 %v5528_v30, %v5527_v1  ;;  %v1061_v30 = vld [vmem:[%s8132_s1 + $0x50] sm:$0xff]  ;;  %v1062_v1 = vld [vmem:[%s8132_s1 + $0x58] sm:$0xff] }
 0x572   :  { %v5536_v33 = vpop.permute.xlu0 %5535  ;;  %v866_v50 = vpack.c.bf16 %v5533_v36, %v5532_v7  ;;  %v972_v36 = vld [vmem:[%s8133_s3 + $0x270] sm:$0xff]  ;;  %v973_v7 = vld [vmem:[%s8133_s3 + $0x280] sm:$0xff] }
 0x573   :  { %v5538_v37 = vunpack.i.h.bf16 %v5536_v33  ;;  %v5537_v54 = vunpack.i.l.bf16 %v5536_v33  ;;  %904 = vrot.lane.b32.xlu1 %v865_v19, %s8145_s29  ;;  %v5541_v21 = vpop.permute.xlu1 %5540  ;;  %v5358_v19 = vpack.c.bf16 %v972_v36, %v971_v6  ;;  %v974_v33 = vld [vmem:[%s8133_s3 + $0x290] sm:$0xff] }
 0x574   :  { %v5543_v24 = vunpack.i.h.bf16 %v5541_v21  ;;  %v5542_v8 = vunpack.i.l.bf16 %v5541_v21  ;;  %906 = vrot.lane.b32.xlu0 %v866_v50, %s8145_s29  ;;  %v5362_v50 = vpack.c.bf16 %v974_v33, %v973_v7 }
 0x575   :  { %v867_v9 = vpack.c.bf16 %v5538_v37, %v5537_v54  ;;  %v975_v37 = vld [vmem:[%s8133_s3 + $0x2a0] sm:$0xff]  ;;  %v976_v54 = vld [vmem:[%s8133_s3 + $0x2b0] sm:$0xff]  ;;  %5359 = vmatprep.subr.bf16.mxu0 %v5358_v19 }
 0x576   :  { %v5546_v12 = vpop.permute.xlu0 %5545  ;;  %v868_v17 = vpack.c.bf16 %v5543_v24, %v5542_v8  ;;  %5361 = vmatpush3.bf16.msra.mxu0 %v5358_v19  ;;  %v5366_v21 = vpack.c.bf16 %v976_v54, %v975_v37  ;;  %v1083_v37 = vld [vmem:[%s8133_s3 + $0x40] sm:$0xff] }
 0x577   :  { %v5548_v49 = vunpack.i.h.bf16 %v5546_v12  ;;  %v5547_v28 = vunpack.i.l.bf16 %v5546_v12  ;;  %908 = vrot.lane.b32.xlu1 %v867_v9, %s8145_s29  ;;  %v5551_v51 = vpop.permute.xlu1 %5550  ;;  %5363 = vmatprep.subr.bf16.mxu0 %v5362_v50 }
 0x578   :  { %v5553_v38 = vunpack.i.h.bf16 %v5551_v51  ;;  %v5552_v52 = vunpack.i.l.bf16 %v5551_v51  ;;  %910 = vrot.lane.b32.xlu0 %v868_v17, %s8145_s29 }
 0x579   :  { %v869_v23 = vpack.c.bf16 %v5548_v49, %v5547_v28 }
 0x57a   :  { %v870_v59 = vpack.c.bf16 %v5553_v38, %v5552_v52  ;;  %v5556_v60 = vpop.permute.xlu0 %5555  ;;  %5365 = vmatpush3.bf16.msra.mxu0 %v5362_v50  ;;  %v5823_v38 = vld [vmem:[%s8131_s2 + $0x20] ss:$8 sps:$4 sm:$0xff]  }
 0x57b   :  { %v5558_v29 = vunpack.i.h.bf16 %v5556_v60  ;;  %v5557_v26 = vunpack.i.l.bf16 %v5556_v60  ;;  %912 = vrot.lane.b32.xlu1 %v869_v23, %s8145_s29  ;;  %v901_v0 = vpop.permute.xlu1 %900  ;;  %5367 = vmatprep.subr.bf16.mxu0 %v5366_v21  ;;  %v977_v52 = vld [vmem:[%s8133_s3 + $0x2c0] sm:$0xff]  ;;  %v978_v23 = vld [vmem:[%s8133_s3 + $0x2d0] sm:$0xff] }
 0x57c   :  { %931 = vmatpush1.bf16.msra.mxu1 %v901_v0  ;;  %914 = vrot.lane.b32.xlu0 %v870_v59, %s8145_s29  ;;  %v5370_v59 = vpack.c.bf16 %v978_v23, %v977_v52 }
 0x57d   :  { %v871_v4 = vpack.c.bf16 %v5558_v29, %v5557_v26  ;;  %932 = vmatprep.subr.bf16.mxu1 %v8154_v27 }
 0x57e   :  { %5369 = vmatpush3.bf16.msra.mxu0 %v5366_v21 }
 0x57f   :  { %916 = vrot.lane.b32.xlu1 %v871_v4, %s8145_s29  ;;  %5371 = vmatprep.subr.bf16.mxu0 %v5370_v59 }
 0x580   :  { %874 = vperm.xlu0 %5517, %v702_v43  }
 0x582   :  { %5373 = vmatpush3.bf16.msra.mxu0 %v5370_v59 }
 0x583   :  { %879 = vperm.xlu1 %5518, %v703_v55  }
 0x584   :  { %1067 = vperm.xlu0 %5517, %v1061_v30  }
 0x587   :  { %1072 = vperm.xlu1 %5518, %v1062_v1  }
 0x5e2   :  { %v903_v24 = vpop.permute.xlu0 %902 }
 0x5e3   :  { %933 = vmatpush1.bf16.msra.mxu1 %v903_v24 }
 0x5e4   :  { %934 = vmatprep.subr.bf16.mxu1 %v8154_v27 }
 0x5e5   :  { %v905_v8 = vpop.permute.xlu1 %904 }
 0x5e6   :  { %v907_v9 = vpop.permute.xlu0 %906 }
 0x5e7   :  { %935 = vmatpush1.bf16.msra.mxu1 %v905_v8 }
 0x5e8   :  { %936 = vmatprep.subr.bf16.mxu1 %v8154_v27 }
 0x5e9   :  { %v909_v12 = vpop.permute.xlu1 %908 }
 0x5ea   :  { %v911_v17 = vpop.permute.xlu0 %910 }
 0x5eb   :  { %937 = vmatpush1.bf16.msra.mxu1 %v907_v9  ;;  %v1121_v9 = vrot.slane %v1083_v37, %v6115_v61  ;;  %v1151_v61 = vrot.slane %v1083_v37, %v6190_v2 }
 0x5ec   :  { %938 = vmatprep.subr.bf16.mxu1 %v8154_v27 }
 0x5ed   :  { %v913_v49 = vpop.permute.xlu1 %912 }
 0x5ee   :  { %v915_v28 = vpop.permute.xlu0 %914 }
 0x5ef   :  { %939 = vmatpush1.bf16.msra.mxu1 %v909_v12  ;;  %v1111_v12 = vrot.slane %v1083_v37, %v6099_v48  ;;  %v1101_v48 = vrot.slane %v1083_v37, %v6069_v35 }
 0x5f0   :  { %940 = vmatprep.subr.bf16.mxu1 %v8154_v27 }
 0x5f1   :  { %v917_v51 = vpop.permute.xlu1 %916 }
 0x5f3   :  { %941 = vmatpush1.bf16.msra.mxu1 %v911_v17  ;;  %v1141_v17 = vrot.slane %v1083_v37, %v6163_v45  ;;  %v4926_v45 = vld [vmem:[%s8133_s3 + $0x50] ss:$0 sm:$0xff] }
 0x5f4   :  { %942 = vmatprep.subr.bf16.mxu1 %v8154_v27 }
 0x5f7   :  { %943 = vmatpush1.bf16.msra.mxu1 %v913_v49  ;;  %v1131_v49 = vrot.slane %v1083_v37, %v6139_v14 }
 0x5f8   :  { %944 = vmatprep.subr.bf16.mxu1 %v8154_v27 }
 0x5fb   :  { %945 = vmatpush1.bf16.msra.mxu1 %v915_v28  ;;  %v1161_v28 = vrot.slane %v1083_v37, %v6217_v20 }
 0x5fc   :  { %946 = vmatprep.subr.bf16.mxu1 %v8154_v27 }
 0x5ff   :  { %947 = vmatpush1.bf16.msra.mxu1 %v917_v51  ;;  %v875_v60 = vpop.permute.xlu0 %874 }
 0x600   :  { %1309 = vmatprep.subr.bf16.mxu1 %v8154_v27 }
 0x602   :  { %963 = vmatmul.mubr.bf16.vlgmr.msra.gmra.mrb[4].mxu1 %v5823_v38  ;;  %v880_v4 = vpop.permute.xlu1 %879 }
 0x603   :  { %v1068_v6 = vpop.permute.xlu0 %1067 }
 0x606   :  { %v1073_v30 = vpop.permute.xlu1 %1072 }
 0x6d5   :  { %v964_v29 = vpop.f32.mrb[4].mxu1 }
 0x6d6   :  { %v965_v26 = vadd.f32 %v964_v29, %v875_v60  ;;  %v966_v0 = vpop.f32.mrb[5].mxu1 }
 0x6d7   :  { %v967_v43 = vpop.f32.mrb[6].mxu1 }
 0x6d8   :  { %v968_v3 = vadd.f32 %v967_v43, %v880_v4  ;;  %v969_v55 = vpop.f32.mrb[7].mxu1  ;;  %5185 = vmatprep.mubr.msk.f32.mxu0 %vm979_vm9, %v965_v26 }
 0x6da   :  { %5186 = vmatmul.mubr.msk.f32.vlgmr.msra.gmra.mrb[8].mxu0 %vm979_vm9, %v968_v3 }
 0x7ad   :  { %v5187_v1 = vpop.f32.mrb[8].mxu0 }
 0x7ae   :  { %vm1064_vm10 = vcmp.ge.f32.partialorder %v5187_v1, 0.0  ;;  %v1076_v36 = vmul.f32 %v5187_v1, %v1073_v30  ;;  %v1052_v7 = vpop.f32.mrb[9].mxu0 }
 0x7af   :  { %vm1063_vm11 = vcmp.ge.f32.partialorder %v1052_v7, 0.0  ;;  %v1075_v19 = vmul.f32 %v1068_v6, %v1052_v7 }
 0x7b0   :  { %v6736_v33 = vsel %vm1064_vm10, %v5187_v1, %v1076_v36 }
 0x7b1   :  { %v6738_v50 = vsel %vm1063_vm11, %v1052_v7, %v1075_v19  ;;  %1089 = vrot.lane.b32.xlu1 %v6736_v33, %s5890_s0  ;;  %vm1516_vm11 = vcmask 31744  }
 0x7b2   :  { %1086 = vrot.lane.b32.xlu0 %v6738_v50, %s5890_s0  ;;  %v5574_v55 = vpack.i.bf16 %v6736_v33, %v6738_v50 }
 0x823   :  { %v1090_v54 = vpop.permute.xlu1 %1089 }
 0x824   :  { %v1091_v21 = vsel %vm1085_vm12, %v1090_v54, %v6736_v33  ;;  %v1087_v24 = vpop.permute.xlu0 %1086 }
 0x825   :  { %v1088_v8 = vsel %vm1085_vm12, %v1087_v24, %v6738_v50  ;;  %1094 = vrot.lane.b32.xlu1 %v1091_v21, %s5890_s0 }
 0x826   :  { %1092 = vrot.lane.b32.xlu0 %v1088_v8, %s5890_s0 }
 0x829   :  { %1123 = vrot.lane.b32.xlu1 %v1121_v9, %s5913_s5  ;;  %s5921_s5 = smov 6  }
 0x82a   :  { %1113 = vrot.lane.b32.xlu0 %v1111_v12, %s5914_s8  ;;  %s5922_s8 = smov 117  }
 0x82d   :  { %1143 = vrot.lane.b32.xlu1 %v1141_v17, %s5892_s25 }
 0x82e   :  { %1133 = vrot.lane.b32.xlu0 %v1131_v49, %s8141_s24 }
 0x831   :  { %1163 = vrot.lane.b32.xlu1 %v1161_v28, %s5915_s28  ;;  %s8166_s28 = smov 48  }
 0x832   :  { %1153 = vrot.lane.b32.xlu0 %v1151_v61, %s5916_s9 }
 0x835   :  { %1103 = vrot.lane.b32.xlu1 %v1101_v48, %s5917_s13 }
 0x836   :  { %1173 = vrot.lane.b32.xlu0 %v4926_v45, %s5918_s15 }
 0x897   :  { %v1095_v14 = vpop.permute.xlu1 %1094 }
 0x898   :  { %v1093_v20 = vpop.permute.xlu0 %1092  ;;  %v1097_v2 = vsel %vm1085_vm12, %v1095_v14, %v6736_v33 }
 0x899   :  { %v1096_v35 = vsel %vm1085_vm12, %v1093_v20, %v6738_v50 }
 0x89b   :  { %v6771_v51 = vpop.permute.xlu1 %1123 }
 0x89c   :  { %v1126_v38 = vmul.f32 %v6771_v51, %v1096_v35  ;;  %v1127_v52 = vmul.f32 %v6771_v51, %v1097_v2  ;;  %v6775_v23 = vpop.permute.xlu0 %1113 }
 0x89d   :  { %v1116_v59 = vmul.f32 %v6775_v23, %v1096_v35  ;;  %v1117_v60 = vmul.f32 %v6775_v23, %v1097_v2 }
 0x89e   :  { %v5564_v29 = vpack.i.bf16 %v1127_v52, %v1126_v38 }
 0x89f   :  { %v6779_v26 = vpop.permute.xlu1 %1143  ;;  %v5559_v0 = vpack.i.bf16 %v1117_v60, %v1116_v59 }
 0x8a0   :  { %5565 = vrot.lane.b32.xlu1 %v5564_v29, %s5906_s17  ;;  %v6782_v4 = vpop.permute.xlu0 %1133  ;;  %v1146_v30 = vmul.f32 %v6779_v26, %v1096_v35  ;;  %v1147_v1 = vmul.f32 %v6779_v26, %v1097_v2 }
 0x8a1   :  { %v1136_v43 = vmul.f32 %v6782_v4, %v1096_v35  ;;  %v1137_v3 = vmul.f32 %v6782_v4, %v1097_v2  ;;  %5560 = vrot.lane.b32.xlu0 %v5559_v0, %s5893_s26 }
 0x8a2   :  { %v5579_v24 = vpack.i.bf16 %v1147_v1, %v1146_v30 }
 0x8a3   :  { %v6791_v6 = vpop.permute.xlu1 %1163  ;;  %v5569_v36 = vpack.i.bf16 %v1137_v3, %v1136_v43 }
 0x8a4   :  { %5575 = vrot.lane.b32.xlu1 %v5574_v55, %s5917_s13  ;;  %v6794_v7 = vpop.permute.xlu0 %1153  ;;  %v1166_v54 = vmul.f32 %v6791_v6, %v1096_v35  ;;  %v1167_v21 = vmul.f32 %v6791_v6, %v1097_v2 }
 0x8a5   :  { %v1156_v19 = vmul.f32 %v6794_v7, %v1096_v35  ;;  %v1157_v37 = vmul.f32 %v6794_v7, %v1097_v2  ;;  %5570 = vrot.lane.b32.xlu0 %v5569_v36, %s5919_s6 }
 0x8a6   :  { %v5589_v48 = vpack.i.bf16 %v1167_v21, %v1166_v54 }
 0x8a7   :  { %v5584_v8 = vpack.i.bf16 %v1157_v37, %v1156_v19  ;;  %v6801_v9 = vpop.permute.xlu1 %1103 }
 0x8a8   :  { %v6803_v12 = vpop.permute.xlu0 %1173  ;;  %v1106_v28 = vmul.f32 %v6801_v9, %v1096_v35  ;;  %v1107_v61 = vmul.f32 %v6801_v9, %v1097_v2 }
 0x8a9   :  { %v1176_v17 = vmul.f32 %v6803_v12, %v1096_v35  ;;  %v1177_v49 = vmul.f32 %v6803_v12, %v1097_v2  ;;  %5580 = vrot.lane.b32.xlu0 %v5579_v24, %s5920_s7  ;;  %5585 = vrot.lane.b32.xlu1 %v5584_v8, %s5903_s14 }
 0x8aa   :  { %v1242_v14 = vpack.c.bf16 %v1107_v61, %v1106_v28 }
 0x8ab   :  { %v5594_v45 = vpack.i.bf16 %v1177_v49, %v1176_v17 }
 0x8ad   :  { %5590 = vrot.lane.b32.xlu0 %v5589_v48, %s5902_s11  ;;  %5595 = vrot.lane.b32.xlu1 %v5594_v45, %s5921_s5 }
 0x8b1   :  { %1279 = vrot.lane.b32.xlu0 %v1242_v14, %s5922_s8 }
 0x912   :  { %v5566_v20 = vpop.permute.xlu1 %5565 }
 0x913   :  { %v5568_v38 = vunpack.i.h.bf16 %v5566_v20  ;;  %v5567_v52 = vunpack.i.l.bf16 %v5566_v20  ;;  %v5561_v59 = vpop.permute.xlu0 %5560 }
 0x914   :  { %v5563_v60 = vunpack.i.h.bf16 %v5561_v59  ;;  %v5562_v29 = vunpack.i.l.bf16 %v5561_v59 }
 0x915   :  { %v1244_v35 = vpack.c.bf16 %v5568_v38, %v5567_v52 }
 0x916   :  { %v1243_v0 = vpack.c.bf16 %v5563_v60, %v5562_v29  ;;  %v5576_v2 = vpop.permute.xlu1 %5575  ;;  %v1082_v29 = vld [vmem:[%s8132_s1 + $0x68] sm:$0xff] }
 0x917   :  { %v5578_v43 = vunpack.i.h.bf16 %v5576_v2  ;;  %v5577_v3 = vunpack.i.l.bf16 %v5576_v2  ;;  %1283 = vrot.lane.b32.xlu0 %v1244_v35, %s5922_s8  ;;  %v5571_v55 = vpop.permute.xlu0 %5570  ;;  %v1081_v35 = vld [vmem:[%s8132_s1 + $0x60] sm:$0xff]  ;;  %v1434_v2 = vld [vmem:[%s8132_s1 + $0x78] sm:$0xff] }
 0x918   :  { %v5573_v30 = vunpack.i.h.bf16 %v5571_v55  ;;  %v5572_v1 = vunpack.i.l.bf16 %v5571_v55  ;;  %1281 = vrot.lane.b32.xlu1 %v1243_v0, %s5922_s8  ;;  %v5824_v0 = vld [vmem:[%s8131_s2 + $0x34] ss:$8 sps:$4 sm:$0xff]   ;;  %v1455_v55 = vld [vmem:[%s8132_s1 + $0x80] sm:$0xff] }
 0x919   :  { %v1246_v36 = vpack.c.bf16 %v5578_v43, %v5577_v3  ;;  %v1433_v43 = vld [vmem:[%s8132_s1 + $0x70] sm:$0xff]  ;;  %4929 = vmatprep.mubr.msk.bf16.mxu1 %vm289_vm0, %v5824_v0  ;;  %v1456_v3 = vld [vmem:[%s8132_s1 + $0x88] sm:$0xff]  ;;  %v1454_v0 = vpack.c.bf16 %v6736_v33, %v6738_v50 }
 0x91a   :  { %v1245_v19 = vpack.c.bf16 %v5573_v30, %v5572_v1  ;;  %v1608_v30 = vld [vmem:[%s8132_s1 + $0x98] sm:$0xff]  ;;  %v1607_v1 = vld [vmem:[%s8132_s1 + $0x90] sm:$0xff] }
 0x91b   :  { %1287 = vrot.lane.b32.xlu0 %v1246_v36, %s5922_s8  ;;  %v5586_v37 = vpop.permute.xlu1 %5585  ;;  %v5581_v54 = vpop.permute.xlu0 %5580 }
 0x91c   :  { %v5588_v21 = vunpack.i.h.bf16 %v5586_v37  ;;  %v5587_v24 = vunpack.i.l.bf16 %v5586_v37  ;;  %v5583_v8 = vunpack.i.h.bf16 %v5581_v54  ;;  %v5582_v17 = vunpack.i.l.bf16 %v5581_v54  ;;  %1285 = vrot.lane.b32.xlu1 %v1245_v19, %s5922_s8 }
 0x91e   :  { %v1248_v49 = vpack.c.bf16 %v5588_v21, %v5587_v24  ;;  %v1247_v28 = vpack.c.bf16 %v5583_v8, %v5582_v17 }
 0x91f   :  { %v5596_v61 = vpop.permute.xlu1 %5595  ;;  %v5591_v48 = vpop.permute.xlu0 %5590 }
 0x920   :  { %v5598_v45 = vunpack.i.h.bf16 %v5596_v61  ;;  %v5597_v14 = vunpack.i.l.bf16 %v5596_v61  ;;  %v5593_v20 = vunpack.i.h.bf16 %v5591_v48  ;;  %v5592_v38 = vunpack.i.l.bf16 %v5591_v48  ;;  %1291 = vrot.lane.b32.xlu0 %v1248_v49, %s5922_s8  ;;  %1289 = vrot.lane.b32.xlu1 %v1247_v28, %s5922_s8  ;;  %v5826_v49 = vld [vmem:[%s8131_s2 + $0x30] ss:$8 sps:$4 sm:$0xff]   ;;  %v1350_v28 = vld [vmem:[%s8133_s3 + $0x2e0] sm:$0xff] }
 0x921   :  { %v1351_v61 = vld [vmem:[%s8133_s3 + $0x2f0] sm:$0xff] }
 0x922   :  { %v1250_v52 = vpack.c.bf16 %v5598_v45, %v5597_v14  ;;  %v1249_v59 = vpack.c.bf16 %v5593_v20, %v5592_v38  ;;  %v5374_v48 = vpack.c.bf16 %v1351_v61, %v1350_v28  ;;  %v8152_v45 = vmov 0.0   ;;  %v1602_v61 = vld [vmem:[%s8133_s3 + $0x320] sm:$0xff] }
 0x923   :  { %v1280_v60 = vpop.permute.xlu0 %1279 }
 0x924   :  { %1295 = vrot.lane.b32.xlu0 %v1250_v52, %s5922_s8  ;;  %1310 = vmatpush1.bf16.msra.mxu1 %v1280_v60 }
 0x925   :  { %1293 = vrot.lane.b32.xlu1 %v1249_v59, %s5922_s8  ;;  %1311 = vmatprep.subr.bf16.mxu1 %v8154_v27 }
 0x926   :  { %5375 = vmatprep.subr.bf16.mxu0 %v5374_v48 }
 0x927   :  { %5377 = vmatpush3.bf16.msra.mxu0 %v5374_v48 }
 0x928   :  { %1258 = vperm.xlu0 %5517, %v1082_v29   ;;  %5195 = vmatprep.subr.bf16.mxu0 %v8152_v45 }
 0x929   :  { %1253 = vperm.xlu1 %5518, %v1081_v35  }
 0x92c   :  { %1444 = vperm.xlu0 %5517, %v1434_v2   ;;  %v5827_v2 = vld [vmem:[%s8131_s2 + $0x40] ss:$8 sps:$4 sm:$0xff]  }
 0x92d   :  { %1439 = vperm.xlu1 %5518, %v1433_v43   ;;  %v1451_v43 = vld [vmem:[%s8133_s3 + $0x300] sm:$0xf] }
 0x930   :  { %1464 = vperm.xlu0 %5517, %v1456_v3  }
 0x931   :  { %1459 = vperm.xlu1 %5518, %v1455_v55  }
 0x934   :  { %1616 = vperm.xlu0 %5517, %v1608_v30  }
 0x935   :  { %1611 = vperm.xlu1 %5518, %v1607_v1  }
 0x989   :  { %v1284_v19 = vpop.permute.xlu0 %1283 }
 0x98a   :  { %v1282_v36 = vpop.permute.xlu1 %1281 }
 0x98b   :  { %1312 = vmatpush1.bf16.msra.mxu1 %v1282_v36 }
 0x98c   :  { %1313 = vmatprep.subr.bf16.mxu1 %v8154_v27 }
 0x98d   :  { %v1288_v54 = vpop.permute.xlu0 %1287 }
 0x98e   :  { %v1286_v37 = vpop.permute.xlu1 %1285 }
 0x98f   :  { %1314 = vmatpush1.bf16.msra.mxu1 %v1284_v19 }
 0x990   :  { %1315 = vmatprep.subr.bf16.mxu1 %v8154_v27 }
 0x992   :  { %v1290_v21 = vpop.permute.xlu1 %1289  ;;  %v1292_v24 = vpop.permute.xlu0 %1291 }
 0x993   :  { %1316 = vmatpush1.bf16.msra.mxu1 %v1286_v37 }
 0x994   :  { %1317 = vmatprep.subr.bf16.mxu1 %v8154_v27 }
 0x996   :  { %v1296_v17 = vpop.permute.xlu0 %1295 }
 0x997   :  { %1318 = vmatpush1.bf16.msra.mxu1 %v1288_v54  ;;  %v1294_v8 = vpop.permute.xlu1 %1293 }
 0x998   :  { %1319 = vmatprep.subr.bf16.mxu1 %v8154_v27 }
 0x99b   :  { %1320 = vmatpush1.bf16.msra.mxu1 %v1290_v21 }
 0x99c   :  { %1321 = vmatprep.subr.bf16.mxu1 %v8154_v27 }
 0x99f   :  { %1322 = vmatpush1.bf16.msra.mxu1 %v1292_v24 }
 0x9a0   :  { %1323 = vmatprep.subr.bf16.mxu1 %v8154_v27 }
 0x9a3   :  { %1324 = vmatpush1.bf16.msra.mxu1 %v1294_v8  ;;  %v1606_v8 = vpack.c.bf16 %v6600_v18, %v6596_v13  ;;  %v1603_v13 = vld [vmem:[%s8133_s3 + $0x330] sm:$0xff] }
 0x9a4   :  { %1325 = vmatprep.subr.bf16.mxu1 %v8154_v27  ;;  %v6900_v18 = vpack.c.bf16 %v1603_v13, %v1602_v61  ;;  %v5829_v61 = vld [vmem:[%s8131_s2 + $0x60] ss:$8 sps:$4 sm:$0xff]  }
 0x9a5   :  { %v1816_v13 = vld [vmem:[%s8132_s1 + $0xe8] sm:$0xff] }
 0x9a7   :  { %1326 = vmatpush1.bf16.msra.mxu1 %v1296_v17  ;;  %v1259_v59 = vpop.permute.xlu0 %1258 }
 0x9a8   :  { %v1254_v14 = vpop.permute.xlu1 %1253 }
 0x9aa   :  { %1342 = vmatmul.mubr.bf16.vlgmr.msra.gmra.mrb[8].mxu1 %v5826_v49  ;;  %v5828_v49 = vld [vmem:[%s8131_s2 + $0x50] ss:$8 sps:$4 sm:$0xff]  }
 0x9ab   :  { %v1445_v33 = vpop.permute.xlu0 %1444 }
 0x9ac   :  { %v1440_v3 = vpop.permute.xlu1 %1439 }
 0x9af   :  { %v1465_v48 = vpop.permute.xlu0 %1464 }
 0xa7d   :  { %v1343_v20 = vpop.f32.mrb[8].mxu1 }
 0xa7e   :  { %v1344_v38 = vadd.f32 %v1343_v20, %v1254_v14  ;;  %v1345_v52 = vpop.f32.mrb[9].mxu1  ;;  %v1460_v14 = vpop.permute.xlu1 %1459 }
 0xa7f   :  { %v1346_v60 = vpop.f32.mrb[10].mxu1 }
 0xa80   :  { %v1347_v29 = vadd.f32 %v1346_v60, %v1259_v59  ;;  %v1348_v35 = vpop.f32.mrb[11].mxu1  ;;  %5192 = vmatprep.mubr.msk.f32.mxu0 %vm289_vm0, %v1344_v38 }
 0xa82   :  { %5193 = vmatmul.mubr.msk.f32.vlgmr.msra.gmra.mrb[10].mxu0 %vm289_vm0, %v1347_v29 }
 0xa83   :  { %5196 = vmatpush3.bf16.msra.mxu0 %v1454_v0  ;;  %5197 = vmatprep.mubr.msk.bf16.mxu0 %vm5924_vm13, %v8152_v45 }
 0xa84   :  { %5201 = vmatprep.subr.msk.mxu0 %vm1523_vm14, %v1451_v43 }
 0xa86   :  { %5198 = vmatmul.mubr.msk.bf16.vlgmr.msra.gmra.mrb[12].mxu0 %vm289_vm0, %v5827_v2 }
 0xa87   :  { %5202 = vmatpush3.msk.msra.mxu0 %vm1523_vm14, %v1451_v43  ;;  %vm1779_vm14 = vcmask 15360  }
 0xa88   :  { %5206 = vmatprep.subr.bf16.mxu0 %v8152_v45 }
 0xb55   :  { %v5194_v50 = vpop.f32.mrb[10].mxu0 }
 0xb56   :  { %vm1436_vm10 = vcmp.ge.f32.partialorder %v5194_v50, 0.0  ;;  %v1448_v55 = vmul.f32 %v5194_v50, %v1445_v33  ;;  %v1424_v30 = vpop.f32.mrb[11].mxu0 }
 0xb57   :  { %vm1435_vm8 = vcmp.ge.f32.partialorder %v1424_v30, 0.0  ;;  %v1447_v1 = vmul.f32 %v1440_v3, %v1424_v30  ;;  %v1617_v3 = vpop.permute.xlu0 %1616 }
 0xb58   :  { %v1450_v36 = vsel %vm1436_vm10, %v5194_v50, %v1448_v55  ;;  %v1612_v55 = vpop.permute.xlu1 %1611  ;;  %vm2432_vm10 = vcmask 261120  }
 0xb59   :  { %v1509_v19 = vpop.f32.mrb[12].mxu0  ;;  %v1752_v37 = vsel %vm1516_vm11, %v1450_v36, 0.0  ;;  %v1449_v54 = vsel %vm1435_vm8, %v1424_v30, %v1447_v1  ;;  %vm1776_vm8 = vcmask 7168  }
 0xb5a   :  { %1753 = vadd.xlane.f32.xlu0 %v1752_v37  ;;  %v5199_v21 = vpop.f32.mrb[13].mxu0  ;;  %5203 = vmatprep.mubr.msk.f32.mxu0 %vm1516_vm11, %v1449_v54  ;;  %v1749_v24 = vsel %vm1516_vm11, %v1449_v54, 0.0  ;;  %v1510_v38 = vadd.f32 %v1509_v19, %v1460_v14  ;;  %v1820_v14 = vld [vmem:[%s8132_s1 + $0x108] sm:$0xff] }
 0xb5b   :  { %1750 = vadd.xlane.f32.xlu1 %v1749_v24  ;;  %v1512_v17 = vpop.f32.mrb[14].mxu0  ;;  %5204 = vmatmul.mubr.msk.f32.vlgmr.msra.gmra.mrb[16].mxu0 %vm1516_vm11, %v1450_v36 }
 0xb5c   :  { %5207 = vmatpush3.bf16.msra.mxu0 %v1606_v8  ;;  %5208 = vmatprep.mubr.msk.bf16.mxu0 %vm5924_vm13, %v8152_v45  ;;  %v5200_v28 = vpop.f32.mrb[15].mxu0  ;;  %v1513_v20 = vadd.f32 %v1512_v17, %v1465_v48  ;;  %v1812_v8 = vld [vmem:[%s8132_s1 + $0xc8] sm:$0xff]  ;;  %v1815_v17 = vld [vmem:[%s8132_s1 + $0xe0] sm:$0xff] }
 0xb5d   :  { %5379 = vmatprep.subr.bf16.mxu0 %v6900_v18  ;;  %v1819_v28 = vld [vmem:[%s8132_s1 + $0x100] sm:$0xff] }
 0xb5e   :  { %v1823_v48 = vld [vmem:[%s8132_s1 + $0x120] sm:$0xff] }
 0xb5f   :  { %5209 = vmatmul.mubr.msk.bf16.vlgmr.msra.gmra.mrb[20].mxu0 %vm289_vm0, %v5828_v49  ;;  %v1811_v49 = vld [vmem:[%s8132_s1 + $0xc0] sm:$0xff] }
 0xb60   :  { %5381 = vmatpush3.bf16.msra.mxu0 %v6900_v18 }
 0xc2e   :  { %v5205_v52 = vpop.f32.mrb[16].mxu0 }
 0xc2f   :  { %v1599_v59 = vadd.f32 %v5205_v52, %v1513_v20  ;;  %v1593_v60 = vpop.f32.mrb[17].mxu0  ;;  %v1813_v20 = vld [vmem:[%s8132_s1 + $0xd0] sm:$0xff]  ;;  %v1827_v52 = vld [vmem:[%s8132_s1 + $0x140] sm:$0xff] }
 0xc30   :  { %v1594_v29 = vadd.f32 %v1593_v60, %v1510_v38  ;;  %v1824_v38 = vld [vmem:[%s8132_s1 + $0x128] sm:$0xff]  ;;  %v1817_v60 = vld [vmem:[%s8132_s1 + $0xf0] sm:$0xff] }
 0xc31   :  { %v1761_v35 = vsel %vm289_vm0, %v1599_v59, 0.0 }
 0xc32   :  { %1762 = vadd.xlane.f32.xlu1 %v1761_v35  ;;  %v1661_v0 = vpop.f32.mrb[20].mxu0  ;;  %5216 = vmatprep.mubr.msk.f32.mxu0 %vm289_vm0, %v1594_v29  ;;  %v1758_v2 = vsel %vm289_vm0, %v1594_v29, 0.0  ;;  %v1828_v29 = vld [vmem:[%s8132_s1 + $0x148] sm:$0xff]  ;;  %v1821_v35 = vld [vmem:[%s8132_s1 + $0x110] sm:$0xff] }
 0xc33   :  { %1759 = vadd.xlane.f32.xlu0 %v1758_v2  ;;  %v5210_v43 = vpop.f32.mrb[21].mxu0  ;;  %5217 = vmatmul.mubr.msk.f32.vlgmr.msra.gmra.mrb[18].mxu0 %vm289_vm0, %v1599_v59  ;;  %v1662_v1 = vadd.f32 %v1661_v0, %v1612_v55  ;;  %v1814_v59 = vld [vmem:[%s8132_s1 + $0xd8] sm:$0xff]  ;;  %v1825_v2 = vld [vmem:[%s8132_s1 + $0x130] sm:$0xff] }
 0xc34   :  { %v1664_v33 = vpop.f32.mrb[22].mxu0  ;;  %5221 = vmatprep.mubr.msk.bf16.mxu0 %vm289_vm0, %v5829_v61  ;;  %v1818_v0 = vld [vmem:[%s8132_s1 + $0xf8] sm:$0xff] }
 0xc35   :  { %v5211_v50 = vpop.f32.mrb[23].mxu0  ;;  %v1665_v30 = vadd.f32 %v1664_v33, %v1617_v3  ;;  %v1822_v43 = vld [vmem:[%s8132_s1 + $0x118] sm:$0xff]  ;;  %v1829_v33 = vld [vmem:[%s8132_s1 + $0x150] sm:$0xff]  ;;  %v1807_v3 = vld [vmem:[%s8132_s1 + $0xa0] sm:$0xff] }
 0xc36   :  { %v1826_v50 = vld [vmem:[%s8132_s1 + $0x138] sm:$0xff] }
 0xc37   :  { %v1830_v55 = vld [vmem:[%s8132_s1 + $0x158] sm:$0xff] }
 0xd06   :  { %v5218_v36 = vpop.f32.mrb[18].mxu0 }
 0xd07   :  { %v1746_v19 = vadd.f32 %v5218_v36, %v1665_v30  ;;  %v1740_v37 = vpop.f32.mrb[19].mxu0  ;;  %v1809_v30 = vld [vmem:[%s8132_s1 + $0xb0] sm:$0xff]  ;;  %v1810_v36 = vld [vmem:[%s8132_s1 + $0xb8] sm:$0xff] }
 0xd08   :  { %v1741_v54 = vadd.f32 %v1740_v37, %v1662_v1  ;;  %v1808_v1 = vld [vmem:[%s8132_s1 + $0xa8] sm:$0xff]  ;;  %v1754_v37 = vpop.xlane.xlu0 %1753 }
 0xd09   :  { %v1770_v21 = vsel %vm979_vm9, %v1746_v19, 0.0  ;;  %v1751_v19 = vpop.xlane.xlu1 %1750 }
 0xd0a   :  { %1771 = vadd.xlane.f32.xlu1 %v1770_v21  ;;  %v1767_v24 = vsel %vm979_vm9, %v1741_v54, 0.0 }
 0xd0b   :  { %1768 = vadd.xlane.f32.xlu0 %v1767_v24 }
 0xd0c   :  { %v1760_v21 = vpop.xlane.xlu0 %1759 }
 0xd0d   :  { %v1763_v54 = vpop.xlane.xlu1 %1762 }
 0xd0e   :  { %v1766_v24 = vmul.f32 0.0625, %v1763_v54 }
 0xd1b   :  { %1858 = vperm.xlu1 %5518, %v1812_v8   ;;  %v1765_v8 = vmul.f32 0.0625, %v1760_v21 }
 0xd1f   :  { %1873 = vperm.xlu1 %5518, %v1815_v17   ;;  %v1757_v17 = vmul.f32 0.25, %v1754_v37 }
 0xd21   :  { %1853 = vperm.xlu0 %5517, %v1811_v49  }
 0xd23   :  { %1893 = vperm.xlu1 %5518, %v1819_v28   ;;  %v1756_v28 = vmul.f32 0.25, %v1751_v19 }
 0xd25   :  { %1878 = vperm.xlu0 %5517, %v1816_v13  }
 0xd27   :  { %1913 = vperm.xlu1 %5518, %v1823_v48   ;;  %v1778_v48 = vsel %vm1776_vm8, %v1757_v17, %v1766_v24 }
 0xd29   :  { %1898 = vperm.xlu0 %5517, %v1820_v14  }
 0xd2b   :  { %1863 = vperm.xlu1 %5518, %v1813_v20   ;;  %v1777_v20 = vsel %vm1776_vm8, %v1756_v28, %v1765_v8 }
 0xd2d   :  { %1918 = vperm.xlu0 %5517, %v1824_v38  }
 0xd2f   :  { %1933 = vperm.xlu1 %5518, %v1827_v52  }
 0xd31   :  { %1868 = vperm.xlu0 %5517, %v1814_v59  }
 0xd33   :  { %1883 = vperm.xlu1 %5518, %v1817_v60   ;;  %v5830_v60 = vld [vmem:[%s8131_s2 + $0x70] ss:$8 sps:$4 sm:$0xff]  }
 0xd35   :  { %1938 = vperm.xlu0 %5517, %v1828_v29   ;;  %v5831_v29 = vld [vmem:[%s8131_s2 + $0x80] ss:$8 sps:$4 sm:$0xff]  }
 0xd37   :  { %1903 = vperm.xlu1 %5518, %v1821_v35   ;;  %v5832_v35 = vld [vmem:[%s8131_s2 + $0x90] ss:$8 sps:$4 sm:$0xff]  }
 0xd39   :  { %1888 = vperm.xlu0 %5517, %v1818_v0   ;;  %v5833_v0 = vld [vmem:[%s8131_s2 + $0xa0] ss:$8 sps:$4 sm:$0xff]  }
 0xd3b   :  { %1923 = vperm.xlu1 %5518, %v1825_v2   ;;  %v5834_v2 = vld [vmem:[%s8131_s2 + $0xb0] ss:$8 sps:$4 sm:$0xff]  }
 0xd3d   :  { %1908 = vperm.xlu0 %5517, %v1822_v43   ;;  %v5835_v43 = vld [vmem:[%s8131_s2 + $0xc0] ss:$8 sps:$4 sm:$0xff]  }
 0xd3f   :  { %1943 = vperm.xlu1 %5518, %v1829_v33   ;;  %v5836_v33 = vld [vmem:[%s8131_s2 + $0xd0] ss:$8 sps:$4 sm:$0xff]  }
 0xd41   :  { %1928 = vperm.xlu0 %5517, %v1826_v50   ;;  %v5837_v50 = vld [vmem:[%s8131_s2 + $0xe0] ss:$8 sps:$4 sm:$0xff]  }
 0xd43   :  { %1833 = vperm.xlu1 %5518, %v1807_v3   ;;  %v5838_v3 = vld [vmem:[%s8131_s2 + $0xf0] ss:$8 sps:$4 sm:$0xff]  }
 0xd45   :  { %1948 = vperm.xlu0 %5517, %v1830_v55   ;;  %v5839_v55 = vld [vmem:[%s8131_s2 + $0x100] ss:$8 sps:$4 sm:$0xff]  }
 0xd47   :  { %1843 = vperm.xlu1 %5518, %v1809_v30   ;;  %v5840_v30 = vld [vmem:[%s8131_s2 + $0x110] ss:$8 sps:$4 sm:$0xff]  }
 0xd49   :  { %1838 = vperm.xlu0 %5517, %v1808_v1  }
 0xd4d   :  { %1848 = vperm.xlu0 %5517, %v1810_v36  }
 0xd97   :  { %v1772_v49 = vpop.xlane.xlu1 %1771 }
 0xd98   :  { %v1775_v61 = vmul.f32 0.015625, %v1772_v49  ;;  %v1769_v13 = vpop.xlane.xlu0 %1768 }
 0xd99   :  { %v1774_v14 = vmul.f32 0.015625, %v1769_v13 }
 0xd9a   :  { %v1781_v38 = vsel %vm1779_vm14, %v1778_v48, %v1775_v61 }
 0xd9b   :  { %v1780_v52 = vsel %vm1779_vm14, %v1777_v20, %v1774_v14  ;;  %v1859_v1 = vpop.permute.xlu1 %1858 }
 0xd9c   :  { %v1806_v59 = vpack.c.bf16 %v1781_v38, %v1780_v52 }
 0xd9e   :  { %5219 = vmatprep.subr.bf16.mxu0 %v1806_v59 }
 0xd9f   :  { %5220 = vmatpush3.bf16.msra.mxu0 %v1806_v59  ;;  %v1874_v19 = vpop.permute.xlu1 %1873 }
 0xda0   :  { %3206 = vmatprep.subr.bf16.mxu0 %v8154_v27  ;;  %v1854_v36 = vpop.permute.xlu0 %1853 }
 0xda2   :  { %5222 = vmatmul.mubr.msk.bf16.vlgmr.msra.gmra.mrb[24].mxu0 %vm289_vm0, %v5830_v60 }
 0xda3   :  { %5225 = vmatprep.mubr.msk.bf16.mxu0 %vm289_vm0, %v5831_v29  ;;  %v1894_v54 = vpop.permute.xlu1 %1893 }
 0xda4   :  { %v1879_v37 = vpop.permute.xlu0 %1878 }
 0xda7   :  { %v1914_v24 = vpop.permute.xlu1 %1913 }
 0xda8   :  { %v1899_v21 = vpop.permute.xlu0 %1898 }
 0xdaa   :  { %5226 = vmatmul.mubr.msk.bf16.gmra.mrb[28].mxu0 %vm289_vm0, %v5832_v35 }
 0xdab   :  { %5229 = vmatprep.mubr.msk.bf16.mxu0 %vm289_vm0, %v5833_v0  ;;  %v1864_v13 = vpop.permute.xlu1 %1863 }
 0xdac   :  { %v1919_v8 = vpop.permute.xlu0 %1918 }
 0xdaf   :  { %v7043_v52 = vpop.permute.xlu1 %1933 }
 0xdb0   :  { %v1869_v48 = vpop.permute.xlu0 %1868 }
 0xdb2   :  { %5230 = vmatmul.mubr.msk.bf16.gmra.mrb[32].mxu0 %vm289_vm0, %v5834_v2 }
 0xdb3   :  { %5233 = vmatprep.mubr.msk.bf16.mxu0 %vm289_vm0, %v5835_v43 }
 0xdb4   :  { %v1939_v35 = vpop.permute.xlu0 %1938 }
 0xdba   :  { %5234 = vmatmul.mubr.msk.bf16.gmra.mrb[36].mxu0 %vm289_vm0, %v5836_v33 }
 0xdbb   :  { %5237 = vmatprep.mubr.msk.bf16.mxu0 %vm289_vm0, %v5837_v50 }
 0xdc2   :  { %5238 = vmatmul.mubr.msk.bf16.gmra.mrb[40].mxu0 %vm289_vm0, %v5838_v3  ;;  %v1884_v3 = vpop.permute.xlu1 %1883 }
 0xdc3   :  { %5241 = vmatprep.mubr.msk.bf16.mxu0 %vm289_vm0, %v5839_v55 }
 0xdca   :  { %5242 = vmatmul.mubr.msk.bf16.gmra.mrb[44].mxu0 %vm289_vm0, %v5840_v30  ;;  %v1889_v30 = vpop.permute.xlu0 %1888 }
 0xe75   :  { %v7035_v17 = vpop.f32.mrb[24].mxu0 }
 0xe76   :  { %v7037_v49 = vpop.f32.mrb[25].mxu0 }
 0xe77   :  { %v7039_v28 = vpop.f32.mrb[26].mxu0 }
 0xe78   :  { %v7041_v61 = vpop.f32.mrb[27].mxu0 }
 0xe7d   :  { %v5227_v14 = vpop.f32.mrb[28].mxu0 }
 0xe7e   :  { %v2097_v20 = vpop.f32.mrb[29].mxu0  ;;  %v2106_v59 = vadd.f32 %v5227_v14, %v1864_v13 }
 0xe7f   :  { %v5228_v38 = vpop.f32.mrb[30].mxu0  ;;  %v2098_v0 = vadd.f32 %v2097_v20, %v1854_v36 }
 0xe80   :  { %v2109_v60 = vadd.f32 %v5228_v38, %v1869_v48  ;;  %v2100_v29 = vpop.f32.mrb[31].mxu0 }
 0xe81   :  { %v2101_v2 = vadd.f32 %v2100_v29, %v1859_v1  ;;  %v1904_v1 = vpop.permute.xlu1 %1903 }
 0xe82   :  { %v5599_v43 = vpack.i.bf16 %v2109_v60, %v2106_v59  ;;  %v1909_v59 = vpop.permute.xlu0 %1908 }
 0xe83   :  { %v5604_v33 = vpack.i.bf16 %v2101_v2, %v2098_v0 }
 0xe84   :  { %5600 = vrot.lane.b32.xlu1 %v5599_v43, %s5892_s25 }
 0xe85   :  { %v5231_v50 = vpop.f32.mrb[32].mxu0 }
 0xe86   :  { %v2113_v55 = vpop.f32.mrb[33].mxu0  ;;  %v2122_v27 = vadd.f32 %v5231_v50, %v1884_v3 }
 0xe87   :  { %v5232_v45 = vpop.f32.mrb[34].mxu0  ;;  %v2114_v13 = vadd.f32 %v2113_v55, %v1874_v19 }
 0xe88   :  { %v2125_v46 = vadd.f32 %v5232_v45, %v1889_v30  ;;  %v2116_v44 = vpop.f32.mrb[35].mxu0  ;;  %5605 = vrot.lane.b32.xlu1 %v5604_v33, %s5892_s25 }
 0xe89   :  { %v2117_v48 = vadd.f32 %v2116_v44, %v1879_v37 }
 0xe8a   :  { %v5619_v14 = vpack.i.bf16 %v2125_v46, %v2122_v27  ;;  %v1924_v27 = vpop.permute.xlu1 %1923  ;;  %v1929_v46 = vpop.permute.xlu0 %1928 }
 0xe8b   :  { %v5609_v38 = vpack.i.bf16 %v2117_v48, %v2114_v13 }
 0xe8d   :  { %v5235_v36 = vpop.f32.mrb[36].mxu0  ;;  %5610 = vrot.lane.b32.xlu0 %v5609_v38, %s5892_s25 }
 0xe8e   :  { %v2129_v20 = vpop.f32.mrb[37].mxu0  ;;  %v2138_v29 = vadd.f32 %v5235_v36, %v1904_v1  ;;  %v1944_v36 = vpop.permute.xlu1 %1943 }
 0xe8f   :  { %v5236_v60 = vpop.f32.mrb[38].mxu0  ;;  %v2130_v43 = vadd.f32 %v2129_v20, %v1894_v54  ;;  %v2296_v20 = vld [vmem:[%s8132_s1 + $0x160] sm:$0xff] }
 0xe90   :  { %v2141_v0 = vadd.f32 %v5236_v60, %v1909_v59  ;;  %v2132_v2 = vpop.f32.mrb[39].mxu0  ;;  %v1949_v59 = vpop.permute.xlu0 %1948 }
 0xe91   :  { %v2133_v50 = vadd.f32 %v2132_v2, %v1899_v21 }
 0xe92   :  { %v5624_v45 = vpack.i.bf16 %v2141_v0, %v2138_v29 }
 0xe93   :  { %v5614_v3 = vpack.i.bf16 %v2133_v50, %v2130_v43  ;;  %v5841_v43 = vld [vmem:[%s8131_s2 + $0x120] ss:$8 sps:$4 sm:$0xff]  }
 0xe94   :  { %5625 = vrot.lane.b32.xlu0 %v5624_v45, %s5925_s20  ;;  %5249 = vmatprep.mubr.msk.bf16.mxu1 %vm2432_vm10, %v5841_v43  ;;  %v2297_v45 = vld [vmem:[%s8132_s1 + $0x168] sm:$0xff] }
 0xe95   :  { %v5239_v19 = vpop.f32.mrb[40].mxu0  ;;  %5615 = vrot.lane.b32.xlu1 %v5614_v3, %s5925_s20  ;;  %v1839_v3 = vpop.permute.xlu0 %1838 }
 0xe96   :  { %v2145_v44 = vpop.f32.mrb[41].mxu0  ;;  %v2154_v33 = vadd.f32 %v5239_v19, %v1924_v27 }
 0xe97   :  { %v5240_v37 = vpop.f32.mrb[42].mxu0  ;;  %v2146_v13 = vadd.f32 %v2145_v44, %v1914_v24 }
 0xe98   :  { %v2157_v55 = vadd.f32 %v5240_v37, %v1929_v46  ;;  %v2148_v30 = vpop.f32.mrb[43].mxu0 }
 0xe99   :  { %v2149_v48 = vadd.f32 %v2148_v30, %v1919_v8  ;;  %5620 = vrot.lane.b32.xlu1 %v5619_v14, %s5892_s25  ;;  %v1849_v27 = vpop.permute.xlu0 %1848 }
 0xe9a   :  { %v5629_v38 = vpack.i.bf16 %v2157_v55, %v2154_v33 }
 0xe9b   :  { %v5634_v54 = vpack.i.bf16 %v2149_v48, %v2146_v13 }
 0xe9d   :  { %v5243_v21 = vpop.f32.mrb[44].mxu0  ;;  %5635 = vrot.lane.b32.xlu0 %v5634_v54, %s5925_s20  ;;  %5630 = vrot.lane.b32.xlu1 %v5629_v38, %s5925_s20  ;;  %v2085_v54 = vadd.f32 %v7041_v61, %v1839_v3 }
 0xe9e   :  { %v2161_v1 = vpop.f32.mrb[45].mxu0  ;;  %v2170_v29 = vadd.f32 %v5243_v21, %v1944_v36 }
 0xe9f   :  { %v5244_v60 = vpop.f32.mrb[46].mxu0  ;;  %v2162_v24 = vadd.f32 %v2161_v1, %v7043_v52  ;;  %v1834_v52 = vpop.permute.xlu1 %1833 }
 0xea0   :  { %v2173_v0 = vadd.f32 %v5244_v60, %v1949_v59  ;;  %v2164_v2 = vpop.f32.mrb[47].mxu0  ;;  %v2082_v38 = vadd.f32 %v7037_v49, %v1834_v52 }
 0xea1   :  { %v2165_v8 = vadd.f32 %v2164_v2, %v1939_v35  ;;  %2314 = vperm.xlu1 %5518, %v2296_v20  }
 0xea2   :  { %v5644_v14 = vpack.i.bf16 %v2173_v0, %v2170_v29  ;;  %v2093_v0 = vadd.f32 %v7039_v28, %v1849_v27 }
 0xea3   :  { %v5639_v50 = vpack.i.bf16 %v2165_v8, %v2162_v24  ;;  %v1844_v35 = vpop.permute.xlu1 %1843 }
 0xea4   :  { %v2090_v30 = vadd.f32 %v7035_v17, %v1844_v35 }
 0xea5   :  { %5640 = vrot.lane.b32.xlu0 %v5639_v50, %s5916_s9 }
 0xea9   :  { %5645 = vrot.lane.b32.xlu0 %v5644_v14, %s5916_s9 }
 0xead   :  { %2319 = vperm.xlu0 %5517, %v2297_v45  }
 0xef6   :  { %v5601_v19 = vpop.permute.xlu1 %5600 }
 0xef7   :  { %v5603_v20 = vunpack.i.h.bf16 %v5601_v19  ;;  %v5602_v59 = vunpack.i.l.bf16 %v5601_v19 }
 0xef9   :  { %v2258_v45 = vsel %vm1776_vm8, %v2090_v30, %v5602_v59  ;;  %v2259_v52 = vsel %vm1776_vm8, %v2093_v0, %v5603_v20 }
 0xefa   :  { %v5606_v44 = vpop.permute.xlu1 %5605 }
 0xefb   :  { %v5608_v13 = vunpack.i.h.bf16 %v5606_v44  ;;  %v5607_v48 = vunpack.i.l.bf16 %v5606_v44 }
 0xefd   :  { %v2256_v17 = vsel %vm1776_vm8, %v2082_v38, %v5607_v48  ;;  %v2257_v8 = vsel %vm1776_vm8, %v2085_v54, %v5608_v13 }
 0xeff   :  { %v5611_v46 = vpop.permute.xlu0 %5610 }
 0xf00   :  { %v5613_v21 = vunpack.i.h.bf16 %v5611_v46  ;;  %v5612_v36 = vunpack.i.l.bf16 %v5611_v46 }
 0xf02   :  { %v2261_v61 = vsel %vm1779_vm14, %v2257_v8, %v5613_v21  ;;  %v2260_v43 = vsel %vm1779_vm14, %v2256_v17, %v5612_v36  ;;  %v5842_v8 = vld [vmem:[%s8131_s2 + $0x130] ss:$8 sps:$4 sm:$0xff]  }
 0xf06   :  { %v5626_v33 = vpop.permute.xlu0 %5625 }
 0xf07   :  { %v5616_v37 = vpop.permute.xlu1 %5615  ;;  %v5628_v30 = vunpack.i.h.bf16 %v5626_v33  ;;  %v5627_v38 = vunpack.i.l.bf16 %v5626_v33 }
 0xf08   :  { %v5618_v60 = vunpack.i.h.bf16 %v5616_v37  ;;  %v5617_v29 = vunpack.i.l.bf16 %v5616_v37 }
 0xf0a   :  { %v2265_v28 = vsel %vm2264_vm7, %v2260_v43, %v5617_v29  ;;  %v2266_v35 = vsel %vm2264_vm7, %v2261_v61, %v5618_v60 }
 0xf0b   :  { %v5621_v55 = vpop.permute.xlu1 %5620 }
 0xf0c   :  { %v5623_v2 = vunpack.i.h.bf16 %v5621_v55  ;;  %v5622_v24 = vunpack.i.l.bf16 %v5621_v55 }
 0xf0e   :  { %v2262_v19 = vsel %vm1779_vm14, %v2258_v45, %v5622_v24  ;;  %v2263_v27 = vsel %vm1779_vm14, %v2259_v52, %v5623_v2 }
 0xf0f   :  { %v5636_v1 = vpop.permute.xlu0 %5635  ;;  %v5631_v50 = vpop.permute.xlu1 %5630  ;;  %v2267_v60 = vsel %vm2264_vm7, %v2262_v19, %v5627_v38  ;;  %v2268_v29 = vsel %vm2264_vm7, %v2263_v27, %v5628_v30 }
 0xf10   :  { %v5638_v14 = vunpack.i.h.bf16 %v5636_v1  ;;  %v5637_v49 = vunpack.i.l.bf16 %v5636_v1  ;;  %v5633_v37 = vunpack.i.h.bf16 %v5631_v50  ;;  %v5632_v55 = vunpack.i.l.bf16 %v5631_v50 }
 0xf12   :  { %v2269_v13 = vsel %vm1516_vm11, %v2265_v28, %v5637_v49  ;;  %v2270_v48 = vsel %vm1516_vm11, %v2266_v35, %v5638_v14  ;;  %v2271_v0 = vsel %vm1516_vm11, %v2267_v60, %v5632_v55  ;;  %v2272_v2 = vsel %vm1516_vm11, %v2268_v29, %v5633_v37  ;;  %v2579_v37 = vld [vmem:[%s8132_s1 + $0x298] sm:$0xff] }
 0xf13   :  { %v8164_v14 = vmov 0  }
 0xf17   :  { %v5641_v3 = vpop.permute.xlu0 %5640 }
 0xf18   :  { %v5643_v44 = vunpack.i.h.bf16 %v5641_v3  ;;  %v5642_v46 = vunpack.i.l.bf16 %v5641_v3 }
 0xf1a   :  { %v2274_v54 = vsel %vm2273_vm6, %v2269_v13, %v5642_v46  ;;  %v2275_v21 = vsel %vm2273_vm6, %v2270_v48, %v5643_v44  ;;  %v2578_v44 = vld [vmem:[%s8132_s1 + $0x290] sm:$0xff] }
 0xf1b   :  { %v5646_v36 = vpop.permute.xlu0 %5645  ;;  %v2294_v1 = vpack.c.bf16 %v2275_v21, %v2274_v54 }
 0xf1c   :  { %v5648_v20 = vunpack.i.h.bf16 %v5646_v36  ;;  %v5647_v59 = vunpack.i.l.bf16 %v5646_v36  ;;  %v5843_v36 = vld [vmem:[%s8131_s2 + $0x140] ss:$8 sps:$4 sm:$0xff]  }
 0xf1d   :  { %5245 = vmatprep.subr.bf16.mxu1 %v2294_v1 }
 0xf1e   :  { %5246 = vmatpush3.bf16.msra.mxu1 %v2294_v1  ;;  %v2276_v33 = vsel %vm2273_vm6, %v2271_v0, %v5647_v59  ;;  %v2277_v24 = vsel %vm2273_vm6, %v2272_v2, %v5648_v20  ;;  %v5844_v1 = vld [vmem:[%s8131_s2 + $0x150] ss:$8 sps:$4 sm:$0xff]   ;;  %v5845_v20 = vld [vmem:[%s8131_s2 + $0x160] ss:$8 sps:$4 sm:$0xff]  }
 0xf1f   :  { %v2295_v17 = vpack.c.bf16 %v2277_v24, %v2276_v33  ;;  %v5846_v59 = vld [vmem:[%s8131_s2 + $0x170] ss:$8 sps:$4 sm:$0xff]  }
 0xf20   :  { %v2315_v61 = vpop.permute.xlu1 %2314 }
 0xf21   :  { %5247 = vmatprep.subr.bf16.mxu1 %v2295_v17 }
 0xf22   :  { %5248 = vmatpush3.bf16.msra.mxu1 %v2295_v17 }
 0xf23   :  { %2743 = vmatprep.subr.bf16.mxu1 %v8164_v14 }
 0xf25   :  { %5250 = vmatmul.mubr.msk.bf16.vlgmr.msra.gmra.mrb[12].mxu1 %vm2432_vm10, %v5842_v8 }
 0xf26   :  { %5253 = vmatprep.mubr.msk.bf16.mxu1 %vm2432_vm10, %v5843_v36 }
 0xf2c   :  { %v2320_v52 = vpop.permute.xlu0 %2319 }
 0xf2d   :  { %5254 = vmatmul.mubr.msk.bf16.gmra.mrb[16].mxu1 %vm2432_vm10, %v5844_v1 }
 0xf2e   :  { %5257 = vmatprep.mubr.msk.bf16.mxu1 %vm2432_vm10, %v5845_v20 }
 0xf35   :  { %5258 = vmatmul.mubr.msk.bf16.gmra.mrb[20].mxu1 %vm2432_vm10, %v5846_v59 }
 0xff8   :  { %v7091_v49 = vpop.f32.mrb[12].mxu1 }
 0xff9   :  { %v2491_v43 = vpop.f32.mrb[13].mxu1 }
 0xffa   :  { %v2492_v50 = vadd.f32 %v2491_v43, %v2315_v61  ;;  %v7093_v45 = vpop.f32.mrb[14].mxu1 }
 0xffb   :  { %v2494_v28 = vpop.f32.mrb[15].mxu1 }
 0xffc   :  { %v2495_v35 = vadd.f32 %v2494_v28, %v2320_v52  ;;  %2582 = vperm.xlu1 %5518, %v2492_v50   ;;  %v2784_v3 = vmul.f32 %v2492_v50, %v2492_v50 }
 0xffe   :  { %v2785_v19 = vmul.f32 %v2495_v35, %v2495_v35  ;;  %2587 = vperm.xlu0 %5517, %v2495_v35  }
0x1000   :  { %v7095_v27 = vpack.c.bf16 %v2785_v19, %v2784_v3 }
0x107b   :  { %v2583_v46 = vpop.permute.xlu1 %2582 }
0x107c   :  { %v2590_v55 = vmul.f32 %v2583_v46, %v2578_v44 }
0x107d   :  { %v2588_v13 = vpop.permute.xlu0 %2587 }
0x107e   :  { %v2591_v48 = vmul.f32 %v2588_v13, %v2579_v37  ;;  %2594 = vrot.lane.b32.xlu1 %v2590_v55, %s5890_s0 }
0x1080   :  { %2597 = vrot.lane.b32.xlu0 %v2591_v48, %s5890_s0  ;;  %v5664_v28 = vpack.i.bf16 %v2591_v48, %v2590_v55 }
0x10f0   :  { %v2595_v30 = vpop.permute.xlu1 %2594 }
0x10f1   :  { %v2596_v38 = vsel %vm1085_vm12, %v2595_v30, %v2590_v55 }
0x10f2   :  { %v2598_v54 = vpop.permute.xlu0 %2597  ;;  %2600 = vrot.lane.b32.xlu1 %v2596_v38, %s5890_s0 }
0x10f3   :  { %v2599_v21 = vsel %vm1085_vm12, %v2598_v54, %v2591_v48 }
0x10f4   :  { %2602 = vrot.lane.b32.xlu0 %v2599_v21, %s5890_s0 }
0x1164   :  { %v2601_v60 = vpop.permute.xlu1 %2600 }
0x1165   :  { %v2604_v29 = vsel %vm1085_vm12, %v2601_v60, %v2590_v55 }
0x1166   :  { %v2603_v0 = vpop.permute.xlu0 %2602  ;;  %v2610_v33 = vmul.f32 %v2604_v29, %v6771_v51  ;;  %v2608_v17 = vmul.f32 %v2604_v29, %v6775_v23  ;;  %v2612_v52 = vmul.f32 %v2604_v29, %v6782_v4  ;;  %v2614_v19 = vmul.f32 %v2604_v29, %v6779_v26 }
0x1167   :  { %v2605_v2 = vsel %vm1085_vm12, %v2603_v0, %v2591_v48  ;;  %v2620_v55 = vmul.f32 %v2604_v29, %v6803_v12  ;;  %v2618_v13 = vmul.f32 %v2604_v29, %v6791_v6 }
0x1168   :  { %v2611_v24 = vmul.f32 %v2605_v2, %v6771_v51  ;;  %v2609_v8 = vmul.f32 %v2605_v2, %v6775_v23  ;;  %v2613_v50 = vmul.f32 %v2605_v2, %v6782_v4  ;;  %v2617_v3 = vmul.f32 %v2605_v2, %v6794_v7 }
0x1169   :  { %v2615_v51 = vmul.f32 %v2605_v2, %v6779_v26  ;;  %v2616_v23 = vmul.f32 %v2604_v29, %v6794_v7  ;;  %v2621_v37 = vmul.f32 %v2605_v2, %v6803_v12  ;;  %v2619_v4 = vmul.f32 %v2605_v2, %v6791_v6 }
0x116a   :  { %v5654_v61 = vpack.i.bf16 %v2611_v24, %v2610_v33  ;;  %v5649_v43 = vpack.i.bf16 %v2609_v8, %v2608_v17  ;;  %v5659_v35 = vpack.i.bf16 %v2613_v50, %v2612_v52  ;;  %v2607_v7 = vmul.f32 %v2605_v2, %v6801_v9 }
0x116b   :  { %v5674_v44 = vpack.i.bf16 %v2617_v3, %v2616_v23  ;;  %v5669_v46 = vpack.i.bf16 %v2615_v51, %v2614_v19  ;;  %v5684_v48 = vpack.i.bf16 %v2621_v37, %v2620_v55  ;;  %v5679_v30 = vpack.i.bf16 %v2619_v4, %v2618_v13  ;;  %v5848_v3 = vld [vmem:[%s8131_s2 + $0x190] ss:$8 sps:$4 sm:$0xff]   ;;  %v7166_v13 = vpop.f32.mrb[16].mxu1 }
0x116c   :  { %5655 = vrot.lane.b32.xlu0 %v5654_v61, %s5906_s17  ;;  %5650 = vrot.lane.b32.xlu1 %v5649_v43, %s5893_s26  ;;  %v2606_v26 = vmul.f32 %v2604_v29, %v6801_v9  ;;  %v5847_v43 = vld [vmem:[%s8131_s2 + $0x180] ss:$8 sps:$4 sm:$0xff]  }
0x116d   :  { %5261 = vmatprep.mubr.msk.bf16.mxu1 %vm2432_vm10, %v5847_v43  ;;  %v8165_v43 = vmov 0.0  }
0x116e   :  { %v2686_v38 = vpack.c.bf16 %v2607_v7, %v2606_v26  ;;  %5262 = vmatmul.mubr.msk.bf16.gmra.mrb[24].mxu1 %vm2432_vm10, %v5848_v3 }
0x1170   :  { %5665 = vrot.lane.b32.xlu0 %v5664_v28, %s5917_s13  ;;  %5660 = vrot.lane.b32.xlu1 %v5659_v35, %s5919_s6  ;;  %s8170_s13 = smov 15  }
0x1174   :  { %5675 = vrot.lane.b32.xlu0 %v5674_v44, %s5903_s14  ;;  %5670 = vrot.lane.b32.xlu1 %v5669_v46, %s5920_s7  ;;  %s8169_s14 = smov 17   ;;  %s8171_s7 = smov 113  }
0x1178   :  { %5685 = vrot.lane.b32.xlu0 %v5684_v48, %s5921_s5  ;;  %5680 = vrot.lane.b32.xlu1 %v5679_v30, %s5902_s11  ;;  %v7168_v48 = vpop.f32.mrb[17].mxu1  ;;  %s5930_s11 = smov 125   ;;  %s8172_s5 = smov 112  }
0x1179   :  { %v7170_v26 = vpop.f32.mrb[18].mxu1 }
0x117c   :  { %2713 = vrot.lane.b32.xlu1 %v2686_v38, %s5922_s8 }
0x11de   :  { %v5656_v54 = vpop.permute.xlu0 %5655  ;;  %v5651_v21 = vpop.permute.xlu1 %5650 }
0x11df   :  { %v5658_v36 = vunpack.i.h.bf16 %v5656_v54  ;;  %v5657_v1 = vunpack.i.l.bf16 %v5656_v54  ;;  %v5653_v12 = vunpack.i.h.bf16 %v5651_v21  ;;  %v5652_v20 = vunpack.i.l.bf16 %v5651_v21  ;;  %v7172_v54 = vpop.f32.mrb[19].mxu1 }
0x11e0   :  { %v7176_v21 = vpop.f32.mrb[20].mxu1 }
0x11e1   :  { %v2688_v6 = vpack.c.bf16 %v5658_v36, %v5657_v1  ;;  %v2687_v59 = vpack.c.bf16 %v5653_v12, %v5652_v20  ;;  %v2306_v36 = vld [vmem:[%s8132_s1 + $0x1b0] sm:$0xff]  ;;  %v2307_v1 = vld [vmem:[%s8132_s1 + $0x1b8] sm:$0xff]  ;;  %v7184_v12 = vpop.f32.mrb[21].mxu1 }
0x11e2   :  { %v5666_v60 = vpop.permute.xlu0 %5665  ;;  %v5661_v0 = vpop.permute.xlu1 %5660 }
0x11e3   :  { %v5668_v2 = vunpack.i.h.bf16 %v5666_v60  ;;  %v5667_v33 = vunpack.i.l.bf16 %v5666_v60  ;;  %v5663_v24 = vunpack.i.h.bf16 %v5661_v0  ;;  %v5662_v17 = vunpack.i.l.bf16 %v5661_v0  ;;  %2715 = vrot.lane.b32.xlu0 %v2687_v59, %s5922_s8  ;;  %2717 = vrot.lane.b32.xlu1 %v2688_v6, %s5922_s8  ;;  %v7187_v20 = vpop.f32.mrb[22].mxu1  ;;  %v5851_v6 = vld [vmem:[%s8131_s2 + $0x1a4] ss:$8 sps:$4 sm:$0xff]  }
0x11e4   :  { %4983 = vmatprep.mubr.msk.bf16.mxu1 %vm289_vm0, %v5851_v6  ;;  %v7193_v59 = vpop.f32.mrb[23].mxu1 }
0x11e5   :  { %v2690_v9 = vpack.c.bf16 %v5668_v2, %v5667_v33  ;;  %v2689_v29 = vpack.c.bf16 %v5663_v24, %v5662_v17 }
0x11e6   :  { %v5676_v8 = vpop.permute.xlu0 %5675  ;;  %v5671_v61 = vpop.permute.xlu1 %5670 }
0x11e7   :  { %v5678_v50 = vunpack.i.h.bf16 %v5676_v8  ;;  %v5677_v52 = vunpack.i.l.bf16 %v5676_v8  ;;  %v5673_v28 = vunpack.i.h.bf16 %v5671_v61  ;;  %v5672_v35 = vunpack.i.l.bf16 %v5671_v61  ;;  %2719 = vrot.lane.b32.xlu0 %v2689_v29, %s5922_s8  ;;  %2721 = vrot.lane.b32.xlu1 %v2690_v9, %s5922_s8  ;;  %v5849_v8 = vld [vmem:[%s8131_s2 + $0x1a0] ss:$8 sps:$4 sm:$0xff]   ;;  %v2554_v61 = vld [vmem:[%s8132_s1 + $0x230] sm:$0xff] }
0x11e9   :  { %v2692_v51 = vpack.c.bf16 %v5678_v50, %v5677_v52  ;;  %v2691_v23 = vpack.c.bf16 %v5673_v28, %v5672_v35  ;;  %v2555_v50 = vld [vmem:[%s8132_s1 + $0x238] sm:$0xff] }
0x11ea   :  { %v5686_v19 = vpop.permute.xlu0 %5685  ;;  %v5681_v44 = vpop.permute.xlu1 %5680 }
0x11eb   :  { %v5688_v46 = vunpack.i.h.bf16 %v5686_v19  ;;  %v5687_v37 = vunpack.i.l.bf16 %v5686_v19  ;;  %v5683_v4 = vunpack.i.h.bf16 %v5681_v44  ;;  %v5682_v55 = vunpack.i.l.bf16 %v5681_v44  ;;  %2723 = vrot.lane.b32.xlu0 %v2691_v23, %s5922_s8  ;;  %2725 = vrot.lane.b32.xlu1 %v2692_v51, %s5922_s8 }
0x11ed   :  { %v2694_v30 = vpack.c.bf16 %v5688_v46, %v5687_v37  ;;  %v2693_v7 = vpack.c.bf16 %v5683_v4, %v5682_v55 }
0x11ee   :  { %v2714_v38 = vpop.permute.xlu1 %2713 }
0x11ef   :  { %2727 = vrot.lane.b32.xlu0 %v2693_v7, %s5922_s8  ;;  %2729 = vrot.lane.b32.xlu1 %v2694_v30, %s5922_s8  ;;  %v2565_v7 = vld [vmem:[%s8132_s1 + $0x1e8] sm:$0xff] }
0x11f0   :  { %2744 = vmatpush1.bf16.msra.mxu1 %v2714_v38  ;;  %v2564_v38 = vld [vmem:[%s8132_s1 + $0x1e0] sm:$0xff] }
0x11f1   :  { %2745 = vmatprep.subr.bf16.mxu1 %v8164_v14 }
0x11f3   :  { %2364 = vperm.xlu0 %5517, %v2306_v36   ;;  %2369 = vperm.xlu1 %5518, %v2307_v1  }
0x1241   :  { %v7218_v52 = vpop.f32.mrb[24].mxu1 }
0x1242   :  { %v7220_v28 = vpop.f32.mrb[25].mxu1 }
0x1243   :  { %v7222_v35 = vpop.f32.mrb[26].mxu1 }
0x1255   :  { %v2716_v60 = vpop.permute.xlu0 %2715  ;;  %v2718_v0 = vpop.permute.xlu1 %2717 }
0x1256   :  { %2746 = vmatpush1.bf16.msra.mxu1 %v2716_v60 }
0x1257   :  { %2747 = vmatprep.subr.bf16.mxu1 %v8164_v14 }
0x1259   :  { %v2720_v2 = vpop.permute.xlu0 %2719  ;;  %v2722_v33 = vpop.permute.xlu1 %2721 }
0x125a   :  { %2748 = vmatpush1.bf16.msra.mxu1 %v2718_v0  ;;  %v5926_v0 = vmov 1  }
0x125b   :  { %2749 = vmatprep.subr.bf16.mxu1 %v8164_v14 }
0x125d   :  { %v2724_v24 = vpop.permute.xlu0 %2723  ;;  %v2726_v17 = vpop.permute.xlu1 %2725 }
0x125e   :  { %2750 = vmatpush1.bf16.msra.mxu1 %v2720_v2  ;;  %v2298_v2 = vld [vmem:[%s8132_s1 + $0x170] sm:$0xff] }
0x125f   :  { %2751 = vmatprep.subr.bf16.mxu1 %v8164_v14 }
0x1261   :  { %v2728_v9 = vpop.permute.xlu0 %2727  ;;  %v2730_v29 = vpop.permute.xlu1 %2729 }
0x1262   :  { %2752 = vmatpush1.bf16.msra.mxu1 %v2722_v33  ;;  %v2299_v33 = vld [vmem:[%s8132_s1 + $0x178] sm:$0xff] }
0x1263   :  { %2753 = vmatprep.subr.bf16.mxu1 %v8164_v14 }
0x1266   :  { %2754 = vmatpush1.bf16.msra.mxu1 %v2724_v24 }
0x1267   :  { %2755 = vmatprep.subr.bf16.mxu1 %v8164_v14 }
0x126a   :  { %2756 = vmatpush1.bf16.msra.mxu1 %v2726_v17 }
0x126b   :  { %2757 = vmatprep.subr.bf16.mxu1 %v8164_v14 }
0x126e   :  { %2758 = vmatpush1.bf16.msra.mxu1 %v2728_v9 }
0x126f   :  { %2759 = vmatprep.subr.bf16.mxu1 %v8164_v14 }
0x1272   :  { %2760 = vmatpush1.bf16.msra.mxu1 %v2730_v29  ;;  %v2370_v36 = vpop.permute.xlu1 %2369  ;;  %v2365_v1 = vpop.permute.xlu0 %2364 }
0x1273   :  { %5383 = vmatprep.subr.bf16.mxu1 %v7095_v27  ;;  %v2535_v6 = vadd.f32 %v7187_v20, %v2370_v36  ;;  %v2532_v60 = vadd.f32 %v7176_v21, %v2365_v1 }
0x1275   :  { %2776 = vmatmul.mubr.bf16.vlgmr.msra.gmra.mrb[28].mxu1 %v5849_v8 }
0x1276   :  { %5385 = vmatpush3.bf16.msra.mxu1 %v7095_v27  ;;  %5269 = vmatprep.mubr.msk.f32.mxu1 %vm289_vm0, %v2554_v61  ;;  %v7224_v27 = vpop.f32.mrb[27].mxu1 }
0x1277   :  { %5272 = vmatprep.subr.bf16.mxu1 %v8165_v43 }
0x127d   :  { %5270 = vmatmul.mubr.msk.f32.vlgmr.msra.gmra.mrb[32].mxu1 %vm289_vm0, %v2555_v50 }
0x127e   :  { %5274 = vmatprep.mubr.msk.bf16.mxu1 %vm5924_vm13, %v8165_v43 }
0x1348   :  { %v2777_v3 = vpop.f32.mrb[28].mxu1 }
0x1349   :  { %v2779_v51 = vpop.f32.mrb[29].mxu1 }
0x134a   :  { %v2780_v23 = vpop.f32.mrb[30].mxu1 }
0x134b   :  { %v2782_v19 = vpop.f32.mrb[31].mxu1 }
0x1350   :  { %v5271_v44 = vpop.f32.mrb[32].mxu1 }
0x1351   :  { %v2864_v46 = vadd.f32 1e-08, %v5271_v44  ;;  %v2858_v37 = vpop.f32.mrb[33].mxu1 }
0x1352   :  { %v2859_v4 = vadd.f32 1e-08, %v2858_v37 }
0x1353   :  { %5866 = vrsqrt.f32 %v2864_v46 }
0x1354   :  { %5868 = vrsqrt.f32 %v2859_v4 }
0x135d   :  { %v5867_v55 = vpop.eup %5866 }
0x135e   :  { %v5869_v30 = vpop.eup %5868  ;;  %2876 = vperm.xlu1 %5518, %v5867_v55  }
0x135f   :  { %2871 = vperm.xlu0 %5517, %v5869_v30  }
0x1362   :  { %2888 = vperm.xlu1 %5518, %v2565_v7  }
0x1363   :  { %2883 = vperm.xlu0 %5517, %v2564_v38  }
0x1366   :  { %5690 = vset.pattern.permute.xlu1 %v5926_v0 }
0x1367   :  { %2908 = vperm.xlu1 %5690, %v2535_v6   ;;  %5689 = vset.pattern.permute.xlu0 %v5926_v0 }
0x1368   :  { %2903 = vperm.xlu0 %5689, %v2532_v60   ;;  %v7247_v60 = vld [vmem:[%s8131_s2 + $0x1f0] sm:$0xf] }
0x136b   :  { %5691 = vset.pattern.permute.xlu1 %v8164_v14 }
0x136c   :  { %2324 = vperm.xlu1 %5691, %v2298_v2   ;;  %5692 = vset.pattern.permute.xlu0 %v8164_v14 }
0x136d   :  { %2329 = vperm.xlu0 %5692, %v2299_v33  }
0x1370   :  { %5693 = vset.pattern.permute.xlu1 %v5926_v0 }
0x13dd   :  { %v2877_v21 = vpop.permute.xlu1 %2876 }
0x13de   :  { %v2872_v20 = vpop.permute.xlu0 %2871  ;;  %v2880_v24 = vmul.f32 %v2877_v21, %v2780_v23 }
0x13df   :  { %v2879_v17 = vmul.f32 %v2872_v20, %v2777_v3 }
0x13e1   :  { %v2889_v9 = vpop.permute.xlu1 %2888 }
0x13e2   :  { %v2892_v29 = vadd.f32 %v2889_v9, %v2880_v24  ;;  %v2884_v8 = vpop.permute.xlu0 %2883 }
0x13e3   :  { %v2891_v61 = vadd.f32 %v2884_v8, %v2879_v17 }
0x13e4   :  { %v2896_v50 = vmul.f32 0.2, %v2892_v29  ;;  %vm2894_vm6 = vcmp.ge.f32.partialorder %v2892_v29, 0.0 }
0x13e5   :  { %v2895_v51 = vmul.f32 0.2, %v2891_v61  ;;  %vm2893_vm7 = vcmp.ge.f32.partialorder %v2891_v61, 0.0 }
0x13e6   :  { %v2898_v19 = vsel %vm2894_vm6, %v2892_v29, %v2896_v50  ;;  %v2909_v44 = vpop.permute.xlu1 %2908 }
0x13e7   :  { %v2900_v46 = vmul.f32 1.4142135, %v2898_v19  ;;  %v2897_v37 = vsel %vm2893_vm7, %v2891_v61, %v2895_v51  ;;  %v2904_v4 = vpop.permute.xlu0 %2903  ;;  %vm8178_vm7 = vcmp.lt.s32.totalorder %v6066_v34, 112 }
0x13e8   :  { %v2899_v55 = vmul.f32 1.4142135, %v2897_v37 }
0x13e9   :  { %v2912_v30 = vmul.f32 %v2909_v44, %v2900_v46 }
0x13ea   :  { %v2911_v7 = vmul.f32 %v2904_v4, %v2899_v55 }
0x13eb   :  { %v2325_v38 = vpop.permute.xlu1 %2324 }
0x13ec   :  { %v2913_v36 = vpack.c.bf16 %v2912_v30, %v2911_v7  ;;  %v2500_v3 = vadd.f32 %v7091_v49, %v2325_v38  ;;  %v2330_v23 = vpop.permute.xlu0 %2329 }
0x13ed   :  { %v2503_v1 = vadd.f32 %v7093_v45, %v2330_v23 }
0x13ee   :  { %v3247_v6 = vmul.f32 %v2500_v3, %v2500_v3  ;;  %3045 = vperm.xlu1 %5693, %v2500_v3   ;;  %5273 = vmatpush3.bf16.msra.mxu1 %v2913_v36  ;;  %v2556_v36 = vld [vmem:[%s8132_s1 + $0x240] sm:$0xff] }
0x13ef   :  { %v3248_v0 = vmul.f32 %v2503_v1, %v2503_v1  ;;  %5387 = vmatprep.subr.bf16.mxu1 %v6900_v18 }
0x13f1   :  { %v5704_v2 = vpack.i.bf16 %v3248_v0, %v3247_v6  ;;  %5275 = vmatmul.mubr.msk.bf16.vlgmr.msra.gmra.mrb[36].mxu1 %vm289_vm0, %v7247_v60 }
0x13f2   :  { %5282 = vmatprep.mubr.msk.f32.mxu1 %vm289_vm0, %v2899_v55  ;;  %3050 = vperm.xlu1 %5693, %v2503_v1  }
0x13f3   :  { %5389 = vmatpush3.bf16.msra.mxu1 %v6900_v18 }
0x13f6   :  { %5739 = vset.pattern.permute.xlu1 %v8164_v14 }
0x13f9   :  { %5283 = vmatmul.mubr.msk.f32.vlgmr.msra.gmra.mrb[34].mxu1 %vm289_vm0, %v2900_v46 }
0x13fa   :  { %5289 = vmatprep.mubr.msk.f32.mxu1 %vm289_vm0, %v2556_v36 }
0x146d   :  { %v3046_v33 = vpop.permute.xlu1 %3045 }
0x1471   :  { %v3051_v24 = vpop.permute.xlu1 %3050 }
0x14c4   :  { %v7256_v49 = vpop.f32.mrb[36].mxu1 }
0x14c5   :  { %v5276_v45 = vpop.f32.mrb[37].mxu1 }
0x14c6   :  { %v2959_v21 = vpop.f32.mrb[38].mxu1 }
0x14c7   :  { %v5277_v20 = vpop.f32.mrb[39].mxu1 }
0x14cc   :  { %v5284_v17 = vpop.f32.mrb[34].mxu1 }
0x14cd   :  { %v3054_v9 = vmul.f32 %v5284_v17, %v3051_v24  ;;  %v3034_v29 = vpop.f32.mrb[35].mxu1 }
0x14ce   :  { %v3053_v8 = vmul.f32 %v3046_v33, %v3034_v29 }
0x14cf   :  { %3060 = vrot.lane.b32.xlu1 %v3054_v9, %s5898_s30 }
0x14d0   :  { %3057 = vrot.lane.b32.xlu0 %v3053_v8, %s5898_s30  ;;  %v5714_v17 = vpack.i.bf16 %v3054_v9, %v3053_v8 }
0x1541   :  { %v3061_v61 = vpop.permute.xlu1 %3060 }
0x1542   :  { %v3062_v50 = vsel %vm706_vm15, %v3061_v61, %v3054_v9  ;;  %v3058_v51 = vpop.permute.xlu0 %3057 }
0x1543   :  { %v3059_v19 = vsel %vm706_vm15, %v3058_v51, %v3053_v8  ;;  %3065 = vrot.lane.b32.xlu1 %v3062_v50, %s5898_s30 }
0x1544   :  { %3063 = vrot.lane.b32.xlu0 %v3059_v19, %s5898_s30 }
0x15b5   :  { %v3066_v44 = vpop.permute.xlu1 %3065 }
0x15b6   :  { %v3068_v46 = vsel %vm706_vm15, %v3066_v44, %v3054_v9  ;;  %v3064_v37 = vpop.permute.xlu0 %3063 }
0x15b7   :  { %v3067_v4 = vsel %vm706_vm15, %v3064_v37, %v3053_v8  ;;  %v3074_v55 = vmul.f32 %v3068_v46, %v6635_v5  ;;  %v3072_v30 = vmul.f32 %v3068_v46, %v6629_v53  ;;  %v3076_v6 = vmul.f32 %v3068_v46, %v6637_v25 }
0x15b8   :  { %v3073_v7 = vmul.f32 %v3067_v4, %v6635_v5  ;;  %v3071_v38 = vmul.f32 %v3067_v4, %v6629_v53  ;;  %v3075_v1 = vmul.f32 %v3067_v4, %v6637_v25  ;;  %v3077_v45 = vmul.f32 %v3067_v4, %v6644_v22 }
0x15b9   :  { %v3078_v33 = vmul.f32 %v3068_v46, %v6644_v22  ;;  %v3081_v21 = vmul.f32 %v3067_v4, %v6656_v32  ;;  %v3082_v20 = vmul.f32 %v3068_v46, %v6656_v32  ;;  %v3079_v29 = vmul.f32 %v3067_v4, %v6646_v31 }
0x15ba   :  { %v5699_v3 = vpack.i.bf16 %v3074_v55, %v3073_v7  ;;  %v5694_v23 = vpack.i.bf16 %v3072_v30, %v3071_v38  ;;  %v5709_v0 = vpack.i.bf16 %v3076_v6, %v3075_v1  ;;  %v3080_v61 = vmul.f32 %v3068_v46, %v6646_v31 }
0x15bb   :  { %v5719_v24 = vpack.i.bf16 %v3078_v33, %v3077_v45  ;;  %v5729_v50 = vpack.i.bf16 %v3082_v20, %v3081_v21  ;;  %v3083_v51 = vmul.f32 %v3067_v4, %v6658_v47  ;;  %v3084_v19 = vmul.f32 %v3068_v46, %v6658_v47 }
0x15bc   :  { %5700 = vrot.lane.b32.xlu1 %v5699_v3, %s5906_s17  ;;  %5695 = vrot.lane.b32.xlu0 %v5694_v23, %s5893_s26  ;;  %v3069_v44 = vmul.f32 %v3067_v4, %v6666_v56  ;;  %v3070_v37 = vmul.f32 %v3068_v46, %v6666_v56 }
0x15bd   :  { %v5734_v9 = vpack.i.bf16 %v3084_v19, %v3083_v51 }
0x15be   :  { %v3149_v8 = vpack.c.bf16 %v3070_v37, %v3069_v44 }
0x15c0   :  { %5705 = vrot.lane.b32.xlu1 %v5704_v2, %s5893_s26  ;;  %5710 = vrot.lane.b32.xlu0 %v5709_v0, %s5907_s18  ;;  %v5724_v2 = vpack.i.bf16 %v3080_v61, %v3079_v29 }
0x15c4   :  { %5720 = vrot.lane.b32.xlu1 %v5719_v24, %s5908_s19  ;;  %5715 = vrot.lane.b32.xlu0 %v5714_v17, %s5905_s16 }
0x15c8   :  { %5730 = vrot.lane.b32.xlu1 %v5729_v50, %s5910_s21  ;;  %5725 = vrot.lane.b32.xlu0 %v5724_v2, %s8166_s28  ;;  %v2557_v2 = vld [vmem:[%s8132_s1 + $0x248] sm:$0xff] }
0x15cc   :  { %5735 = vrot.lane.b32.xlu0 %v5734_v9, %s8167_s10  ;;  %3176 = vrot.lane.b32.xlu1 %v3149_v8, %s8168_s12 }
0x162e   :  { %v5701_v55 = vpop.permute.xlu1 %5700  ;;  %v5696_v30 = vpop.permute.xlu0 %5695 }
0x162f   :  { %v5703_v7 = vunpack.i.h.bf16 %v5701_v55  ;;  %v5702_v38 = vunpack.i.l.bf16 %v5701_v55  ;;  %v5698_v36 = vunpack.i.h.bf16 %v5696_v30  ;;  %v5697_v3 = vunpack.i.l.bf16 %v5696_v30 }
0x1631   :  { %v3151_v23 = vpack.c.bf16 %v5703_v7, %v5702_v38  ;;  %v3150_v4 = vpack.c.bf16 %v5698_v36, %v5697_v3 }
0x1632   :  { %v5706_v1 = vpop.permute.xlu1 %5705  ;;  %v5711_v46 = vpop.permute.xlu0 %5710 }
0x1633   :  { %v5708_v6 = vunpack.i.h.bf16 %v5706_v1  ;;  %v5707_v0 = vunpack.i.l.bf16 %v5706_v1  ;;  %v5713_v45 = vunpack.i.h.bf16 %v5711_v46  ;;  %v5712_v33 = vunpack.i.l.bf16 %v5711_v46  ;;  %3178 = vrot.lane.b32.xlu0 %v3150_v4, %s8168_s12  ;;  %3180 = vrot.lane.b32.xlu1 %v3151_v23, %s8168_s12  ;;  %v2300_v46 = vld [vmem:[%s8132_s1 + $0x180] sm:$0xff] }
0x1635   :  { %v3152_v21 = vpack.c.bf16 %v5713_v45, %v5712_v33  ;;  %v5390_v20 = vpack.c.bf16 %v5708_v6, %v5707_v0  ;;  %v2301_v0 = vld [vmem:[%s8132_s1 + $0x188] sm:$0xff]  ;;  %v5856_v45 = vld [vmem:[%s8131_s2 + $0x1b4] ss:$8 sps:$4 sm:$0xff]  }
0x1636   :  { %v5721_v24 = vpop.permute.xlu1 %5720  ;;  %v5716_v17 = vpop.permute.xlu0 %5715  ;;  %4991 = vmatprep.mubr.msk.bf16.mxu0 %vm289_vm0, %v5856_v45 }
0x1637   :  { %v5723_v29 = vunpack.i.h.bf16 %v5721_v24  ;;  %v5722_v61 = vunpack.i.l.bf16 %v5721_v24  ;;  %v5718_v50 = vunpack.i.h.bf16 %v5716_v17  ;;  %v5717_v51 = vunpack.i.l.bf16 %v5716_v17  ;;  %5391 = vmatprep.subr.bf16.mxu1 %v5390_v20  ;;  %3182 = vrot.lane.b32.xlu0 %v3152_v21, %s8168_s12 }
0x1638   :  { %5393 = vmatpush3.bf16.msra.mxu1 %v5390_v20 }
0x1639   :  { %v3154_v19 = vpack.c.bf16 %v5723_v29, %v5722_v61  ;;  %v3153_v44 = vpack.c.bf16 %v5718_v50, %v5717_v51  ;;  %3535 = vmatprep.subr.bf16.mxu1 %v8164_v14  ;;  %v5854_v51 = vld [vmem:[%s8131_s2 + $0x1b0] ss:$8 sps:$4 sm:$0xff]  }
0x163a   :  { %v5731_v37 = vpop.permute.xlu1 %5730  ;;  %v5726_v9 = vpop.permute.xlu0 %5725 }
0x163b   :  { %v5733_v8 = vunpack.i.h.bf16 %v5731_v37  ;;  %v5732_v55 = vunpack.i.l.bf16 %v5731_v37  ;;  %v5728_v30 = vunpack.i.h.bf16 %v5726_v9  ;;  %v5727_v7 = vunpack.i.l.bf16 %v5726_v9  ;;  %5290 = vmatmul.mubr.msk.f32.vlgmr.msra.gmra.mrb[40].mxu1 %vm289_vm0, %v2557_v2  ;;  %3186 = vrot.lane.b32.xlu0 %v3154_v19, %s8168_s12 }
0x163c   :  { %3184 = vrot.lane.b32.xlu1 %v3153_v44, %s8168_s12 }
0x163d   :  { %v3156_v38 = vpack.c.bf16 %v5733_v8, %v5732_v55  ;;  %v3155_v36 = vpack.c.bf16 %v5728_v30, %v5727_v7  ;;  %v2567_v55 = vld [vmem:[%s8132_s1 + $0x1f8] sm:$0xff]  ;;  %v2566_v30 = vld [vmem:[%s8132_s1 + $0x1f0] sm:$0xff] }
0x163e   :  { %v5736_v3 = vpop.permute.xlu0 %5735  ;;  %v3177_v23 = vpop.permute.xlu1 %3176 }
0x163f   :  { %v5738_v4 = vunpack.i.h.bf16 %v5736_v3  ;;  %v5737_v1 = vunpack.i.l.bf16 %v5736_v3  ;;  %3190 = vrot.lane.b32.xlu0 %v3156_v38, %s8168_s12  ;;  %3207 = vmatpush1.bf16.msra.mxu0 %v3177_v23  ;;  %v5927_v23 = vmov 2  }
0x1640   :  { %3188 = vrot.lane.b32.xlu1 %v3155_v36, %s8168_s12  ;;  %3208 = vmatprep.subr.bf16.mxu0 %v8164_v14 }
0x1641   :  { %v3157_v6 = vpack.c.bf16 %v5738_v4, %v5737_v1 }
0x1643   :  { %2334 = vperm.xlu0 %5692, %v2300_v46  }
0x1644   :  { %3192 = vrot.lane.b32.xlu1 %v3157_v6, %s8168_s12 }
0x1648   :  { %2339 = vperm.xlu1 %5739, %v2301_v0  }
0x16a5   :  { %v3179_v33 = vpop.permute.xlu0 %3178  ;;  %v3181_v21 = vpop.permute.xlu1 %3180 }
0x16a6   :  { %3209 = vmatpush1.bf16.msra.mxu0 %v3179_v33 }
0x16a7   :  { %3210 = vmatprep.subr.bf16.mxu0 %v8164_v14 }
0x16a9   :  { %v3183_v20 = vpop.permute.xlu0 %3182 }
0x16aa   :  { %3211 = vmatpush1.bf16.msra.mxu0 %v3181_v21 }
0x16ab   :  { %3212 = vmatprep.subr.bf16.mxu0 %v8164_v14 }
0x16ad   :  { %v3187_v17 = vpop.permute.xlu0 %3186 }
0x16ae   :  { %3213 = vmatpush1.bf16.msra.mxu0 %v3183_v20  ;;  %v3185_v24 = vpop.permute.xlu1 %3184 }
0x16af   :  { %3214 = vmatprep.subr.bf16.mxu0 %v8164_v14 }
0x16b1   :  { %v3191_v61 = vpop.permute.xlu0 %3190 }
0x16b2   :  { %3215 = vmatpush1.bf16.msra.mxu0 %v3185_v24  ;;  %v3189_v29 = vpop.permute.xlu1 %3188 }
0x16b3   :  { %3216 = vmatprep.subr.bf16.mxu0 %v8164_v14 }
0x16b6   :  { %3217 = vmatpush1.bf16.msra.mxu0 %v3187_v17  ;;  %v3193_v50 = vpop.permute.xlu1 %3192 }
0x16b7   :  { %3218 = vmatprep.subr.bf16.mxu0 %v8164_v14 }
0x16ba   :  { %3219 = vmatpush1.bf16.msra.mxu0 %v3189_v29 }
0x16bb   :  { %3220 = vmatprep.subr.bf16.mxu0 %v8164_v14 }
0x16be   :  { %3221 = vmatpush1.bf16.msra.mxu0 %v3191_v61 }
0x16bf   :  { %3222 = vmatprep.subr.bf16.mxu0 %v8164_v14 }
0x16c2   :  { %3223 = vmatpush1.bf16.msra.mxu0 %v3193_v50  ;;  %v2335_v38 = vpop.permute.xlu0 %2334 }
0x16c3   :  { %v2508_v3 = vadd.f32 %v7168_v48, %v2335_v38 }
0x16c5   :  { %3239 = vmatmul.mubr.bf16.vlgmr.msra.gmra.mrb[48].mxu0 %v5854_v51 }
0x16c7   :  { %v2340_v7 = vpop.permute.xlu1 %2339 }
0x16c8   :  { %v2511_v36 = vadd.f32 %v7172_v54, %v2340_v7 }
0x170e   :  { %v5291_v2 = vpop.f32.mrb[40].mxu1 }
0x170f   :  { %v3335_v19 = vadd.f32 1e-08, %v5291_v2  ;;  %v3329_v44 = vpop.f32.mrb[41].mxu1 }
0x1710   :  { %v3330_v37 = vadd.f32 1e-08, %v3329_v44 }
0x1711   :  { %5870 = vrsqrt.f32 %v3335_v19 }
0x1712   :  { %5872 = vrsqrt.f32 %v3330_v37 }
0x171b   :  { %v5871_v9 = vpop.eup %5870 }
0x171c   :  { %v5873_v8 = vpop.eup %5872  ;;  %3347 = vperm.xlu1 %5739, %v5871_v9  }
0x171d   :  { %3342 = vperm.xlu0 %5692, %v5873_v8  }
0x1720   :  { %3359 = vperm.xlu1 %5739, %v2567_v55  }
0x1721   :  { %3354 = vperm.xlu0 %5692, %v2566_v30  }
0x1724   :  { %5741 = vset.pattern.permute.xlu1 %v5927_v23 }
0x1725   :  { %5740 = vset.pattern.permute.xlu0 %v5927_v23  ;;  %3379 = vperm.xlu1 %5741, %v2511_v36  }
0x1726   :  { %3374 = vperm.xlu0 %5740, %v2508_v3  }
0x1729   :  { %5787 = vset.pattern.permute.xlu1 %v8164_v14 }
0x172a   :  { %5788 = vset.pattern.permute.xlu0 %v8164_v14 }
0x1798   :  { %v3240_v4 = vpop.f32.mrb[48].mxu0 }
0x1799   :  { %v3242_v1 = vpop.f32.mrb[49].mxu0 }
0x179a   :  { %v3243_v46 = vpop.f32.mrb[50].mxu0 }
0x179b   :  { %v3348_v6 = vpop.permute.xlu1 %3347  ;;  %v3245_v0 = vpop.f32.mrb[51].mxu0 }
0x179c   :  { %v3343_v45 = vpop.permute.xlu0 %3342  ;;  %v3351_v33 = vmul.f32 %v3348_v6, %v3243_v46 }
0x179d   :  { %v3350_v21 = vmul.f32 %v3343_v45, %v3240_v4 }
0x179f   :  { %v3360_v54 = vpop.permute.xlu1 %3359 }
0x17a0   :  { %v3363_v20 = vadd.f32 %v3360_v54, %v3351_v33  ;;  %v3355_v48 = vpop.permute.xlu0 %3354  ;;  %v3577_v33 = vmul.f32 %v2511_v36, %v2511_v36 }
0x17a1   :  { %v3362_v24 = vadd.f32 %v3355_v48, %v3350_v21  ;;  %v2558_v21 = vld [vmem:[%s8132_s1 + $0x250] sm:$0xff] }
0x17a2   :  { %v3367_v17 = vmul.f32 0.2, %v3363_v20  ;;  %vm3365_vm12 = vcmp.ge.f32.partialorder %v3363_v20, 0.0  ;;  %5296 = vmatprep.mubr.msk.f32.mxu0 %vm289_vm0, %v2558_v21 }
0x17a3   :  { %v3366_v29 = vmul.f32 0.2, %v3362_v24  ;;  %vm3364_vm11 = vcmp.ge.f32.partialorder %v3362_v24, 0.0 }
0x17a4   :  { %v3369_v61 = vsel %vm3365_vm12, %v3363_v20, %v3367_v17  ;;  %v3380_v2 = vpop.permute.xlu1 %3379  ;;  %v3576_v17 = vmul.f32 %v2508_v3, %v2508_v3  ;;  %vm8179_vm12 = vmmov %vm8178_vm7 }
0x17a5   :  { %v3371_v50 = vmul.f32 1.4142135, %v3369_v61  ;;  %v3368_v51 = vsel %vm3364_vm11, %v3362_v24, %v3366_v29  ;;  %v3375_v37 = vpop.permute.xlu0 %3374  ;;  %vm8180_vm11 = vmmov %vm8178_vm7 }
0x17a6   :  { %v3370_v19 = vmul.f32 1.4142135, %v3368_v51 }
0x17a7   :  { %v3383_v44 = vmul.f32 %v3380_v2, %v3371_v50 }
0x17a8   :  { %v3382_v9 = vmul.f32 %v3375_v37, %v3370_v19 }
0x17a9   :  { %3389 = vrot.lane.b32.xlu0 %v3383_v44, %s5898_s30 }
0x17aa   :  { %3386 = vrot.lane.b32.xlu1 %v3382_v9, %s5898_s30  ;;  %v5762_v3 = vpack.i.bf16 %v3383_v44, %v3382_v9 }
0x181b   :  { %v3390_v8 = vpop.permute.xlu0 %3389 }
0x181c   :  { %v3391_v55 = vsel %vm706_vm15, %v3390_v8, %v3383_v44  ;;  %v3387_v30 = vpop.permute.xlu1 %3386 }
0x181d   :  { %v3388_v7 = vsel %vm706_vm15, %v3387_v30, %v3382_v9  ;;  %3394 = vrot.lane.b32.xlu0 %v3391_v55, %s5898_s30 }
0x181e   :  { %3392 = vrot.lane.b32.xlu1 %v3388_v7, %s5898_s30 }
0x188f   :  { %v3395_v38 = vpop.permute.xlu0 %3394 }
0x1890   :  { %v3397_v23 = vsel %vm706_vm15, %v3395_v38, %v3383_v44  ;;  %v3393_v4 = vpop.permute.xlu1 %3392 }
0x1891   :  { %v3396_v1 = vsel %vm706_vm15, %v3393_v4, %v3382_v9  ;;  %v3403_v46 = vmul.f32 %v3397_v23, %v6635_v5  ;;  %v3401_v6 = vmul.f32 %v3397_v23, %v6629_v53  ;;  %v3405_v24 = vmul.f32 %v3397_v23, %v6637_v25 }
0x1892   :  { %v3402_v0 = vmul.f32 %v3396_v1, %v6635_v5  ;;  %v3400_v45 = vmul.f32 %v3396_v1, %v6629_v53  ;;  %v3404_v48 = vmul.f32 %v3396_v1, %v6637_v25  ;;  %v5752_v5 = vpack.i.bf16 %v3577_v33, %v3576_v17 }
0x1893   :  { %v3406_v36 = vmul.f32 %v3396_v1, %v6644_v22  ;;  %v3407_v29 = vmul.f32 %v3397_v23, %v6644_v22  ;;  %v3410_v61 = vmul.f32 %v3396_v1, %v6656_v32  ;;  %v3411_v25 = vmul.f32 %v3397_v23, %v6656_v32 }
0x1894   :  { %v5747_v54 = vpack.i.bf16 %v3403_v46, %v3402_v0  ;;  %v5742_v20 = vpack.i.bf16 %v3401_v6, %v3400_v45  ;;  %v5757_v53 = vpack.i.bf16 %v3405_v24, %v3404_v48  ;;  %v3408_v51 = vmul.f32 %v3396_v1, %v6646_v31 }
0x1895   :  { %v5767_v50 = vpack.i.bf16 %v3407_v29, %v3406_v36  ;;  %v3409_v2 = vmul.f32 %v3397_v23, %v6646_v31  ;;  %v5777_v19 = vpack.i.bf16 %v3411_v25, %v3410_v61  ;;  %v3412_v22 = vmul.f32 %v3396_v1, %v6658_v47  ;;  %v2559_v36 = vld [vmem:[%s8132_s1 + $0x258] sm:$0xff] }
0x1896   :  { %5748 = vrot.lane.b32.xlu0 %v5747_v54, %s5906_s17  ;;  %5743 = vrot.lane.b32.xlu1 %v5742_v20, %s5893_s26  ;;  %v3413_v8 = vmul.f32 %v3397_v23, %v6658_v47  ;;  %v3398_v55 = vmul.f32 %v3396_v1, %v6666_v56  ;;  %v3399_v32 = vmul.f32 %v3397_v23, %v6666_v56 }
0x1897   :  { %v5772_v37 = vpack.i.bf16 %v3409_v2, %v3408_v51 }
0x1898   :  { %v5782_v44 = vpack.i.bf16 %v3413_v8, %v3412_v22  ;;  %v3478_v31 = vpack.c.bf16 %v3399_v32, %v3398_v55 }
0x189a   :  { %5753 = vrot.lane.b32.xlu0 %v5752_v5, %s5906_s17  ;;  %5758 = vrot.lane.b32.xlu1 %v5757_v53, %s5907_s18 }
0x189e   :  { %5768 = vrot.lane.b32.xlu0 %v5767_v50, %s5908_s19  ;;  %5763 = vrot.lane.b32.xlu1 %v5762_v3, %s5905_s16 }
0x18a2   :  { %5778 = vrot.lane.b32.xlu0 %v5777_v19, %s5910_s21  ;;  %5773 = vrot.lane.b32.xlu1 %v5772_v37, %s8166_s28 }
0x18a6   :  { %5783 = vrot.lane.b32.xlu1 %v5782_v44, %s8167_s10  ;;  %3505 = vrot.lane.b32.xlu0 %v3478_v31, %s8168_s12  ;;  %v2308_v31 = vld [vmem:[%s8132_s1 + $0x1c0] sm:$0xff] }
0x1908   :  { %v5749_v9 = vpop.permute.xlu0 %5748  ;;  %v5744_v30 = vpop.permute.xlu1 %5743 }
0x1909   :  { %v5751_v7 = vunpack.i.h.bf16 %v5749_v9  ;;  %v5750_v38 = vunpack.i.l.bf16 %v5749_v9  ;;  %v5746_v4 = vunpack.i.h.bf16 %v5744_v30  ;;  %v5745_v47 = vunpack.i.l.bf16 %v5744_v30  ;;  %v2309_v30 = vld [vmem:[%s8132_s1 + $0x1c8] sm:$0xff] }
0x190b   :  { %v3480_v46 = vpack.c.bf16 %v5751_v7, %v5750_v38  ;;  %v3479_v1 = vpack.c.bf16 %v5746_v4, %v5745_v47  ;;  %v5857_v7 = vld [vmem:[%s8131_s2 + $0x1c4] ss:$8 sps:$4 sm:$0xff]   ;;  %v5928_v4 = vmov 3  }
0x190c   :  { %v5754_v6 = vpop.permute.xlu0 %5753  ;;  %v5759_v56 = vpop.permute.xlu1 %5758  ;;  %v2568_v38 = vld [vmem:[%s8132_s1 + $0x200] sm:$0xff]  ;;  %4996 = vmatprep.mubr.msk.bf16.mxu1 %vm289_vm0, %v5857_v7 }
0x190d   :  { %v5756_v23 = vunpack.i.h.bf16 %v5754_v6  ;;  %v5755_v0 = vunpack.i.l.bf16 %v5754_v6  ;;  %v5761_v45 = vunpack.i.h.bf16 %v5759_v56  ;;  %v5760_v33 = vunpack.i.l.bf16 %v5759_v56  ;;  %3507 = vrot.lane.b32.xlu1 %v3479_v1, %s8168_s12  ;;  %3509 = vrot.lane.b32.xlu0 %v3480_v46, %s8168_s12 }
0x190f   :  { %v3481_v21 = vpack.c.bf16 %v5761_v45, %v5760_v33  ;;  %v5394_v54 = vpack.c.bf16 %v5756_v23, %v5755_v0  ;;  %v5859_v33 = vld [vmem:[%s8131_s2 + $0x1c0] ss:$8 sps:$4 sm:$0xff]  }
0x1910   :  { %v5769_v20 = vpop.permute.xlu0 %5768  ;;  %v5764_v48 = vpop.permute.xlu1 %5763 }
0x1911   :  { %v5771_v24 = vunpack.i.h.bf16 %v5769_v20  ;;  %v5770_v17 = vunpack.i.l.bf16 %v5769_v20  ;;  %v5766_v5 = vunpack.i.h.bf16 %v5764_v48  ;;  %v5765_v53 = vunpack.i.l.bf16 %v5764_v48  ;;  %5395 = vmatprep.subr.bf16.mxu0 %v5394_v54  ;;  %3511 = vrot.lane.b32.xlu1 %v3481_v21, %s8168_s12  ;;  %v2302_v20 = vld [vmem:[%s8132_s1 + $0x190] sm:$0xff] }
0x1912   :  { %5397 = vmatpush3.bf16.msra.mxu0 %v5394_v54 }
0x1913   :  { %v3483_v29 = vpack.c.bf16 %v5771_v24, %v5770_v17  ;;  %v3482_v61 = vpack.c.bf16 %v5766_v5, %v5765_v53  ;;  %5299 = vmatprep.subr.bf16.mxu0 %v8165_v43 }
0x1914   :  { %v5779_v25 = vpop.permute.xlu0 %5778  ;;  %v5774_v50 = vpop.permute.xlu1 %5773 }
0x1915   :  { %v5781_v3 = vunpack.i.h.bf16 %v5779_v25  ;;  %v5780_v51 = vunpack.i.l.bf16 %v5779_v25  ;;  %v5776_v2 = vunpack.i.h.bf16 %v5774_v50  ;;  %v5775_v19 = vunpack.i.l.bf16 %v5774_v50  ;;  %5297 = vmatmul.mubr.msk.f32.vlgmr.msra.gmra.mrb[52].mxu0 %vm289_vm0, %v2559_v36  ;;  %3515 = vrot.lane.b32.xlu1 %v3483_v29, %s8168_s12  ;;  %v2576_v25 = vld [vmem:[%s8132_s1 + $0x280] sm:$0xff]  ;;  %v2303_v50 = vld [vmem:[%s8132_s1 + $0x198] sm:$0xff] }
0x1916   :  { %3513 = vrot.lane.b32.xlu0 %v3482_v61, %s8168_s12  ;;  %5301 = vmatprep.mubr.msk.bf16.mxu0 %vm5924_vm13, %v8165_v43 }
0x1917   :  { %v3485_v22 = vpack.c.bf16 %v5781_v3, %v5780_v51  ;;  %v3484_v37 = vpack.c.bf16 %v5776_v2, %v5775_v19 }
0x1918   :  { %v5784_v8 = vpop.permute.xlu1 %5783  ;;  %v3506_v55 = vpop.permute.xlu0 %3505 }
0x1919   :  { %v5786_v32 = vunpack.i.h.bf16 %v5784_v8  ;;  %v5785_v44 = vunpack.i.l.bf16 %v5784_v8  ;;  %3519 = vrot.lane.b32.xlu1 %v3485_v22, %s8168_s12  ;;  %3536 = vmatpush1.bf16.msra.mxu1 %v3506_v55 }
0x191a   :  { %3517 = vrot.lane.b32.xlu0 %v3484_v37, %s8168_s12  ;;  %3537 = vmatprep.subr.bf16.mxu1 %v8164_v14 }
0x191b   :  { %v3486_v9 = vpack.c.bf16 %v5786_v32, %v5785_v44 }
0x191d   :  { %2374 = vperm.xlu1 %5787, %v2308_v31  }
0x191e   :  { %3521 = vrot.lane.b32.xlu0 %v3486_v9, %s8168_s12 }
0x1922   :  { %2379 = vperm.xlu0 %5788, %v2309_v30   ;;  %v4999_v30 = vcombine.low %v7247_v60, %v7247_v60  ;;  %v3845_v60 = vld [vmem:[%s8133_s3 + $0x348] sm:$0xff] }
0x1926   :  { %3683 = vperm.xlu0 %5788, %v2568_v38  }
0x192a   :  { %5789 = vset.pattern.permute.xlu0 %v5928_v4 }
0x197f   :  { %v3508_v47 = vpop.permute.xlu1 %3507  ;;  %v3510_v46 = vpop.permute.xlu0 %3509 }
0x1980   :  { %3538 = vmatpush1.bf16.msra.mxu1 %v3508_v47  ;;  %v3718_v47 = vshrl.u32 %v4999_v30, 16 }
0x1981   :  { %3539 = vmatprep.subr.bf16.mxu1 %v8164_v14 }
0x1983   :  { %v3512_v1 = vpop.permute.xlu1 %3511 }
0x1984   :  { %3540 = vmatpush1.bf16.msra.mxu1 %v3510_v46  ;;  %v3721_v46 = vshll.u32 %v4999_v30, 16 }
0x1985   :  { %3541 = vmatprep.subr.bf16.mxu1 %v8164_v14 }
0x1987   :  { %v3516_v56 = vpop.permute.xlu1 %3515 }
0x1988   :  { %3542 = vmatpush1.bf16.msra.mxu1 %v3512_v1  ;;  %v3514_v6 = vpop.permute.xlu0 %3513 }
0x1989   :  { %3543 = vmatprep.subr.bf16.mxu1 %v8164_v14 }
0x198b   :  { %v3520_v0 = vpop.permute.xlu1 %3519 }
0x198c   :  { %3544 = vmatpush1.bf16.msra.mxu1 %v3514_v6  ;;  %v3518_v23 = vpop.permute.xlu0 %3517 }
0x198d   :  { %3545 = vmatprep.subr.bf16.mxu1 %v8164_v14 }
0x1990   :  { %3546 = vmatpush1.bf16.msra.mxu1 %v3516_v56  ;;  %v3522_v45 = vpop.permute.xlu0 %3521 }
0x1991   :  { %3547 = vmatprep.subr.bf16.mxu1 %v8164_v14 }
0x1994   :  { %3548 = vmatpush1.bf16.msra.mxu1 %v3518_v23 }
0x1995   :  { %3549 = vmatprep.subr.bf16.mxu1 %v8164_v14 }
0x1998   :  { %3550 = vmatpush1.bf16.msra.mxu1 %v3520_v0 }
0x1999   :  { %3551 = vmatprep.subr.bf16.mxu1 %v8164_v14 }
0x199c   :  { %v2375_v21 = vpop.permute.xlu1 %2374  ;;  %3552 = vmatpush1.bf16.msra.mxu1 %v3522_v45  ;;  %v3720_v45 = vrot.slane %v3718_v47, 1  ;;  %v2560_v47 = vld [vmem:[%s8132_s1 + $0x260] sm:$0xff] }
0x199d   :  { %v2540_v54 = vadd.f32 %v7220_v28, %v2375_v21  ;;  %v2569_v28 = vld [vmem:[%s8132_s1 + $0x208] sm:$0xff] }
0x199f   :  { %3703 = vperm.xlu0 %5789, %v2540_v54   ;;  %3568 = vmatmul.mubr.bf16.vlgmr.msra.gmra.mrb[44].mxu1 %v5859_v33  ;;  %v3723_v33 = vrot.slane %v3721_v46, 2 }
0x19a1   :  { %v2380_v29 = vpop.permute.xlu0 %2379 }
0x19a2   :  { %v2543_v61 = vadd.f32 %v7224_v27, %v2380_v29 }
0x19a3   :  { %5792 = vset.pattern.permute.xlu0 %v8164_v14 }
0x19a4   :  { %2344 = vperm.xlu0 %5792, %v2302_v20  }
0x19a5   :  { %v3684_v3 = vpop.permute.xlu0 %3683 }
0x19a8   :  { %5794 = vset.pattern.permute.xlu0 %v5928_v4 }
0x19e8   :  { %v5298_v48 = vpop.f32.mrb[52].mxu0 }
0x19e9   :  { %v3658_v24 = vpop.f32.mrb[53].mxu0  ;;  %v3664_v5 = vadd.f32 1e-08, %v5298_v48 }
0x19ea   :  { %v3659_v17 = vadd.f32 1e-08, %v3658_v24  ;;  %v3847_v24 = vld [vmem:[%s8133_s3 + $0x358] sm:$0xff] }
0x19ec   :  { %5874 = vrsqrt.f32 %v3659_v17  ;;  %v3724_v17 = vor.u32 %v3723_v33, %v3720_v45 }
0x19ed   :  { %5876 = vrsqrt.f32 %v3664_v5  ;;  %v5929_v5 = vmov 0.0|0.0  }
0x19f6   :  { %v5875_v53 = vpop.eup %5874 }
0x19f7   :  { %3671 = vperm.xlu1 %5787, %v5875_v53   ;;  %v5877_v36 = vpop.eup %5876  ;;  %v7445_v53 = vpack.c.bf16 %v3847_v24, %v3845_v60 }
0x19fb   :  { %3676 = vperm.xlu1 %5787, %v5877_v36  }
0x19ff   :  { %3688 = vperm.xlu1 %5787, %v2569_v28  }
0x1a03   :  { %5790 = vset.pattern.permute.xlu1 %v5928_v4 }
0x1a04   :  { %3708 = vperm.xlu1 %5790, %v2543_v61  }
0x1a08   :  { %5791 = vset.pattern.permute.xlu1 %v8164_v14 }
0x1a09   :  { %2916 = vperm.xlu1 %5791, %v2576_v25   ;;  %v3844_v25 = vld [vmem:[%s8133_s3 + $0x340] sm:$0xff] }
0x1a0d   :  { %2349 = vperm.xlu1 %5791, %v2303_v50   ;;  %v3851_v50 = vld [vmem:[%s8133_s3 + $0x378] sm:$0xff] }
0x1a11   :  { %5793 = vset.pattern.permute.xlu1 %v5928_v4 }
0x1a1e   :  { %v3704_v51 = vpop.permute.xlu0 %3703 }
0x1a23   :  { %v2345_v2 = vpop.permute.xlu0 %2344 }
0x1a24   :  { %v2516_v27 = vadd.f32 %v7166_v13, %v2345_v2 }
0x1a26   :  { %3945 = vperm.xlu1 %5793, %v2516_v27   ;;  %v4160_v29 = vmul.f32 %v2516_v27, %v2516_v27 }
0x1a2a   :  { %5800 = vset.pattern.permute.xlu1 %v8164_v14 }
0x1a72   :  { %v3569_v19 = vpop.f32.mrb[44].mxu1 }
0x1a73   :  { %v3571_v22 = vpop.f32.mrb[45].mxu1 }
0x1a74   :  { %v3572_v37 = vpop.f32.mrb[46].mxu1  ;;  %v3850_v22 = vld [vmem:[%s8133_s3 + $0x370] sm:$0xff] }
0x1a75   :  { %v3574_v8 = vpop.f32.mrb[47].mxu1 }
0x1a76   :  { %v3672_v55 = vpop.permute.xlu1 %3671 }
0x1a77   :  { %v3679_v32 = vmul.f32 %v3672_v55, %v3569_v19  ;;  %v3848_v19 = vld [vmem:[%s8133_s3 + $0x360] sm:$0xff] }
0x1a78   :  { %v7486_v8 = vpack.c.bf16 %v3850_v22, %v3848_v19  ;;  %v5860_v22 = vld [vmem:[%s8131_s2 + $0x1d4] ss:$8 sps:$4 sm:$0xff]  }
0x1a79   :  { %v3691_v44 = vadd.f32 %v3684_v3, %v3679_v32  ;;  %v3852_v32 = vld [vmem:[%s8133_s3 + $0x380] sm:$0xff]  ;;  %5006 = vmatprep.mubr.msk.bf16.mxu1 %vm289_vm0, %v5860_v22 }
0x1a7a   :  { %v3677_v31 = vpop.permute.xlu1 %3676 }
0x1a7b   :  { %v3695_v9 = vmul.f32 0.2, %v3691_v44  ;;  %vm3693_vm15 = vcmp.ge.f32.partialorder %v3691_v44, 0.0  ;;  %v3680_v7 = vmul.f32 %v3677_v31, %v3572_v37  ;;  %v3853_v37 = vld [vmem:[%s8133_s3 + $0x388] sm:$0xff] }
0x1a7c   :  { %v3857_v31 = vld [vmem:[%s8133_s3 + $0x3a8] sm:$0xff] }
0x1a7d   :  { %v3697_v13 = vsel %vm3693_vm15, %v3691_v44, %v3695_v9  ;;  %v3854_v44 = vld [vmem:[%s8133_s3 + $0x390] sm:$0xff]  ;;  %v3859_v9 = vld [vmem:[%s8133_s3 + $0x3b8] sm:$0xff]  ;;  %vm8181_vm15 = vmmov %vm8178_vm7 }
0x1a7e   :  { %v3689_v38 = vpop.permute.xlu1 %3688  ;;  %v3699_v6 = vmul.f32 1.4142135, %v3697_v13  ;;  %v7505_v30 = vpack.c.bf16 %v3854_v44, %v3852_v32  ;;  %v2570_v32 = vld [vmem:[%s8132_s1 + $0x210] sm:$0xff]  ;;  %v5931_v44 = vmov 4  }
0x1a7f   :  { %v3692_v4 = vadd.f32 %v3689_v38, %v3680_v7  ;;  %v7508_v7 = vpack.c.bf16 %v3859_v9, %v3857_v31  ;;  %v3856_v38 = vld [vmem:[%s8133_s3 + $0x3a0] sm:$0xff] }
0x1a80   :  { %v3711_v21 = vmul.f32 %v3704_v51, %v3699_v6 }
0x1a81   :  { %v3696_v1 = vmul.f32 0.2, %v3692_v4  ;;  %vm3694_vm8 = vcmp.ge.f32.partialorder %v3692_v4, 0.0 }
0x1a83   :  { %v3698_v56 = vsel %vm3694_vm8, %v3692_v4, %v3696_v1  ;;  %v3709_v23 = vpop.permute.xlu1 %3708  ;;  %v3858_v4 = vld [vmem:[%s8133_s3 + $0x3b0] sm:$0xff]  ;;  %vm8184_vm8 = vcmp.lt.s32.totalorder %v6066_v34, 111 }
0x1a84   :  { %v3700_v0 = vmul.f32 1.4142135, %v3698_v56  ;;  %v7517_v13 = vpack.c.bf16 %v3858_v4, %v3856_v38 }
0x1a86   :  { %v3712_v54 = vmul.f32 %v3709_v23, %v3700_v0 }
0x1a88   :  { %v3713_v20 = vpack.c.bf16 %v3712_v54, %v3711_v21  ;;  %v7437_v48 = vpop.permute.xlu1 %2916 }
0x1a89   :  { %v2957_v2 = vadd.f32 %v7256_v49, %v7437_v48  ;;  %v3855_v49 = vld [vmem:[%s8133_s3 + $0x398] sm:$0xff]  ;;  %v3725_v33 = vrot.slane %v7437_v48, 3 }
0x1a8a   :  { %5300 = vmatpush3.bf16.msra.mxu0 %v3713_v20  ;;  %v7490_v55 = vpack.c.bf16 %v3855_v49, %v3853_v37  ;;  %v2304_v37 = vld [vmem:[%s8132_s1 + $0x1a0] sm:$0xff]  ;;  %v2305_v49 = vld [vmem:[%s8132_s1 + $0x1a8] sm:$0xff] }
0x1a8b   :  { %5398 = vmatprep.subr.bf16.mxu0 %v5929_v5 }
0x1a8c   :  { %v2350_v36 = vpop.permute.xlu1 %2349 }
0x1a8d   :  { %v2519_v28 = vadd.f32 %v7170_v26, %v2350_v36  ;;  %5302 = vmatmul.mubr.msk.bf16.vlgmr.msra.gmra.mrb[56].mxu0 %vm289_vm0, %v3724_v17  ;;  %v3846_v26 = vld [vmem:[%s8133_s3 + $0x350] sm:$0xff] }
0x1a8e   :  { %5400 = vmatpush3.bf16.msra.mxu0 %v6900_v18  ;;  %5309 = vmatprep.mubr.msk.f32.mxu0 %vm5924_vm13, %v8165_v43  ;;  %v3849_v18 = vld [vmem:[%s8133_s3 + $0x368] sm:$0xff]  ;;  %v7465_v51 = vpack.c.bf16 %v3846_v26, %v3844_v25  ;;  %vm8174_vm13 = vcmp.lt.s32.totalorder %v6066_v34, 113 }
0x1a8f   :  { %v4161_v61 = vmul.f32 %v2519_v28, %v2519_v28  ;;  %3950 = vperm.xlu0 %5794, %v2519_v28   ;;  %5402 = vmatprep.subr.bf16.mxu0 %v7445_v53  ;;  %v7469_v27 = vpack.c.bf16 %v3851_v50, %v3849_v18  ;;  %vm8175_vm14 = vmmov %vm8174_vm13 }
0x1a90   :  { %vm8176_vm10 = vmmov %vm8174_vm13 }
0x1a91   :  { %v5795_v3 = vpack.i.bf16 %v4161_v61, %v4160_v29  ;;  %vm8177_vm6 = vmmov %vm8176_vm10 }
0x1a93   :  { %5796 = vrot.lane.b32.xlu1 %v5795_v3, %s5930_s11  ;;  %5801 = vset.pattern.permute.xlu0 %v8164_v14 }
0x1a95   :  { %5310 = vmatmul.mubr.msk.f32.vlgmr.msra.gmra.mrb[54].mxu0 %vm289_vm0, %v2957_v2 }
0x1a96   :  { %5404 = vmatpush1.bf16.msra.mxu0 %v7465_v51  ;;  %3930 = vmatprep.mubr.f32.mxu0 %v8165_v43 }
0x1a97   :  { %5406 = vmatprep.subr.bf16.mxu0 %v7469_v27 }
0x1a9a   :  { %5408 = vmatpush1.bf16.msra.mxu0 %v7486_v8 }
0x1a9b   :  { %5410 = vmatprep.subr.bf16.mxu0 %v7490_v55 }
0x1a9e   :  { %5412 = vmatpush1.bf16.msra.mxu0 %v7505_v30 }
0x1a9f   :  { %5414 = vmatprep.subr.bf16.mxu0 %v7508_v7 }
0x1aa2   :  { %5416 = vmatpush1.bf16.msra.mxu0 %v7517_v13 }
0x1aa5   :  { %5002 = vmatmul.mubr.msk.f32.vlgmr.msra.gmra.mrb[60].mxu0 %vm979_vm9, %v3699_v6  ;;  %v3946_v46 = vpop.permute.xlu1 %3945  ;;  %v2561_v6 = vld [vmem:[%s8132_s1 + $0x268] sm:$0xff] }
0x1aa6   :  { %3936 = vmatprep.mubr.f32.mxu0 %v8165_v43 }
0x1aa9   :  { %5003 = vmatmul.mubr.msk.f32.gmra.mrb[62].mxu0 %vm979_vm9, %v3700_v0 }
0x1aaa   :  { %5316 = vmatprep.mubr.msk.f32.mxu0 %vm289_vm0, %v2560_v47 }
0x1b05   :  { %v5797_v1 = vpop.permute.xlu1 %5796 }
0x1b06   :  { %v5799_v56 = vunpack.i.h.bf16 %v5797_v1  ;;  %v5798_v23 = vunpack.i.l.bf16 %v5797_v1 }
0x1b08   :  { %v5417_v45 = vpack.c.bf16 %v5799_v56, %v5798_v23 }
0x1b0a   :  { %5418 = vmatprep.subr.bf16.mxu0 %v5417_v45 }
0x1b0b   :  { %5420 = vmatpush3.bf16.msra.mxu0 %v5417_v45  ;;  %v2571_v45 = vld [vmem:[%s8132_s1 + $0x218] sm:$0xff] }
0x1b0e   :  { %5317 = vmatmul.mubr.msk.f32.vlgmr.msra.gmra.mrb[64].mxu0 %vm289_vm0, %v2561_v6  ;;  %v3951_v61 = vpop.permute.xlu0 %3950 }
0x1b60   :  { %v3764_v21 = vpop.f32.mrb[56].mxu0 }
0x1b61   :  { %v3765_v54 = vadd.f32 %v3764_v21, %v3725_v33  ;;  %v5303_v0 = vpop.f32.mrb[57].mxu0 }
0x1b62   :  { %v3767_v20 = vpop.f32.mrb[58].mxu0 }
0x1b63   :  { %v5304_v60 = vpop.f32.mrb[59].mxu0 }
0x1b68   :  { %v3839_v24 = vpop.f32.mrb[54].mxu0 }
0x1b69   :  { %v7533_v17 = vadd.f32 %v3839_v24, %v3765_v54  ;;  %v5311_v5 = vpop.f32.mrb[55].mxu0 }
0x1b78   :  { %v3932_v36 = vpop.f32.mrb[60].mxu0 }
0x1b79   :  { %v7535_v28 = vmul.f32 %v3946_v46, %v3932_v36  ;;  %v3934_v29 = vpop.f32.mrb[61].mxu0 }
0x1b7a   :  { %v7541_v50 = vmul.f32 %v3946_v46, %v3934_v29 }
0x1b7b   :  { %3959 = vrot.lane.b32.xlu1 %v7535_v28, %s8169_s14 }
0x1b7c   :  { %v3938_v25 = vpop.f32.mrb[62].mxu0 }
0x1b7d   :  { %v7539_v26 = vmul.f32 %v3951_v61, %v3938_v25  ;;  %v3940_v18 = vpop.f32.mrb[63].mxu0 }
0x1b7e   :  { %v7543_v3 = vmul.f32 %v3951_v61, %v3940_v18 }
0x1b7f   :  { %3975 = vrot.lane.b32.xlu1 %v7535_v28, %s5890_s0  ;;  %3961 = vrot.lane.b32.xlu0 %v7539_v26, %s8169_s14  ;;  %v4095_v2 = vpack.c.bf16 %v7539_v26, %v7535_v28 }
0x1b80   :  { %v4096_v19 = vpack.c.bf16 %v7543_v3, %v7541_v50 }
0x1b83   :  { %3991 = vrot.lane.b32.xlu1 %v7535_v28, %s8170_s13  ;;  %3977 = vrot.lane.b32.xlu0 %v7539_v26, %s5890_s0 }
0x1b87   :  { %4007 = vrot.lane.b32.xlu1 %v7535_v28, %s5892_s25  ;;  %3993 = vrot.lane.b32.xlu0 %v7539_v26, %s8170_s13 }
0x1b8b   :  { %4023 = vrot.lane.b32.xlu1 %v7535_v28, %s5893_s26  ;;  %4009 = vrot.lane.b32.xlu0 %v7539_v26, %s5892_s25 }
0x1b8f   :  { %4039 = vrot.lane.b32.xlu1 %v7535_v28, %s8171_s7  ;;  %4025 = vrot.lane.b32.xlu0 %v7539_v26, %s5893_s26 }
0x1b93   :  { %4055 = vrot.lane.b32.xlu1 %v7535_v28, %s8172_s5  ;;  %4041 = vrot.lane.b32.xlu0 %v7539_v26, %s8171_s7 }
0x1b97   :  { %3963 = vrot.lane.b32.xlu1 %v7541_v50, %s8169_s14  ;;  %4057 = vrot.lane.b32.xlu0 %v7539_v26, %s8172_s5 }
0x1b9b   :  { %3979 = vrot.lane.b32.xlu1 %v7541_v50, %s5890_s0  ;;  %3965 = vrot.lane.b32.xlu0 %v7543_v3, %s8169_s14 }
0x1b9f   :  { %3995 = vrot.lane.b32.xlu1 %v7541_v50, %s8170_s13  ;;  %3981 = vrot.lane.b32.xlu0 %v7543_v3, %s5890_s0 }
0x1ba3   :  { %4011 = vrot.lane.b32.xlu1 %v7541_v50, %s5892_s25  ;;  %3997 = vrot.lane.b32.xlu0 %v7543_v3, %s8170_s13 }
0x1ba7   :  { %4071 = vrot.lane.b32.xlu1 %v7535_v28, %s8173_s27  ;;  %4013 = vrot.lane.b32.xlu0 %v7543_v3, %s5892_s25 }
0x1bab   :  { %4027 = vrot.lane.b32.xlu1 %v7541_v50, %s5893_s26  ;;  %4073 = vrot.lane.b32.xlu0 %v7539_v26, %s8173_s27 }
0x1baf   :  { %4043 = vrot.lane.b32.xlu1 %v7541_v50, %s8171_s7  ;;  %4029 = vrot.lane.b32.xlu0 %v7543_v3, %s5893_s26 }
0x1bb3   :  { %4059 = vrot.lane.b32.xlu1 %v7541_v50, %s8172_s5  ;;  %4045 = vrot.lane.b32.xlu0 %v7543_v3, %s8171_s7 }
0x1bb7   :  { %4075 = vrot.lane.b32.xlu1 %v7541_v50, %s8173_s27  ;;  %4061 = vrot.lane.b32.xlu0 %v7543_v3, %s8172_s5 }
0x1bbb   :  { %2354 = vperm.xlu1 %5800, %v2304_v37   ;;  %4077 = vrot.lane.b32.xlu0 %v7543_v3, %s8173_s27 }
0x1bbf   :  { %2359 = vperm.xlu0 %5801, %v2305_v49  }
0x1bc3   :  { %4269 = vperm.xlu0 %5801, %v2570_v32  }
0x1bc7   :  { %5802 = vset.pattern.permute.xlu0 %v5931_v44 }
0x1be1   :  { %v5318_v31 = vpop.f32.mrb[64].mxu0 }
0x1be2   :  { %v4248_v9 = vadd.f32 1e-08, %v5318_v31  ;;  %v4242_v38 = vpop.f32.mrb[65].mxu0 }
0x1be3   :  { %v4243_v4 = vadd.f32 1e-08, %v4242_v38 }
0x1be4   :  { %5878 = vrsqrt.f32 %v4248_v9 }
0x1be5   :  { %5880 = vrsqrt.f32 %v4243_v4 }
0x1bed   :  { %v3960_v47 = vpop.permute.xlu1 %3959 }
0x1bee   :  { %v5879_v46 = vpop.eup %5878 }
0x1bef   :  { %4260 = vperm.xlu1 %5800, %v5879_v46   ;;  %v5881_v1 = vpop.eup %5880 }
0x1bf1   :  { %v3976_v56 = vpop.permute.xlu1 %3975  ;;  %v3962_v23 = vpop.permute.xlu0 %3961 }
0x1bf3   :  { %4255 = vperm.xlu1 %5800, %v5881_v1  }
0x1bf5   :  { %v3992_v6 = vpop.permute.xlu1 %3991  ;;  %v3978_v33 = vpop.permute.xlu0 %3977 }
0x1bf7   :  { %4274 = vperm.xlu1 %5800, %v2571_v45  }
0x1bf9   :  { %v4008_v21 = vpop.permute.xlu1 %4007  ;;  %v3994_v54 = vpop.permute.xlu0 %3993 }
0x1bfb   :  { %5803 = vset.pattern.permute.xlu1 %v5931_v44 }
0x1bfd   :  { %v7627_v0 = vpop.permute.xlu1 %4023  ;;  %v4010_v20 = vpop.permute.xlu0 %4009 }
0x1c01   :  { %v7629_v60 = vpop.permute.xlu1 %4039  ;;  %v7631_v24 = vpop.permute.xlu0 %4025 }
0x1c05   :  { %v7633_v5 = vpop.permute.xlu1 %4055  ;;  %v7635_v36 = vpop.permute.xlu0 %4041 }
0x1c09   :  { %v3964_v29 = vpop.permute.xlu1 %3963  ;;  %v7637_v61 = vpop.permute.xlu0 %4057 }
0x1c0a   :  { %v3967_v25 = vsel %vm60_vm1, %v3960_v47, %v3964_v29  ;;  %v3969_v18 = vsel %vm60_vm1, %v3964_v29, %v3960_v47 }
0x1c0b   :  { %v3971_v44 = vmul.f32 %v3969_v18, %v6088_v41  ;;  %v3972_v31 = vmul.f32 %v3967_v25, %v6084_v40 }
0x1c0d   :  { %v3980_v22 = vpop.permute.xlu1 %3979  ;;  %v3966_v37 = vpop.permute.xlu0 %3965 }
0x1c0e   :  { %v3968_v49 = vsel %vm60_vm1, %v3962_v23, %v3966_v37  ;;  %v3970_v32 = vsel %vm60_vm1, %v3966_v37, %v3962_v23  ;;  %v3983_v4 = vsel %vm85_vm2, %v3976_v56, %v3980_v22  ;;  %v3985_v47 = vsel %vm85_vm2, %v3980_v22, %v3976_v56 }
0x1c0f   :  { %v3973_v9 = vmul.f32 %v3970_v32, %v6088_v41  ;;  %v3974_v38 = vmul.f32 %v3968_v49, %v6084_v40  ;;  %v3987_v18 = vmul.f32 %v3985_v47, %v6108_v57  ;;  %v3988_v37 = vmul.f32 %v3983_v4, %v6112_v58 }
0x1c11   :  { %v4087_v46 = vpack.c.bf16 %v3973_v9, %v3971_v44  ;;  %v3996_v1 = vpop.permute.xlu1 %3995  ;;  %v3982_v45 = vpop.permute.xlu0 %3981  ;;  %v4088_v29 = vpack.c.bf16 %v3974_v38, %v3972_v31 }
0x1c12   :  { %v3984_v23 = vsel %vm85_vm2, %v3978_v33, %v3982_v45  ;;  %v3986_v25 = vsel %vm85_vm2, %v3982_v45, %v3978_v33  ;;  %v3999_v56 = vsel %vm110_vm3, %v3992_v6, %v3996_v1  ;;  %v4001_v22 = vsel %vm110_vm3, %v3996_v1, %v3992_v6 }
0x1c13   :  { %v3989_v49 = vmul.f32 %v3986_v25, %v6108_v57  ;;  %v3990_v32 = vmul.f32 %v3984_v23, %v6112_v58  ;;  %4117 = vmatprep.subr.bf16.mxu1 %v4088_v29  ;;  %v4003_v47 = vmul.f32 %v4001_v22, %v6132_v10  ;;  %v4004_v45 = vmul.f32 %v3999_v56, %v6136_v11 }
0x1c14   :  { %4118 = vmatpush1.bf16.msra.mxu1 %v4087_v46 }
0x1c15   :  { %v4089_v44 = vpack.c.bf16 %v3989_v49, %v3987_v18  ;;  %v4012_v31 = vpop.permute.xlu1 %4011  ;;  %v3998_v9 = vpop.permute.xlu0 %3997  ;;  %v4090_v33 = vpack.c.bf16 %v3990_v32, %v3988_v37 }
0x1c16   :  { %v4000_v38 = vsel %vm110_vm3, %v3994_v54, %v3998_v9  ;;  %v4002_v4 = vsel %vm110_vm3, %v3998_v9, %v3994_v54  ;;  %v4015_v6 = vsel %vm135_vm4, %v4008_v21, %v4012_v31  ;;  %v4017_v46 = vsel %vm135_vm4, %v4012_v31, %v4008_v21 }
0x1c17   :  { %v4005_v29 = vmul.f32 %v4002_v4, %v6132_v10  ;;  %v4006_v23 = vmul.f32 %v4000_v38, %v6136_v11  ;;  %4119 = vmatprep.subr.bf16.mxu1 %v4090_v33  ;;  %v4019_v32 = vmul.f32 %v4017_v46, %v6156_v39  ;;  %v4020_v56 = vmul.f32 %v4015_v6, %v6160_v42 }
0x1c18   :  { %4120 = vmatpush1.bf16.msra.mxu1 %v4089_v44 }
0x1c19   :  { %v4091_v1 = vpack.c.bf16 %v4005_v29, %v4003_v47  ;;  %v4072_v25 = vpop.permute.xlu1 %4071  ;;  %v4014_v18 = vpop.permute.xlu0 %4013  ;;  %v4092_v54 = vpack.c.bf16 %v4006_v23, %v4004_v45 }
0x1c1a   :  { %v4016_v37 = vsel %vm135_vm4, %v4010_v20, %v4014_v18  ;;  %v4018_v49 = vsel %vm135_vm4, %v4014_v18, %v4010_v20 }
0x1c1b   :  { %v4021_v22 = vmul.f32 %v4018_v49, %v6156_v39  ;;  %v4022_v9 = vmul.f32 %v4016_v37, %v6160_v42  ;;  %4121 = vmatprep.subr.bf16.mxu1 %v4092_v54 }
0x1c1c   :  { %4122 = vmatpush1.bf16.msra.mxu1 %v4091_v1 }
0x1c1d   :  { %v4093_v21 = vpack.c.bf16 %v4021_v22, %v4019_v32  ;;  %v4028_v44 = vpop.permute.xlu1 %4027  ;;  %v4074_v31 = vpop.permute.xlu0 %4073  ;;  %v4094_v33 = vpack.c.bf16 %v4022_v9, %v4020_v56 }
0x1c1e   :  { %v4031_v38 = vsel %vm160_vm5, %v7627_v0, %v4028_v44  ;;  %v4033_v20 = vsel %vm160_vm5, %v4028_v44, %v7627_v0 }
0x1c1f   :  { %4123 = vmatprep.subr.bf16.mxu1 %v4094_v33  ;;  %v4035_v23 = vmul.f32 %v4031_v38, %v6180_v62  ;;  %v4036_v6 = vmul.f32 %v4033_v20, %v6184_v63  ;;  %v8182_v33 = vld [vmem:[#allocation2_spill] sm:$0xff]  ;;  %v8183_v20 = vld [vmem:[#allocation3_spill] sm:$0xff] }
0x1c20   :  { %4124 = vmatpush1.bf16.msra.mxu1 %v4093_v21 }
0x1c21   :  { %v4044_v4 = vpop.permute.xlu1 %4043  ;;  %4125 = vmatprep.subr.bf16.mxu1 %v4096_v19  ;;  %v4030_v47 = vpop.permute.xlu0 %4029 }
0x1c22   :  { %v4032_v45 = vsel %vm160_vm5, %v7631_v24, %v4030_v47  ;;  %v4034_v29 = vsel %vm160_vm5, %v4030_v47, %v7631_v24  ;;  %v4047_v50 = vsel %vm8174_vm13, %v7629_v60, %v4044_v4  ;;  %v4049_v3 = vsel %vm8175_vm14, %v4044_v4, %v7629_v60  ;;  %vm8185_vm13 = vmmov %vm8184_vm8 }
0x1c23   :  { %v4037_v0 = vmul.f32 %v4032_v45, %v6180_v62  ;;  %v4038_v46 = vmul.f32 %v4034_v29, %v6184_v63  ;;  %v4051_v49 = vmul.f32 %v4047_v50, %v6210_v15  ;;  %v4052_v60 = vmul.f32 %v4049_v3, %v6214_v16  ;;  %vm8186_vm14 = vmmov %vm8184_vm8  ;;  %v7752_v50 = vld [vmem:[%s8133_s3 + $0x10] ss:$0 sm:$0xff] }
0x1c24   :  { %4126 = vmatpush1.bf16.msra.mxu1 %v4095_v2 }
0x1c25   :  { %v4097_v19 = vpack.c.bf16 %v4037_v0, %v4035_v23  ;;  %v4060_v24 = vpop.permute.xlu1 %4059  ;;  %v4046_v1 = vpop.permute.xlu0 %4045  ;;  %v4098_v18 = vpack.c.bf16 %v4038_v46, %v4036_v6 }
0x1c26   :  { %v4048_v54 = vsel %vm8176_vm10, %v7635_v36, %v4046_v1  ;;  %v4050_v37 = vsel %vm8177_vm6, %v4046_v1, %v7635_v36  ;;  %v4063_v26 = vsel %vm8178_vm7, %v7633_v5, %v4060_v24  ;;  %v4065_v2 = vsel %vm8179_vm12, %v4060_v24, %v7633_v5  ;;  %vm8187_vm10 = vmmov %vm8184_vm8 }
0x1c27   :  { %v4053_v32 = vmul.f32 %v4048_v54, %v6210_v15  ;;  %v4054_v28 = vmul.f32 %v4050_v37, %v6214_v16  ;;  %4127 = vmatprep.subr.bf16.mxu1 %v4098_v18  ;;  %v4067_v38 = vmul.f32 %v4063_v26, %v8182_v33  ;;  %v4068_v4 = vmul.f32 %v4065_v2, %v8183_v20  ;;  %v5862_v54 = vld [vmem:[%s8131_s2 + $0x1d0] ss:$8 sps:$4 sm:$0xff]  }
0x1c28   :  { %4128 = vmatpush1.bf16.msra.mxu1 %v4097_v19 }
0x1c29   :  { %v4099_v56 = vpack.c.bf16 %v4053_v32, %v4051_v49  ;;  %v4076_v36 = vpop.permute.xlu1 %4075  ;;  %v4062_v22 = vpop.permute.xlu0 %4061  ;;  %v4100_v9 = vpack.c.bf16 %v4054_v28, %v4052_v60 }
0x1c2a   :  { %v4064_v21 = vsel %vm8180_vm11, %v7637_v61, %v4062_v22  ;;  %v4066_v44 = vsel %vm8181_vm15, %v4062_v22, %v7637_v61  ;;  %v4079_v45 = vsel %vm8184_vm8, %v4072_v25, %v4076_v36  ;;  %v4081_v29 = vsel %vm8185_vm13, %v4076_v36, %v4072_v25  ;;  %v7758_v25 = vld [vmem:[%s8133_s3 + $0x18] ss:$0 sm:$0xff] }
0x1c2b   :  { %v4069_v47 = vmul.f32 %v4064_v21, %v8182_v33  ;;  %v4070_v5 = vmul.f32 %v4066_v44, %v8183_v20  ;;  %4129 = vmatprep.subr.bf16.mxu1 %v4100_v9  ;;  %v4083_v3 = vmul.f32 %v7752_v50, %v4079_v45  ;;  %v4084_v19 = vmul.f32 %v7758_v25, %v4081_v29 }
0x1c2c   :  { %4130 = vmatpush1.bf16.msra.mxu1 %v4099_v56  ;;  %v2562_v56 = vld [vmem:[%s8132_s1 + $0x270] sm:$0xff] }
0x1c2d   :  { %v4101_v23 = vpack.c.bf16 %v4069_v47, %v4067_v38  ;;  %v4078_v6 = vpop.permute.xlu0 %4077  ;;  %v4102_v0 = vpack.c.bf16 %v4070_v5, %v4068_v4  ;;  %v2563_v4 = vld [vmem:[%s8132_s1 + $0x278] sm:$0xff] }
0x1c2e   :  { %v4080_v61 = vsel %vm8186_vm14, %v4074_v31, %v4078_v6  ;;  %v4082_v46 = vsel %vm8187_vm10, %v4078_v6, %v4074_v31  ;;  %vm8197_vm14 = vmmov %vm8187_vm10 }
0x1c2f   :  { %v4085_v24 = vmul.f32 %v7752_v50, %v4080_v61  ;;  %v4086_v1 = vmul.f32 %v7758_v25, %v4082_v46  ;;  %4131 = vmatprep.subr.bf16.mxu1 %v4102_v0 }
0x1c30   :  { %4132 = vmatpush1.bf16.msra.mxu1 %v4101_v23 }
0x1c31   :  { %v4103_v31 = vpack.c.bf16 %v4085_v24, %v4083_v3  ;;  %v4104_v18 = vpack.c.bf16 %v4086_v1, %v4084_v19 }
0x1c33   :  { %4133 = vmatprep.subr.bf16.mxu1 %v4104_v18 }
0x1c34   :  { %4134 = vmatpush1.bf16.msra.mxu1 %v4103_v31 }
0x1c37   :  { %4150 = vmatmul.mubr.bf16.vlgmr.msra.gmra.mrb[48].mxu1 %v5862_v54 }
0x1c38   :  { %5323 = vmatprep.mubr.msk.f32.mxu1 %vm289_vm0, %v2562_v56 }
0x1c3a   :  { %v2355_v37 = vpop.permute.xlu1 %2354 }
0x1c3b   :  { %v2524_v49 = vadd.f32 %v7184_v12, %v2355_v37 }
0x1c3d   :  { %4299 = vperm.xlu0 %5802, %v2524_v49   ;;  %v4514_v28 = vmul.f32 %v2524_v49, %v2524_v49 }
0x1c3e   :  { %v2360_v60 = vpop.permute.xlu0 %2359 }
0x1c3f   :  { %v2527_v32 = vadd.f32 %v7193_v59, %v2360_v60 }
0x1c41   :  { %v4515_v26 = vmul.f32 %v2527_v32, %v2527_v32  ;;  %4304 = vperm.xlu1 %5803, %v2527_v32   ;;  %5809 = vset.pattern.permute.xlu0 %v8164_v14 }
0x1c42   :  { %v4270_v29 = vpop.permute.xlu0 %4269 }
0x1c43   :  { %v5804_v2 = vpack.i.bf16 %v4515_v26, %v4514_v28 }
0x1c45   :  { %5805 = vrot.lane.b32.xlu1 %v5804_v2, %s5919_s6 }
0x1c46   :  { %5810 = vset.pattern.permute.xlu1 %v8164_v14 }
0x1c6e   :  { %v4261_v12 = vpop.permute.xlu1 %4260 }
0x1c72   :  { %v4256_v36 = vpop.permute.xlu1 %4255 }
0x1c76   :  { %v4275_v22 = vpop.permute.xlu1 %4274 }
0x1cbc   :  { %v4300_v28 = vpop.permute.xlu0 %4299 }
0x1cc0   :  { %v4305_v59 = vpop.permute.xlu1 %4304 }
0x1cc4   :  { %v5806_v9 = vpop.permute.xlu1 %5805 }
0x1cc5   :  { %v5808_v21 = vunpack.i.h.bf16 %v5806_v9  ;;  %v5807_v44 = vunpack.i.l.bf16 %v5806_v9 }
0x1cc7   :  { %v5421_v38 = vpack.c.bf16 %v5808_v21, %v5807_v44 }
0x1cc9   :  { %5422 = vmatprep.subr.bf16.mxu1 %v5421_v38 }
0x1cca   :  { %5424 = vmatpush3.bf16.msra.mxu1 %v5421_v38 }
0x1ccd   :  { %5324 = vmatmul.mubr.msk.f32.vlgmr.msra.gmra.mrb[42].mxu1 %vm289_vm0, %v2563_v4 }
0x1cce   :  { %4715 = vmatprep.mubr.bf16.mxu1 %v8164_v14 }
0x1d0a   :  { %v4151_v47 = vpop.f32.mrb[48].mxu1 }
0x1d0b   :  { %v4263_v5 = vmul.f32 %v4256_v36, %v4151_v47  ;;  %v4153_v45 = vpop.f32.mrb[49].mxu1  ;;  %v2310_v47 = vld [vmem:[%s8132_s1 + $0x1d0] sm:$0xff] }
0x1d0c   :  { %v4264_v23 = vmul.f32 %v4256_v36, %v4153_v45  ;;  %v4155_v6 = vpop.f32.mrb[50].mxu1 }
0x1d0d   :  { %v4277_v0 = vadd.f32 %v4270_v29, %v4263_v5  ;;  %v4265_v61 = vmul.f32 %v4261_v12, %v4155_v6  ;;  %v4157_v46 = vpop.f32.mrb[51].mxu1  ;;  %v2311_v5 = vld [vmem:[%s8132_s1 + $0x1d8] sm:$0xff] }
0x1d0e   :  { %v4278_v3 = vadd.f32 %v4270_v29, %v4264_v23  ;;  %v4266_v19 = vmul.f32 %v4261_v12, %v4157_v46 }
0x1d0f   :  { %vm4281_vm6 = vcmp.ge.f32.partialorder %v4277_v0, 0.0  ;;  %v4285_v24 = vmul.f32 0.2, %v4277_v0  ;;  %v4279_v1 = vadd.f32 %v4275_v22, %v4265_v61 }
0x1d10   :  { %vm4282_vm7 = vcmp.ge.f32.partialorder %v4278_v3, 0.0  ;;  %v4286_v31 = vmul.f32 0.2, %v4278_v3  ;;  %v4280_v18 = vadd.f32 %v4275_v22, %v4266_v19 }
0x1d11   :  { %v4289_v54 = vsel %vm4281_vm6, %v4277_v0, %v4285_v24  ;;  %vm4283_vm12 = vcmp.ge.f32.partialorder %v4279_v1, 0.0  ;;  %v4287_v37 = vmul.f32 0.2, %v4279_v1  ;;  %vm8198_vm6 = vmmov %vm8187_vm10 }
0x1d12   :  { %v4293_v49 = vmul.f32 1.4142135, %v4289_v54  ;;  %v4290_v60 = vsel %vm4282_vm7, %v4278_v3, %v4286_v31  ;;  %vm4284_vm11 = vcmp.ge.f32.partialorder %v4280_v18, 0.0  ;;  %v4288_v32 = vmul.f32 0.2, %v4280_v18  ;;  %vm8199_vm7 = vmmov %vm8198_vm6 }
0x1d13   :  { %v4294_v26 = vmul.f32 1.4142135, %v4290_v60  ;;  %v4291_v2 = vsel %vm4283_vm12, %v4279_v1, %v4287_v37 }
0x1d14   :  { %v7780_v56 = vmul.f32 %v4300_v28, %v4293_v49  ;;  %v4295_v36 = vmul.f32 1.4142135, %v4291_v2  ;;  %v4292_v12 = vsel %vm4284_vm11, %v4280_v18, %v4288_v32 }
0x1d15   :  { %v4296_v9 = vmul.f32 1.4142135, %v4292_v12  ;;  %v7786_v22 = vmul.f32 %v4300_v28, %v4294_v26 }
0x1d16   :  { %v7782_v21 = vmul.f32 %v4305_v59, %v4295_v36  ;;  %4313 = vrot.lane.b32.xlu0 %v7780_v56, %s8169_s14 }
0x1d17   :  { %v7788_v44 = vmul.f32 %v4305_v59, %v4296_v9  ;;  %v5863_v59 = vld [vmem:[%s8131_s2 + $0x1e4] ss:$8 sps:$4 sm:$0xff]  }
0x1d18   :  { %4315 = vrot.lane.b32.xlu1 %v7782_v21, %s8169_s14  ;;  %5011 = vmatprep.mubr.msk.bf16.mxu0 %vm289_vm0, %v5863_v59 }
0x1d19   :  { %v4450_v4 = vpack.c.bf16 %v7788_v44, %v7786_v22 }
0x1d1a   :  { %4329 = vrot.lane.b32.xlu0 %v7780_v56, %s5890_s0 }
0x1d1c   :  { %4331 = vrot.lane.b32.xlu1 %v7782_v21, %s5890_s0 }
0x1d1e   :  { %4345 = vrot.lane.b32.xlu0 %v7780_v56, %s8170_s13 }
0x1d20   :  { %4347 = vrot.lane.b32.xlu1 %v7782_v21, %s8170_s13 }
0x1d22   :  { %4361 = vrot.lane.b32.xlu0 %v7780_v56, %s5892_s25 }
0x1d24   :  { %4363 = vrot.lane.b32.xlu1 %v7782_v21, %s5892_s25 }
0x1d26   :  { %4377 = vrot.lane.b32.xlu0 %v7780_v56, %s5893_s26 }
0x1d28   :  { %4379 = vrot.lane.b32.xlu1 %v7782_v21, %s5893_s26 }
0x1d2a   :  { %4393 = vrot.lane.b32.xlu0 %v7780_v56, %s8171_s7 }
0x1d2c   :  { %4395 = vrot.lane.b32.xlu1 %v7782_v21, %s8171_s7 }
0x1d2e   :  { %4409 = vrot.lane.b32.xlu0 %v7780_v56, %s8172_s5 }
0x1d30   :  { %4411 = vrot.lane.b32.xlu1 %v7782_v21, %s8172_s5 }
0x1d32   :  { %4317 = vrot.lane.b32.xlu0 %v7786_v22, %s8169_s14 }
0x1d34   :  { %4319 = vrot.lane.b32.xlu1 %v7788_v44, %s8169_s14 }
0x1d36   :  { %4333 = vrot.lane.b32.xlu0 %v7786_v22, %s5890_s0 }
0x1d38   :  { %4335 = vrot.lane.b32.xlu1 %v7788_v44, %s5890_s0 }
0x1d3a   :  { %4349 = vrot.lane.b32.xlu0 %v7786_v22, %s8170_s13 }
0x1d3c   :  { %4351 = vrot.lane.b32.xlu1 %v7788_v44, %s8170_s13 }
0x1d3e   :  { %4365 = vrot.lane.b32.xlu0 %v7786_v22, %s5892_s25 }
0x1d40   :  { %4367 = vrot.lane.b32.xlu1 %v7788_v44, %s5892_s25 }
0x1d42   :  { %4425 = vrot.lane.b32.xlu0 %v7780_v56, %s8173_s27 }
0x1d44   :  { %4427 = vrot.lane.b32.xlu1 %v7782_v21, %s8173_s27 }
0x1d46   :  { %4381 = vrot.lane.b32.xlu0 %v7786_v22, %s5893_s26 }
0x1d48   :  { %4383 = vrot.lane.b32.xlu1 %v7788_v44, %s5893_s26 }
0x1d4a   :  { %4397 = vrot.lane.b32.xlu0 %v7786_v22, %s8171_s7 }
0x1d4c   :  { %4399 = vrot.lane.b32.xlu1 %v7788_v44, %s8171_s7 }
0x1d4e   :  { %4413 = vrot.lane.b32.xlu0 %v7786_v22, %s8172_s5 }
0x1d50   :  { %4415 = vrot.lane.b32.xlu1 %v7788_v44, %s8172_s5 }
0x1d52   :  { %4429 = vrot.lane.b32.xlu0 %v7786_v22, %s8173_s27 }
0x1d54   :  { %4431 = vrot.lane.b32.xlu1 %v7788_v44, %s8173_s27 }
0x1d56   :  { %2384 = vperm.xlu0 %5809, %v2310_v47  }
0x1d58   :  { %2389 = vperm.xlu1 %5810, %v2311_v5  }
0x1d88   :  { %v4314_v45 = vpop.permute.xlu0 %4313 }
0x1d8a   :  { %v4316_v29 = vpop.permute.xlu1 %4315 }
0x1d8c   :  { %v4330_v23 = vpop.permute.xlu0 %4329 }
0x1d8e   :  { %v4332_v6 = vpop.permute.xlu1 %4331 }
0x1d90   :  { %v4346_v0 = vpop.permute.xlu0 %4345 }
0x1d92   :  { %v4348_v61 = vpop.permute.xlu1 %4347 }
0x1d94   :  { %v4362_v46 = vpop.permute.xlu0 %4361 }
0x1d96   :  { %v7866_v3 = vpop.permute.xlu1 %4363 }
0x1d98   :  { %v7868_v19 = vpop.permute.xlu0 %4377 }
0x1d9a   :  { %v7870_v24 = vpop.permute.xlu1 %4379 }
0x1d9c   :  { %v7872_v1 = vpop.permute.xlu0 %4393 }
0x1d9e   :  { %v7874_v31 = vpop.permute.xlu1 %4395 }
0x1da0   :  { %v7876_v18 = vpop.permute.xlu0 %4409  ;;  %v5325_v54 = vpop.f32.mrb[42].mxu1 }
0x1da1   :  { %v4602_v37 = vadd.f32 1e-08, %v5325_v54  ;;  %v4596_v49 = vpop.f32.mrb[43].mxu1 }
0x1da2   :  { %v7878_v60 = vpop.permute.xlu1 %4411  ;;  %v4597_v32 = vadd.f32 1e-08, %v4596_v49 }
0x1da3   :  { %5882 = vrsqrt.f32 %v4602_v37 }
0x1da4   :  { %5884 = vrsqrt.f32 %v4597_v32  ;;  %v4318_v28 = vpop.permute.xlu0 %4317 }
0x1da5   :  { %v4321_v26 = vsel %vm60_vm1, %v4314_v45, %v4318_v28  ;;  %v4323_v2 = vsel %vm60_vm1, %v4318_v28, %v4314_v45 }
0x1da6   :  { %v4320_v36 = vpop.permute.xlu1 %4319  ;;  %v4325_v59 = vmul.f32 %v4323_v2, %v6088_v41  ;;  %v4326_v47 = vmul.f32 %v4321_v26, %v6084_v40 }
0x1da7   :  { %v4322_v12 = vsel %vm60_vm1, %v4316_v29, %v4320_v36  ;;  %v4324_v9 = vsel %vm60_vm1, %v4320_v36, %v4316_v29  ;;  %vm8188_vm1 = vcmp.lt.s32.totalorder %v6066_v34, 113 }
0x1da8   :  { %v4327_v5 = vmul.f32 %v4324_v9, %v6088_v41  ;;  %v4328_v54 = vmul.f32 %v4322_v12, %v6084_v40  ;;  %v4334_v37 = vpop.permute.xlu0 %4333 }
0x1da9   :  { %v4337_v49 = vsel %vm85_vm2, %v4330_v23, %v4334_v37  ;;  %v4339_v45 = vsel %vm85_vm2, %v4334_v37, %v4330_v23 }
0x1daa   :  { %v4441_v32 = vpack.c.bf16 %v4327_v5, %v4325_v59  ;;  %v4336_v28 = vpop.permute.xlu1 %4335  ;;  %v4442_v38 = vpack.c.bf16 %v4328_v54, %v4326_v47  ;;  %v4341_v41 = vmul.f32 %v4339_v45, %v6108_v57  ;;  %v4342_v40 = vmul.f32 %v4337_v49, %v6112_v58 }
0x1dab   :  { %v4338_v29 = vsel %vm85_vm2, %v4332_v6, %v4336_v28  ;;  %v4340_v26 = vsel %vm85_vm2, %v4336_v28, %v4332_v6  ;;  %v2572_v28 = vld [vmem:[%s8132_s1 + $0x220] sm:$0xff]  ;;  %vm8189_vm2 = vmmov %vm8188_vm1 }
0x1dac   :  { %v4343_v2 = vmul.f32 %v4340_v26, %v6108_v57  ;;  %v4344_v36 = vmul.f32 %v4338_v29, %v6112_v58  ;;  %v4350_v12 = vpop.permute.xlu0 %4349  ;;  %4471 = vmatprep.subr.bf16.mxu0 %v4442_v38  ;;  %v2573_v38 = vld [vmem:[%s8132_s1 + $0x228] sm:$0xff] }
0x1dad   :  { %v5883_v23 = vpop.eup %5882  ;;  %v4353_v9 = vsel %vm110_vm3, %v4346_v0, %v4350_v12  ;;  %v4355_v59 = vsel %vm110_vm3, %v4350_v12, %v4346_v0  ;;  %4472 = vmatpush1.bf16.msra.mxu0 %v4441_v32 }
0x1dae   :  { %v5885_v47 = vpop.eup %5884  ;;  %v4443_v6 = vpack.c.bf16 %v4343_v2, %v4341_v41  ;;  %v4352_v5 = vpop.permute.xlu1 %4351  ;;  %v4444_v54 = vpack.c.bf16 %v4344_v36, %v4342_v40  ;;  %4614 = vperm.xlu0 %5809, %v5883_v23   ;;  %v4357_v37 = vmul.f32 %v4355_v59, %v6132_v10  ;;  %v4358_v0 = vmul.f32 %v4353_v9, %v6136_v11 }
0x1daf   :  { %v4354_v57 = vsel %vm110_vm3, %v4348_v61, %v4352_v5  ;;  %v4356_v58 = vsel %vm110_vm3, %v4352_v5, %v4348_v61  ;;  %4609 = vperm.xlu1 %5810, %v5885_v47   ;;  %vm8191_vm3 = vmmov %vm8188_vm1 }
0x1db0   :  { %v4359_v49 = vmul.f32 %v4356_v58, %v6132_v10  ;;  %v4360_v45 = vmul.f32 %v4354_v57, %v6136_v11  ;;  %v4366_v32 = vpop.permute.xlu0 %4365  ;;  %4473 = vmatprep.subr.bf16.mxu0 %v4444_v54 }
0x1db1   :  { %v4369_v61 = vsel %vm135_vm4, %v4362_v46, %v4366_v32  ;;  %v4371_v29 = vsel %vm135_vm4, %v4366_v32, %v4362_v46  ;;  %4474 = vmatpush1.bf16.msra.mxu0 %v4443_v6  ;;  %v5932_v6 = vmov 5  }
0x1db2   :  { %v4445_v26 = vpack.c.bf16 %v4359_v49, %v4357_v37  ;;  %v4368_v41 = vpop.permute.xlu1 %4367  ;;  %v4446_v40 = vpack.c.bf16 %v4360_v45, %v4358_v0  ;;  %4628 = vperm.xlu0 %5809, %v2573_v38   ;;  %v4373_v2 = vmul.f32 %v4371_v29, %v6156_v39  ;;  %v4374_v36 = vmul.f32 %v4369_v61, %v6160_v42 }
0x1db3   :  { %v4370_v10 = vsel %vm135_vm4, %v7866_v3, %v4368_v41  ;;  %v4372_v11 = vsel %vm135_vm4, %v4368_v41, %v7866_v3  ;;  %4623 = vperm.xlu1 %5810, %v2572_v28   ;;  %vm8192_vm4 = vmmov %vm8188_vm1 }
0x1db4   :  { %v4375_v46 = vmul.f32 %v4372_v11, %v6156_v39  ;;  %v4376_v12 = vmul.f32 %v4370_v10, %v6160_v42  ;;  %v4426_v23 = vpop.permute.xlu0 %4425  ;;  %4475 = vmatprep.subr.bf16.mxu0 %v4446_v40 }
0x1db5   :  { %4476 = vmatpush1.bf16.msra.mxu0 %v4445_v26 }
0x1db6   :  { %v4447_v9 = vpack.c.bf16 %v4375_v46, %v4373_v2  ;;  %v4428_v59 = vpop.permute.xlu1 %4427  ;;  %v4448_v47 = vpack.c.bf16 %v4376_v12, %v4374_v36  ;;  %5812 = vset.pattern.permute.xlu0 %v5932_v6 }
0x1db7   :  { %5811 = vset.pattern.permute.xlu1 %v5932_v6 }
0x1db8   :  { %v4382_v5 = vpop.permute.xlu0 %4381  ;;  %4477 = vmatprep.subr.bf16.mxu0 %v4448_v47 }
0x1db9   :  { %v4385_v3 = vsel %vm160_vm5, %v7868_v19, %v4382_v5  ;;  %v4387_v39 = vsel %vm160_vm5, %v4382_v5, %v7868_v19  ;;  %4478 = vmatpush1.bf16.msra.mxu0 %v4447_v9 }
0x1dba   :  { %v4384_v42 = vpop.permute.xlu1 %4383  ;;  %4479 = vmatprep.subr.bf16.mxu0 %v4450_v4  ;;  %v4389_v58 = vmul.f32 %v4385_v3, %v6180_v62  ;;  %v4390_v38 = vmul.f32 %v4387_v39, %v6184_v63  ;;  %v8190_v4 = vpack.c.bf16 %v7782_v21, %v7780_v56 }
0x1dbb   :  { %v4386_v54 = vsel %vm160_vm5, %v7870_v24, %v4384_v42  ;;  %v4388_v57 = vsel %vm160_vm5, %v4384_v42, %v7870_v24  ;;  %vm8193_vm5 = vmmov %vm8181_vm15  ;;  %v5865_v42 = vld [vmem:[%s8131_s2 + $0x1e0] ss:$8 sps:$4 sm:$0xff]  }
0x1dbc   :  { %v4391_v19 = vmul.f32 %v4386_v54, %v6180_v62  ;;  %v4392_v37 = vmul.f32 %v4388_v57, %v6184_v63  ;;  %v4398_v0 = vpop.permute.xlu0 %4397  ;;  %vm8194_vm15 = vmmov %vm8193_vm5 }
0x1dbd   :  { %v4401_v22 = vsel %vm8188_vm1, %v7872_v1, %v4398_v0  ;;  %v4403_v44 = vsel %vm8189_vm2, %v4398_v0, %v7872_v1  ;;  %4480 = vmatpush1.bf16.msra.mxu0 %v8190_v4  ;;  %vm8195_vm8 = vmmov %vm8193_vm5  ;;  %v4820_v4 = vld [vmem:[%s8133_s3 + $0x500] sm:$0xff] }
0x1dbe   :  { %v4451_v24 = vpack.c.bf16 %v4391_v19, %v4389_v58  ;;  %v4400_v49 = vpop.permute.xlu1 %4399  ;;  %v4452_v45 = vpack.c.bf16 %v4392_v37, %v4390_v38  ;;  %v4405_v32 = vmul.f32 %v4401_v22, %v6210_v15  ;;  %v4406_v28 = vmul.f32 %v4403_v44, %v6214_v16  ;;  %vm8196_vm13 = vmmov %vm8193_vm5  ;;  %v4801_v38 = vld [vmem:[%s8133_s3 + $0x3d0] sm:$0xff]  ;;  %v4802_v22 = vld [vmem:[%s8133_s3 + $0x3e0] sm:$0xff] }
0x1dbf   :  { %v4402_v62 = vsel %vm8191_vm3, %v7874_v31, %v4400_v49  ;;  %v4404_v63 = vsel %vm8192_vm4, %v4400_v49, %v7874_v31  ;;  %v4819_v19 = vld [vmem:[%s8133_s3 + $0x4f0] sm:$0xff] }
0x1dc0   :  { %v4407_v1 = vmul.f32 %v4402_v62, %v6210_v15  ;;  %v4408_v56 = vmul.f32 %v4404_v63, %v6214_v16  ;;  %v4414_v21 = vpop.permute.xlu0 %4413  ;;  %4481 = vmatprep.subr.bf16.mxu0 %v4452_v45  ;;  %v4803_v44 = vld [vmem:[%s8133_s3 + $0x3f0] sm:$0xff]  ;;  %v4804_v62 = vld [vmem:[%s8133_s3 + $0x400] sm:$0xff] }
0x1dc1   :  { %v4417_v61 = vsel %vm8193_vm5, %v7876_v18, %v4414_v21  ;;  %v4419_v29 = vsel %vm8194_vm15, %v4414_v21, %v7876_v18  ;;  %4482 = vmatpush1.bf16.msra.mxu0 %v4451_v24  ;;  %v4821_v24 = vld [vmem:[%s8133_s3 + $0x510] sm:$0xff]  ;;  %v5447_v49 = vpack.c.bf16 %v4803_v44, %v4802_v22  ;;  %v4810_v44 = vld [vmem:[%s8133_s3 + $0x460] sm:$0xff] }
0x1dc2   :  { %v4453_v31 = vpack.c.bf16 %v4407_v1, %v4405_v32  ;;  %v4416_v26 = vpop.permute.xlu1 %4415  ;;  %v4454_v41 = vpack.c.bf16 %v4408_v56, %v4406_v28  ;;  %v4421_v40 = vmul.f32 %v4417_v61, %v8182_v33  ;;  %v4422_v10 = vmul.f32 %v4419_v29, %v8183_v20  ;;  %v4805_v63 = vld [vmem:[%s8133_s3 + $0x410] sm:$0xff] }
0x1dc3   :  { %v4418_v15 = vsel %vm8195_vm8, %v7878_v60, %v4416_v26  ;;  %v4420_v16 = vsel %vm8196_vm13, %v4416_v26, %v7878_v60  ;;  %v5449_v45 = vpack.c.bf16 %v4821_v24, %v4820_v4  ;;  %v5451_v32 = vpack.c.bf16 %v4805_v63, %v4804_v62  ;;  %v4811_v4 = vld [vmem:[%s8133_s3 + $0x470] sm:$0xff]  ;;  %v4828_v24 = vld [vmem:[%s8133_s3 + $0x580] sm:$0xff] }
0x1dc4   :  { %v4423_v11 = vmul.f32 %v4418_v15, %v8182_v33  ;;  %v4424_v18 = vmul.f32 %v4420_v16, %v8183_v20  ;;  %v4430_v2 = vpop.permute.xlu0 %4429  ;;  %4483 = vmatprep.subr.bf16.mxu0 %v4454_v41  ;;  %v4812_v63 = vld [vmem:[%s8133_s3 + $0x480] sm:$0xff] }
0x1dc5   :  { %v4433_v36 = vsel %vm8197_vm14, %v4426_v23, %v4430_v2  ;;  %v4435_v46 = vsel %vm8187_vm10, %v4430_v2, %v4426_v23  ;;  %4484 = vmatpush1.bf16.msra.mxu0 %v4453_v31 }
0x1dc6   :  { %v4455_v12 = vpack.c.bf16 %v4423_v11, %v4421_v40  ;;  %v4432_v9 = vpop.permute.xlu1 %4431  ;;  %v4456_v60 = vpack.c.bf16 %v4424_v18, %v4422_v10  ;;  %v4437_v20 = vmul.f32 %v7752_v50, %v4433_v36  ;;  %v4438_v6 = vmul.f32 %v7758_v25, %v4435_v46 }
0x1dc7   :  { %v4434_v47 = vsel %vm8198_vm6, %v4428_v59, %v4432_v9  ;;  %v4436_v33 = vsel %vm8199_vm7, %v4432_v9, %v4428_v59 }
0x1dc8   :  { %v4439_v5 = vmul.f32 %v7752_v50, %v4434_v47  ;;  %v4440_v3 = vmul.f32 %v7758_v25, %v4436_v33  ;;  %4485 = vmatprep.subr.bf16.mxu0 %v4456_v60  ;;  %v2577_v50 = vld [vmem:[%s8132_s1 + $0x288] sm:$0x1]  ;;  %v4816_v25 = vld [vmem:[%s8133_s3 + $0x4c0] sm:$0xff] }
0x1dc9   :  { %4486 = vmatpush1.bf16.msra.mxu0 %v4455_v12 }
0x1dca   :  { %v4457_v23 = vpack.c.bf16 %v4439_v5, %v4437_v20  ;;  %v4458_v39 = vpack.c.bf16 %v4440_v3, %v4438_v6  ;;  %v2575_v5 = vld [vmem:[%s8131_s2 + $0x1f8] sm:$0x1] }
0x1dcc   :  { %4487 = vmatprep.subr.bf16.mxu0 %v4458_v39 }
0x1dcd   :  { %4488 = vmatpush1.bf16.msra.mxu0 %v4457_v23 }
0x1dd0   :  { %4504 = vmatmul.mubr.bf16.vlgmr.msra.gmra.mrb[68].mxu0 %v5865_v42 }
0x1dd5   :  { %v2385_v34 = vpop.permute.xlu0 %2384 }
0x1dd6   :  { %v2548_v59 = vadd.f32 %v7218_v52, %v2385_v34  ;;  %v4817_v52 = vld [vmem:[%s8133_s3 + $0x4d0] sm:$0xff] }
0x1dd7   :  { %v2390_v54 = vpop.permute.xlu1 %2389  ;;  %v5441_v58 = vpack.c.bf16 %v4817_v52, %v4816_v25 }
0x1dd8   :  { %v2551_v57 = vadd.f32 %v7222_v35, %v2390_v54  ;;  %4653 = vperm.xlu1 %5811, %v2548_v59   ;;  %v4800_v35 = vld [vmem:[%s8133_s3 + $0x3c0] sm:$0xff] }
0x1dd9   :  { %v5443_v37 = vpack.c.bf16 %v4801_v38, %v4800_v35  ;;  %5442 = vmatprep.subr.bf16.mxu0 %v5441_v58 }
0x1dda   :  { %4658 = vperm.xlu0 %5812, %v2551_v57   ;;  %v5888_v57 = vld [vmem:[%s8131_s2 + $0x1f0] sm:$0xf] }
0x1ddb   :  { %5444 = vmatpush3.bf16.msra.mxu0 %v5443_v37  ;;  %v4827_v37 = vld [vmem:[%s8133_s3 + $0x570] sm:$0xff] }
0x1ddc   :  { %5813 = vset.pattern.permute.xlu1 %v8164_v14 }
0x1ddd   :  { %4669 = vperm.xlu1 %5813, %v2577_v50   ;;  %v5014_v50 = vcombine.low %v5888_v57, %v2575_v5 }
0x1dde   :  { %5814 = vset.pattern.permute.xlu0 %v8164_v14  ;;  %v4818_v14 = vld [vmem:[%s8133_s3 + $0x4e0] sm:$0xff] }
0x1ddf   :  { %v5445_v0 = vpack.c.bf16 %v4819_v19, %v4818_v14  ;;  %v4674_v38 = vrot.slane %v5014_v50, 3  ;;  %v4809_v14 = vld [vmem:[%s8133_s3 + $0x450] sm:$0xff]  ;;  %v4826_v19 = vld [vmem:[%s8133_s3 + $0x560] sm:$0xff] }
0x1de0   :  { %v5461_v22 = vpack.c.bf16 %v4827_v37, %v4826_v19 }
0x1de1   :  { %5446 = vmatprep.subr.bf16.mxu0 %v5445_v0 }
0x1de2   :  { %5448 = vmatpush3.bf16.msra.mxu0 %v5447_v49  ;;  %v4829_v49 = vld [vmem:[%s8133_s3 + $0x590] sm:$0xff] }
0x1de3   :  { %5450 = vmatprep.subr.bf16.mxu0 %v5449_v45  ;;  %v5463_v45 = vpack.c.bf16 %v4811_v4, %v4810_v44  ;;  %v5465_v62 = vpack.c.bf16 %v4829_v49, %v4828_v24 }
0x1de6   :  { %5452 = vmatpush3.bf16.msra.mxu0 %v5451_v32  ;;  %v4813_v32 = vld [vmem:[%s8133_s3 + $0x490] sm:$0xff] }
0x1e2d   :  { %v4615_v1 = vpop.permute.xlu0 %4614 }
0x1e2e   :  { %v4610_v28 = vpop.permute.xlu1 %4609 }
0x1e31   :  { %v4629_v40 = vpop.permute.xlu0 %4628 }
0x1e32   :  { %v4624_v29 = vpop.permute.xlu1 %4623 }
0x1e57   :  { %v4654_v39 = vpop.permute.xlu1 %4653 }
0x1e59   :  { %v4659_v42 = vpop.permute.xlu0 %4658 }
0x1ea3   :  { %v4505_v56 = vpop.f32.mrb[68].mxu0 }
0x1ea4   :  { %v4617_v21 = vmul.f32 %v4610_v28, %v4505_v56  ;;  %v4507_v61 = vpop.f32.mrb[69].mxu0  ;;  %v4831_v56 = vld [vmem:[%s8133_s3 + $0x5b0] sm:$0xff] }
0x1ea5   :  { %v4618_v31 = vmul.f32 %v4610_v28, %v4507_v61  ;;  %v4509_v26 = vpop.f32.mrb[70].mxu0  ;;  %v5467_v28 = vpack.c.bf16 %v4813_v32, %v4812_v63 }
0x1ea6   :  { %v4631_v41 = vadd.f32 %v4624_v29, %v4617_v21  ;;  %v4619_v15 = vmul.f32 %v4615_v1, %v4509_v26  ;;  %v4511_v16 = vpop.f32.mrb[71].mxu0  ;;  %v4814_v21 = vld [vmem:[%s8133_s3 + $0x4a0] sm:$0xff]  ;;  %v4670_v26 = vpop.permute.xlu1 %4669 }
0x1ea7   :  { %v4632_v10 = vadd.f32 %v4624_v29, %v4618_v31  ;;  %v4620_v11 = vmul.f32 %v4615_v1, %v4511_v16  ;;  %v4830_v1 = vld [vmem:[%s8133_s3 + $0x5a0] sm:$0xff]  ;;  %v4815_v29 = vld [vmem:[%s8133_s3 + $0x4b0] sm:$0xff] }
0x1ea8   :  { %vm4635_vm12 = vcmp.ge.f32.partialorder %v4631_v41, 0.0  ;;  %v4639_v18 = vmul.f32 0.2, %v4631_v41  ;;  %v4633_v2 = vadd.f32 %v4629_v40, %v4619_v15  ;;  %v5469_v61 = vpack.c.bf16 %v4831_v56, %v4830_v1 }
0x1ea9   :  { %vm4636_vm11 = vcmp.ge.f32.partialorder %v4632_v10, 0.0  ;;  %v4640_v36 = vmul.f32 0.2, %v4632_v10  ;;  %v4634_v46 = vadd.f32 %v4629_v40, %v4620_v11  ;;  %v5471_v31 = vpack.c.bf16 %v4815_v29, %v4814_v21 }
0x1eaa   :  { %v4643_v12 = vsel %vm4635_vm12, %v4631_v41, %v4639_v18  ;;  %vm4637_vm1 = vcmp.ge.f32.partialorder %v4633_v2, 0.0  ;;  %v4641_v9 = vmul.f32 0.2, %v4633_v2  ;;  %v4677_v41 = vrot.slane %v4670_v26, 6 }
0x1eab   :  { %v4647_v60 = vmul.f32 1.4142135, %v4643_v12  ;;  %v4644_v47 = vsel %vm4636_vm11, %v4632_v10, %v4640_v36  ;;  %vm4638_vm2 = vcmp.ge.f32.partialorder %v4634_v46, 0.0  ;;  %v4642_v33 = vmul.f32 0.2, %v4634_v46 }
0x1eac   :  { %v4648_v20 = vmul.f32 1.4142135, %v4644_v47  ;;  %v4645_v6 = vsel %vm4637_vm1, %v4633_v2, %v4641_v9  ;;  %v4676_v15 = vrot.slane %v7437_v48, 6 }
0x1ead   :  { %v4649_v3 = vmul.f32 1.4142135, %v4645_v6  ;;  %v4646_v23 = vsel %vm4638_vm2, %v4634_v46, %v4642_v33  ;;  %v4661_v59 = vmul.f32 %v4654_v39, %v4647_v60 }
0x1eae   :  { %v4650_v34 = vmul.f32 1.4142135, %v4646_v23  ;;  %v4662_v25 = vmul.f32 %v4654_v39, %v4648_v20 }
0x1eaf   :  { %v4663_v54 = vmul.f32 %v4659_v42, %v4649_v3 }
0x1eb0   :  { %v4664_v52 = vmul.f32 %v4659_v42, %v4650_v34 }
0x1eb1   :  { %v4665_v35 = vpack.c.bf16 %v4663_v54, %v4661_v59 }
0x1eb2   :  { %v4666_v58 = vpack.c.bf16 %v4664_v52, %v4662_v25 }
0x1eb4   :  { %4683 = vmatprep.subr.bf16.mxu1 %v4666_v58 }
0x1eb5   :  { %4684 = vmatpush1.bf16.msra.mxu1 %v4665_v35 }
0x1eb6   :  { %5426 = vmatprep.subr.bf16.mxu1 %v7445_v53  ;;  %v4822_v53 = vld [vmem:[%s8133_s3 + $0x520] sm:$0xff] }
0x1eb8   :  { %5015 = vmatmul.mubr.msk.bf16.vlgmr.msra.gmra.mrb[52].mxu1 %vm289_vm0, %v4674_v38  ;;  %vm4675_vm0 = vcmask 1041408  }
0x1eb9   :  { %5428 = vmatpush1.bf16.msra.mxu1 %v7465_v51  ;;  %4791 = vmatprep.mubr.f32.mxu1 %v8165_v43  ;;  %v4823_v43 = vld [vmem:[%s8133_s3 + $0x530] sm:$0xff]  ;;  %v4806_v51 = vld [vmem:[%s8133_s3 + $0x420] sm:$0xff]  ;;  %v4678_v16 = vsel %vm4675_vm0, %v4676_v15, %v4677_v41 }
0x1eba   :  { %5430 = vmatprep.subr.bf16.mxu1 %v7469_v27  ;;  %v5453_v27 = vpack.c.bf16 %v4823_v43, %v4822_v53 }
0x1ebc   :  { %5454 = vmatprep.subr.bf16.mxu0 %v5453_v27 }
0x1ebd   :  { %5432 = vmatpush1.bf16.msra.mxu1 %v7486_v8  ;;  %v4807_v8 = vld [vmem:[%s8133_s3 + $0x430] sm:$0xff] }
0x1ebe   :  { %5434 = vmatprep.subr.bf16.mxu1 %v7490_v55  ;;  %v4824_v55 = vld [vmem:[%s8133_s3 + $0x540] sm:$0xff] }
0x1ec1   :  { %5436 = vmatpush1.bf16.msra.mxu1 %v7505_v30  ;;  %v4825_v30 = vld [vmem:[%s8133_s3 + $0x550] sm:$0xff] }
0x1ec2   :  { %5438 = vmatprep.subr.bf16.mxu1 %v7508_v7  ;;  %v5455_v7 = vpack.c.bf16 %v4807_v8, %v4806_v51 }
0x1ec4   :  { %5456 = vmatpush3.bf16.msra.mxu0 %v5455_v7 }
0x1ec5   :  { %5440 = vmatpush1.bf16.msra.mxu1 %v7517_v13  ;;  %v5457_v13 = vpack.c.bf16 %v4825_v30, %v4824_v55 }
0x1ec7   :  { %5458 = vmatprep.subr.bf16.mxu0 %v5457_v13 }
0x1ec8   :  { %5016 = vmatmul.mubr.msk.f32.vlgmr.msra.gmra.mrb[56].mxu1 %vm979_vm9, %v7533_v17  ;;  %v4808_v17 = vld [vmem:[%s8133_s3 + $0x440] sm:$0xff]  ;;  %vm4902_vm9 = vcmask 518144  }
0x1ec9   :  { %v5459_v0 = vpack.c.bf16 %v4809_v14, %v4808_v17 }
0x1ecb   :  { %5460 = vmatpush3.bf16.msra.mxu0 %v5459_v0 }
0x1ecc   :  { %5462 = vmatprep.subr.bf16.mxu0 %v5461_v22 }
0x1ecf   :  { %5464 = vmatpush3.bf16.msra.mxu0 %v5463_v45 }
0x1ed0   :  { %5466 = vmatprep.subr.bf16.mxu0 %v5465_v62 }
0x1ed3   :  { %5468 = vmatpush3.bf16.msra.mxu0 %v5467_v28 }
0x1ed4   :  { %5470 = vmatprep.subr.bf16.mxu0 %v5469_v61 }
0x1ed7   :  { %5472 = vmatpush3.bf16.msra.mxu0 %v5471_v31 }
0x1f8b   :  { %v4717_v40 = vpop.f32.mrb[52].mxu1 }
0x1f8c   :  { %v4718_v10 = vadd.f32 %v4717_v40, %v4678_v16  ;;  %v4719_v11 = vpop.f32.mrb[53].mxu1 }
0x1f8d   :  { %v4720_v18 = vadd.f32 %v4719_v11, %v4678_v16  ;;  %v4721_v2 = vpop.f32.mrb[54].mxu1 }
0x1f8e   :  { %v4722_v36 = vpop.f32.mrb[55].mxu1 }
0x1f9b   :  { %v4793_v46 = vpop.f32.mrb[56].mxu1 }
0x1f9c   :  { %v4798_v12 = vadd.f32 %v4793_v46, %v4718_v10  ;;  %v4795_v9 = vpop.f32.mrb[57].mxu1 }
0x1f9d   :  { %v4799_v60 = vadd.f32 %v4795_v9, %v4720_v18 }
0x1f9f   :  { %4896 = vmatprep.mubr.f32.mxu0 %v4799_v60 }
0x1fa0   :  { %4897 = vmatmul.mubr.f32.vlgmr.msra.gmra.mrb[66].mxu0 %v4798_v12 }
0x2073   :  { %v5166_v47 = vpop.f32.mrb[66].mxu0 }
0x2074   :  { %v5167_v33 = vpop.f32.mrb[67].mxu0 }
0x2075   :  { %v5168_v20 = vadd.f32 %v5167_v33, %v5166_v47 }
0x2077   :  { %4903 = vst.msk [vmem:[%s8134_s4] sm:$0x7] %vm4902_vm9, %v5168_v20 }

</bundles_post_ra>
